<compile_context>
chip_gen: v5e
topology: v5e:2x2
jax: 0.10.0
libtpu: 0.0.40
codegen_flags: <defaults>
</compile_context>

<pallas_src>
import jax
import jax.numpy as jnp
from jax.experimental import pallas as pl
from jax.experimental.pallas import tpu as pltpu

BN_EPS = 1e-5

# Problem sizes (small, consistent with the module's forward)
N = 2          # batch (per view)
C_IN = 3       # image channels
H = W = 16     # spatial
KH = KW = 3    # conv stem kernel
PREV_DIM = 32  # encoder feature dim (== encoder.fc.weight.shape[1])
DIM = 64       # SimSiam projection dim
PRED_DIM = 16  # predictor hidden dim

K_RAW = KH * KW * C_IN   # 27 im2col features per output pixel
K_PAD = 32               # zero-padded to a lane-friendly 32

# ---- parameter slab layout: (SLAB_ROWS, 128) f32, row offsets multiples of 8 ----
LANES = 128
_OFF_CONV = 0                      # (K_PAD,    PREV_DIM) rows [  0,  32)
_OFF_PJ1 = _OFF_CONV + K_PAD       # (PREV_DIM, PREV_DIM) rows [ 32,  64)
_OFF_PJ2 = _OFF_PJ1 + PREV_DIM     # (PREV_DIM, DIM)      rows [ 64,  96)
_OFF_PR1 = _OFF_PJ2 + PREV_DIM     # (DIM,      PRED_DIM) rows [ 96, 160)
_OFF_PR2 = _OFF_PR1 + DIM          # (PRED_DIM, DIM)      rows [160, 176)
_OFF_VEC = _OFF_PR2 + PRED_DIM     # 8 packed vector rows rows [176, 184)
SLAB_ROWS = _OFF_VEC + 8           # 184 (multiple of 8)
# vector rows inside the [_OFF_VEC, _OFF_VEC+8) block:
#   0: bn0_gamma(32)  1: bn0_beta(32)  2: proj_bn1_gamma(32)  3: proj_bn1_beta(32)
#   4: proj_b2(64)    5: pred_bn_gamma(16)  6: pred_bn_beta(16)  7: pred_b2(64)


def _bn_per_view(x, rows_per_view, gamma=None, beta=None):
    """Training-mode BatchNorm with *per-view* batch statistics.

    Rows of `x` are laid out [view1 ; view2]; statistics (biased variance,
    eps=1e-5) are computed independently per view, matching two separate
    PyTorch module calls.  Single-pass variance: var = E[x^2] - mean^2.
    """
    halves = []
    for v in range(2):
        xv = x[v * rows_per_view:(v + 1) * rows_per_view, :]
        mean = jnp.mean(xv, axis=0, keepdims=True)
        mean_sq = jnp.mean(xv * xv, axis=0, keepdims=True)
        var = jnp.maximum(mean_sq - mean * mean, 0.0)
        halves.append((xv - mean) * jax.lax.rsqrt(var + BN_EPS))
    xhat = jnp.concatenate(halves, axis=0)
    if gamma is not None:
        xhat = xhat * gamma + beta
    return xhat


# ------------------------------ fused Pallas kernel ------------------------------
# Single step, both views: encoder -> projector -> predictor, all in VMEM.

def _simsiam_kernel(lhs_ref, w_ref, out_ref):
    # ---- static weight slices out of the packed parameter slab (one DMA'd input)
    conv_w  = w_ref[_OFF_CONV:_OFF_CONV + K_PAD, 0:PREV_DIM]
    proj_w1 = w_ref[_OFF_PJ1:_OFF_PJ1 + PREV_DIM, 0:PREV_DIM]
    proj_w2 = w_ref[_OFF_PJ2:_OFF_PJ2 + PREV_DIM, 0:DIM]
    pred_w1 = w_ref[_OFF_PR1:_OFF_PR1 + DIM, 0:PRED_DIM]
    pred_w2 = w_ref[_OFF_PR2:_OFF_PR2 + PRED_DIM, 0:DIM]
    vecs    = w_ref[_OFF_VEC:_OFF_VEC + 8, :]                 # (8, 128) == 1 vreg
    bn0_g, bn0_b = vecs[0:1, 0:PREV_DIM], vecs[1:2, 0:PREV_DIM]
    pj_g1, pj_b1 = vecs[2:3, 0:PREV_DIM], vecs[3:4, 0:PREV_DIM]
    pj_b2        = vecs[4:5, 0:DIM]
    pr_g, pr_b   = vecs[5:6, 0:PRED_DIM], vecs[6:7, 0:PRED_DIM]
    pr_b2        = vecs[7:8, 0:DIM]

    # ---- encoder: conv-as-one-matmul -> BN2d(train, per view) -> ReLU -> GAP
    y = jnp.dot(lhs_ref[...], conv_w,
                preferred_element_type=jnp.float32)            # (2N*H*W, PREV_DIM)
    y = jnp.maximum(_bn_per_view(y, N * H * W, bn0_g, bn0_b), 0.0)
    # global average pool: relayout-free leading-axis split (H*W = 256 % 8 == 0)
    f = jnp.mean(y.reshape(2 * N, H * W, PREV_DIM), axis=1)    # (2N, PREV_DIM)

    # ---- projector: Linear(no bias) -> BN1d(affine) -> ReLU -> Linear(bias) -> BN1d(affine=False)
    h = jnp.dot(f, proj_w1, preferred_element_type=jnp.float32)
    h = jnp.maximum(_bn_per_view(h, N, pj_g1, pj_b1), 0.0)
    z = jnp.dot(h, proj_w2, preferred_element_type=jnp.float32) + pj_b2
    z = _bn_per_view(z, N)                                      # affine=False

    # ---- predictor: Linear(no bias) -> BN1d(affine) -> ReLU -> Linear(bias)
    g = jnp.dot(z, pred_w1, preferred_element_type=jnp.float32)
    g = jnp.maximum(_bn_per_view(g, N, pr_g, pr_b), 0.0)
    p = jnp.dot(g, pred_w2, preferred_element_type=jnp.float32) + pr_b2

    # lane-dense packed output: [z | p] -> (2N, 2*DIM == 128 lanes)
    out_ref[...] = jnp.concatenate([z, p], axis=-1)


# --------------------------------- JAX wrapper -----------------------------------

def _im2col(x_nchw):
    """3x3 'same'-conv patches: (B,C,H,W) -> (B*H*W, K_PAD) lane-dense MXU LHS."""
    xhwc = jnp.transpose(x_nchw, (0, 2, 3, 1))                  # NHWC
    xp = jnp.pad(xhwc, ((0, 0), (1, 1), (1, 1), (0, 0)))        # (B, H+2, W+2, C)
    cols = jnp.concatenate(
        [xp[:, dy:dy + H, dx:dx + W, :] for dy in range(KH) for dx in range(KW)],
        axis=-1)                                                # (B, H, W, 27)
    cols = cols.reshape(x_nchw.shape[0] * H * W, K_RAW)
    return jnp.pad(cols, ((0, 0), (0, K_PAD - K_RAW)))          # (B*H*W, 32)


def _pack_params(p):
    """Pack all 13 parameter tensors into one (SLAB_ROWS, 128) f32 slab (one DMA)."""
    def block(a, rows):
        return jnp.pad(a, ((0, rows - a.shape[0]), (0, LANES - a.shape[1])))
    vec_rows = jnp.concatenate(
        [jnp.pad(v, ((0, 0), (0, LANES - v.shape[1])))
         for v in (p["bn0_g"], p["bn0_b"], p["proj_bn1_g"], p["proj_bn1_b"],
                   p["proj_b2"], p["pred_bn_g"], p["pred_bn_b"], p["pred_b2"])],
        axis=0)                                                 # (8, 128)
    return jnp.concatenate(
        [block(jnp.pad(p["conv_w"], ((0, K_PAD - K_RAW), (0, 0))), K_PAD),
         block(p["proj_w1"], PREV_DIM),
         block(p["proj_w2"], PREV_DIM),
         block(p["pred_w1"], DIM),
         block(p["pred_w2"], PRED_DIM),
         vec_rows],
        axis=0).astype(jnp.float32)                             # (SLAB_ROWS, 128)


@jax.jit
def simsiam_forward(params, x1, x2):
    """SimSiam.forward: returns (p1, p2, z1.detach(), z2.detach(), logits=None)."""
    x = jnp.concatenate([x1, x2], axis=0).astype(jnp.float32)   # (2N, C, H, W)
    lhs = _im2col(x)                                            # (2N*H*W, K_PAD)
    w_slab = _pack_params(params)                               # (SLAB_ROWS, 128)

    out = pl.pallas_call(
        _simsiam_kernel,
        out_shape=jax.ShapeDtypeStruct((2 * N, 2 * DIM), jnp.float32),
        in_specs=[pl.BlockSpec(memory_space=pltpu.MemorySpace.VMEM),
                  pl.BlockSpec(memory_space=pltpu.MemorySpace.VMEM)],
        out_specs=pl.BlockSpec(memory_space=pltpu.MemorySpace.VMEM),
    )(lhs, w_slab)

    z1, p1 = out[:N, :DIM], out[:N, DIM:]
    z2, p2 = out[N:, :DIM], out[N:, DIM:]
    logits = None  # sup_branch=False -> self.cls is None
    return p1, p2, jax.lax.stop_gradient(z1), jax.lax.stop_gradient(z2), logits


def init_params(key):
    ks = jax.random.split(key, 7)

    def rnd(k, shape, scale):
        return scale * jax.random.normal(k, shape, jnp.float32)

    return {
        # encoder conv stem weight in im2col layout: (KH*KW*C_IN, PREV_DIM).
        # A PyTorch (C_out, C_in, KH, KW) weight maps via
        #   w.transpose(2, 3, 1, 0).reshape(KH * KW * C_IN, C_out).
        "conv_w": rnd(ks[0], (K_RAW, PREV_DIM), 0.1),
        "bn0_g": jnp.ones((1, PREV_DIM), jnp.float32),
        "bn0_b": jnp.zeros((1, PREV_DIM), jnp.float32),
        # projector: Linear(prev,prev,bias=False), BN1d(prev), ReLU,
        #            Linear(prev,dim,bias=True), BN1d(dim,affine=False)
        "proj_w1": rnd(ks[1], (PREV_DIM, PREV_DIM), 0.1),
        "proj_bn1_g": jnp.ones((1, PREV_DIM), jnp.float32),
        "proj_bn1_b": jnp.zeros((1, PREV_DIM), jnp.float32),
        "proj_w2": rnd(ks[2], (PREV_DIM, DIM), 0.1),
        "proj_b2": rnd(ks[3], (1, DIM), 0.01),  # bias exists (requires_grad=False in torch)
        # predictor: Linear(dim,pred_dim,bias=False), BN1d(pred_dim), ReLU, Linear(pred_dim,dim)
        "pred_w1": rnd(ks[4], (DIM, PRED_DIM), 0.1),
        "pred_bn_g": jnp.ones((1, PRED_DIM), jnp.float32),
        "pred_bn_b": jnp.zeros((1, PRED_DIM), jnp.float32),
        "pred_w2": rnd(ks[5], (PRED_DIM, DIM), 0.1),
        "pred_b2": rnd(ks[6], (1, DIM), 0.01),
    }


if __name__ == "__main__":
    key = jax.random.PRNGKey(0)
    kx1, kx2, kp = jax.random.split(key, 3)
    x1 = jax.random.normal(kx1, (N, C_IN, H, W), jnp.float32)  # NCHW, like PyTorch
    x2 = jax.random.normal(kx2, (N, C_IN, H, W), jnp.float32)
    params = init_params(kp)

    p1, p2, z1, z2, logits = simsiam_forward(params, x1, x2)
    jax.block_until_ready((p1, p2, z1, z2))

    assert p1.shape == (N, DIM) and p2.shape == (N, DIM)
    assert z1.shape == (N, DIM) and z2.shape == (N, DIM)
    assert p1.dtype == jnp.float32 and z1.dtype == jnp.float32
    assert logits is None
    assert bool(jnp.all(jnp.isfinite(p1)) & jnp.all(jnp.isfinite(p2))
                & jnp.all(jnp.isfinite(z1)) & jnp.all(jnp.isfinite(z2)))
    print("KERNEL_OK")
</pallas_src>

<mosaic_0001>
module attributes {stable_mosaic.version = 11 : i64} {
  func.func @_simsiam_kernel(%arg0: memref<1024x32xf32, #tpu.memory_space<vmem>>, %arg1: memref<184x128xf32, #tpu.memory_space<vmem>>, %arg2: memref<4x128xf32, #tpu.memory_space<vmem>>) attributes {dimension_semantics = [], scalar_prefetch = 0 : i64, scratch_operands = 0 : i64, tpu.core_type = #tpu.core_type<tc>} {
    %c0 = arith.constant 0 : index
    %c0_0 = arith.constant 0 : index
    %0 = vector.load %arg1[%c0, %c0_0] : memref<184x128xf32, #tpu.memory_space<vmem>>, vector<32x32xf32>
    %c32 = arith.constant 32 : index
    %c0_1 = arith.constant 0 : index
    %1 = vector.load %arg1[%c32, %c0_1] : memref<184x128xf32, #tpu.memory_space<vmem>>, vector<32x32xf32>
    %c64 = arith.constant 64 : index
    %c0_2 = arith.constant 0 : index
    %2 = vector.load %arg1[%c64, %c0_2] : memref<184x128xf32, #tpu.memory_space<vmem>>, vector<32x64xf32>
    %c96 = arith.constant 96 : index
    %c0_3 = arith.constant 0 : index
    %3 = vector.load %arg1[%c96, %c0_3] : memref<184x128xf32, #tpu.memory_space<vmem>>, vector<64x16xf32>
    %c160 = arith.constant 160 : index
    %c0_4 = arith.constant 0 : index
    %4 = vector.load %arg1[%c160, %c0_4] : memref<184x128xf32, #tpu.memory_space<vmem>>, vector<16x64xf32>
    %c176 = arith.constant 176 : index
    %c0_5 = arith.constant 0 : index
    %5 = vector.load %arg1[%c176, %c0_5] : memref<184x128xf32, #tpu.memory_space<vmem>>, vector<8x128xf32>
    %6 = vector.extract_strided_slice %5 {offsets = [0, 0], sizes = [1, 32], strides = [1, 1]} : vector<8x128xf32> to vector<1x32xf32>
    %7 = vector.extract_strided_slice %5 {offsets = [1, 0], sizes = [1, 32], strides = [1, 1]} : vector<8x128xf32> to vector<1x32xf32>
    %8 = vector.extract_strided_slice %5 {offsets = [2, 0], sizes = [1, 32], strides = [1, 1]} : vector<8x128xf32> to vector<1x32xf32>
    %9 = vector.extract_strided_slice %5 {offsets = [3, 0], sizes = [1, 32], strides = [1, 1]} : vector<8x128xf32> to vector<1x32xf32>
    %10 = vector.extract_strided_slice %5 {offsets = [4, 0], sizes = [1, 64], strides = [1, 1]} : vector<8x128xf32> to vector<1x64xf32>
    %11 = vector.extract_strided_slice %5 {offsets = [5, 0], sizes = [1, 16], strides = [1, 1]} : vector<8x128xf32> to vector<1x16xf32>
    %12 = vector.extract_strided_slice %5 {offsets = [6, 0], sizes = [1, 16], strides = [1, 1]} : vector<8x128xf32> to vector<1x16xf32>
    %13 = vector.extract_strided_slice %5 {offsets = [7, 0], sizes = [1, 64], strides = [1, 1]} : vector<8x128xf32> to vector<1x64xf32>
    %c0_6 = arith.constant 0 : index
    %c0_7 = arith.constant 0 : index
    %14 = vector.load %arg0[%c0_6, %c0_7] : memref<1024x32xf32, #tpu.memory_space<vmem>>, vector<1024x32xf32>
    %cst = arith.constant dense<0.000000e+00> : vector<1024x32xf32>
    %15 = tpu.matmul %14, %0, %cst {dimension_numbers = #tpu.dot_dimension_numbers<[1], [0], [0], [1], [0, 0, 1, 1], [], []>} : vector<1024x32xf32>, vector<32x32xf32>, vector<1024x32xf32> -> vector<1024x32xf32>
    %16 = vector.extract_strided_slice %15 {offsets = [0, 0], sizes = [512, 32], strides = [1, 1]} : vector<1024x32xf32> to vector<512x32xf32>
    %cst_8 = arith.constant dense<0.000000e+00> : vector<32xf32>
    %17 = vector.multi_reduction <add>, %16, %cst_8 [0] : vector<512x32xf32> to vector<32xf32>
    %18 = vector.shape_cast %17 : vector<32xf32> to vector<1x32xf32>
    %cst_9 = arith.constant 5.120000e+02 : f32
    %19 = vector.broadcast %cst_9 : f32 to vector<1x32xf32>
    %20 = arith.divf %18, %19 : vector<1x32xf32>
    %21 = arith.mulf %16, %16 : vector<512x32xf32>
    %cst_10 = arith.constant dense<0.000000e+00> : vector<32xf32>
    %22 = vector.multi_reduction <add>, %21, %cst_10 [0] : vector<512x32xf32> to vector<32xf32>
    %23 = vector.shape_cast %22 : vector<32xf32> to vector<1x32xf32>
    %cst_11 = arith.constant 5.120000e+02 : f32
    %24 = vector.broadcast %cst_11 : f32 to vector<1x32xf32>
    %25 = arith.divf %23, %24 : vector<1x32xf32>
    %26 = arith.mulf %20, %20 : vector<1x32xf32>
    %27 = arith.subf %25, %26 : vector<1x32xf32>
    %cst_12 = arith.constant 0.000000e+00 : f32
    %28 = vector.broadcast %cst_12 : f32 to vector<1x32xf32>
    %29 = arith.maximumf %27, %28 : vector<1x32xf32>
    %30 = vector.broadcast %20 : vector<1x32xf32> to vector<512x32xf32>
    %31 = arith.subf %16, %30 : vector<512x32xf32>
    %cst_13 = arith.constant 9.99999974E-6 : f32
    %32 = vector.broadcast %cst_13 : f32 to vector<1x32xf32>
    %33 = arith.addf %29, %32 : vector<1x32xf32>
    %34 = math.rsqrt %33 : vector<1x32xf32>
    %35 = vector.broadcast %34 : vector<1x32xf32> to vector<512x32xf32>
    %36 = arith.mulf %31, %35 : vector<512x32xf32>
    %37 = vector.extract_strided_slice %15 {offsets = [512, 0], sizes = [512, 32], strides = [1, 1]} : vector<1024x32xf32> to vector<512x32xf32>
    %cst_14 = arith.constant dense<0.000000e+00> : vector<32xf32>
    %38 = vector.multi_reduction <add>, %37, %cst_14 [0] : vector<512x32xf32> to vector<32xf32>
    %39 = vector.shape_cast %38 : vector<32xf32> to vector<1x32xf32>
    %cst_15 = arith.constant 5.120000e+02 : f32
    %40 = vector.broadcast %cst_15 : f32 to vector<1x32xf32>
    %41 = arith.divf %39, %40 : vector<1x32xf32>
    %42 = arith.mulf %37, %37 : vector<512x32xf32>
    %cst_16 = arith.constant dense<0.000000e+00> : vector<32xf32>
    %43 = vector.multi_reduction <add>, %42, %cst_16 [0] : vector<512x32xf32> to vector<32xf32>
    %44 = vector.shape_cast %43 : vector<32xf32> to vector<1x32xf32>
    %cst_17 = arith.constant 5.120000e+02 : f32
    %45 = vector.broadcast %cst_17 : f32 to vector<1x32xf32>
    %46 = arith.divf %44, %45 : vector<1x32xf32>
    %47 = arith.mulf %41, %41 : vector<1x32xf32>
    %48 = arith.subf %46, %47 : vector<1x32xf32>
    %cst_18 = arith.constant 0.000000e+00 : f32
    %49 = vector.broadcast %cst_18 : f32 to vector<1x32xf32>
    %50 = arith.maximumf %48, %49 : vector<1x32xf32>
    %51 = vector.broadcast %41 : vector<1x32xf32> to vector<512x32xf32>
    %52 = arith.subf %37, %51 : vector<512x32xf32>
    %cst_19 = arith.constant 9.99999974E-6 : f32
    %53 = vector.broadcast %cst_19 : f32 to vector<1x32xf32>
    %54 = arith.addf %50, %53 : vector<1x32xf32>
    %55 = math.rsqrt %54 : vector<1x32xf32>
    %56 = vector.broadcast %55 : vector<1x32xf32> to vector<512x32xf32>
    %57 = arith.mulf %52, %56 : vector<512x32xf32>
    %58 = tpu.concatenate %36, %57 in 0 : vector<512x32xf32>, vector<512x32xf32> -> vector<1024x32xf32>
    %59 = vector.broadcast %6 : vector<1x32xf32> to vector<1024x32xf32>
    %60 = arith.mulf %58, %59 : vector<1024x32xf32>
    %61 = vector.broadcast %7 : vector<1x32xf32> to vector<1024x32xf32>
    %62 = arith.addf %60, %61 : vector<1024x32xf32>
    %cst_20 = arith.constant 0.000000e+00 : f32
    %63 = vector.broadcast %cst_20 : f32 to vector<1024x32xf32>
    %64 = arith.maximumf %62, %63 : vector<1024x32xf32>
    %65 = vector.shape_cast %64 : vector<1024x32xf32> to vector<4x256x32xf32>
    %cst_21 = arith.constant dense<0.000000e+00> : vector<4x32xf32>
    %66 = vector.multi_reduction <add>, %65, %cst_21 [1] : vector<4x256x32xf32> to vector<4x32xf32>
    %cst_22 = arith.constant 2.560000e+02 : f32
    %67 = vector.broadcast %cst_22 : f32 to vector<4x32xf32>
    %68 = arith.divf %66, %67 : vector<4x32xf32>
    %cst_23 = arith.constant dense<0.000000e+00> : vector<4x32xf32>
    %69 = tpu.matmul %68, %1, %cst_23 {dimension_numbers = #tpu.dot_dimension_numbers<[1], [0], [0], [1], [0, 0, 1, 1], [], []>} : vector<4x32xf32>, vector<32x32xf32>, vector<4x32xf32> -> vector<4x32xf32>
    %70 = vector.extract_strided_slice %69 {offsets = [0, 0], sizes = [2, 32], strides = [1, 1]} : vector<4x32xf32> to vector<2x32xf32>
    %cst_24 = arith.constant dense<0.000000e+00> : vector<32xf32>
    %71 = vector.multi_reduction <add>, %70, %cst_24 [0] : vector<2x32xf32> to vector<32xf32>
    %72 = vector.shape_cast %71 : vector<32xf32> to vector<1x32xf32>
    %cst_25 = arith.constant 2.000000e+00 : f32
    %73 = vector.broadcast %cst_25 : f32 to vector<1x32xf32>
    %74 = arith.divf %72, %73 : vector<1x32xf32>
    %75 = arith.mulf %70, %70 : vector<2x32xf32>
    %cst_26 = arith.constant dense<0.000000e+00> : vector<32xf32>
    %76 = vector.multi_reduction <add>, %75, %cst_26 [0] : vector<2x32xf32> to vector<32xf32>
    %77 = vector.shape_cast %76 : vector<32xf32> to vector<1x32xf32>
    %cst_27 = arith.constant 2.000000e+00 : f32
    %78 = vector.broadcast %cst_27 : f32 to vector<1x32xf32>
    %79 = arith.divf %77, %78 : vector<1x32xf32>
    %80 = arith.mulf %74, %74 : vector<1x32xf32>
    %81 = arith.subf %79, %80 : vector<1x32xf32>
    %cst_28 = arith.constant 0.000000e+00 : f32
    %82 = vector.broadcast %cst_28 : f32 to vector<1x32xf32>
    %83 = arith.maximumf %81, %82 : vector<1x32xf32>
    %84 = vector.broadcast %74 : vector<1x32xf32> to vector<2x32xf32>
    %85 = arith.subf %70, %84 : vector<2x32xf32>
    %cst_29 = arith.constant 9.99999974E-6 : f32
    %86 = vector.broadcast %cst_29 : f32 to vector<1x32xf32>
    %87 = arith.addf %83, %86 : vector<1x32xf32>
    %88 = math.rsqrt %87 : vector<1x32xf32>
    %89 = vector.broadcast %88 : vector<1x32xf32> to vector<2x32xf32>
    %90 = arith.mulf %85, %89 : vector<2x32xf32>
    %91 = vector.extract_strided_slice %69 {offsets = [2, 0], sizes = [2, 32], strides = [1, 1]} : vector<4x32xf32> to vector<2x32xf32>
    %cst_30 = arith.constant dense<0.000000e+00> : vector<32xf32>
    %92 = vector.multi_reduction <add>, %91, %cst_30 [0] : vector<2x32xf32> to vector<32xf32>
    %93 = vector.shape_cast %92 : vector<32xf32> to vector<1x32xf32>
    %cst_31 = arith.constant 2.000000e+00 : f32
    %94 = vector.broadcast %cst_31 : f32 to vector<1x32xf32>
    %95 = arith.divf %93, %94 : vector<1x32xf32>
    %96 = arith.mulf %91, %91 : vector<2x32xf32>
    %cst_32 = arith.constant dense<0.000000e+00> : vector<32xf32>
    %97 = vector.multi_reduction <add>, %96, %cst_32 [0] : vector<2x32xf32> to vector<32xf32>
    %98 = vector.shape_cast %97 : vector<32xf32> to vector<1x32xf32>
    %cst_33 = arith.constant 2.000000e+00 : f32
    %99 = vector.broadcast %cst_33 : f32 to vector<1x32xf32>
    %100 = arith.divf %98, %99 : vector<1x32xf32>
    %101 = arith.mulf %95, %95 : vector<1x32xf32>
    %102 = arith.subf %100, %101 : vector<1x32xf32>
    %cst_34 = arith.constant 0.000000e+00 : f32
    %103 = vector.broadcast %cst_34 : f32 to vector<1x32xf32>
    %104 = arith.maximumf %102, %103 : vector<1x32xf32>
    %105 = vector.broadcast %95 : vector<1x32xf32> to vector<2x32xf32>
    %106 = arith.subf %91, %105 : vector<2x32xf32>
    %cst_35 = arith.constant 9.99999974E-6 : f32
    %107 = vector.broadcast %cst_35 : f32 to vector<1x32xf32>
    %108 = arith.addf %104, %107 : vector<1x32xf32>
    %109 = math.rsqrt %108 : vector<1x32xf32>
    %110 = vector.broadcast %109 : vector<1x32xf32> to vector<2x32xf32>
    %111 = arith.mulf %106, %110 : vector<2x32xf32>
    %112 = tpu.concatenate %90, %111 in 0 : vector<2x32xf32>, vector<2x32xf32> -> vector<4x32xf32>
    %113 = vector.broadcast %8 : vector<1x32xf32> to vector<4x32xf32>
    %114 = arith.mulf %112, %113 : vector<4x32xf32>
    %115 = vector.broadcast %9 : vector<1x32xf32> to vector<4x32xf32>
    %116 = arith.addf %114, %115 : vector<4x32xf32>
    %cst_36 = arith.constant 0.000000e+00 : f32
    %117 = vector.broadcast %cst_36 : f32 to vector<4x32xf32>
    %118 = arith.maximumf %116, %117 : vector<4x32xf32>
    %cst_37 = arith.constant dense<0.000000e+00> : vector<4x64xf32>
    %119 = tpu.matmul %118, %2, %cst_37 {dimension_numbers = #tpu.dot_dimension_numbers<[1], [0], [0], [1], [0, 0, 1, 1], [], []>} : vector<4x32xf32>, vector<32x64xf32>, vector<4x64xf32> -> vector<4x64xf32>
    %120 = vector.broadcast %10 : vector<1x64xf32> to vector<4x64xf32>
    %121 = arith.addf %119, %120 : vector<4x64xf32>
    %122 = vector.extract_strided_slice %121 {offsets = [0, 0], sizes = [2, 64], strides = [1, 1]} : vector<4x64xf32> to vector<2x64xf32>
    %cst_38 = arith.constant dense<0.000000e+00> : vector<64xf32>
    %123 = vector.multi_reduction <add>, %122, %cst_38 [0] : vector<2x64xf32> to vector<64xf32>
    %124 = vector.shape_cast %123 : vector<64xf32> to vector<1x64xf32>
    %cst_39 = arith.constant 2.000000e+00 : f32
    %125 = vector.broadcast %cst_39 : f32 to vector<1x64xf32>
    %126 = arith.divf %124, %125 : vector<1x64xf32>
    %127 = arith.mulf %122, %122 : vector<2x64xf32>
    %cst_40 = arith.constant dense<0.000000e+00> : vector<64xf32>
    %128 = vector.multi_reduction <add>, %127, %cst_40 [0] : vector<2x64xf32> to vector<64xf32>
    %129 = vector.shape_cast %128 : vector<64xf32> to vector<1x64xf32>
    %cst_41 = arith.constant 2.000000e+00 : f32
    %130 = vector.broadcast %cst_41 : f32 to vector<1x64xf32>
    %131 = arith.divf %129, %130 : vector<1x64xf32>
    %132 = arith.mulf %126, %126 : vector<1x64xf32>
    %133 = arith.subf %131, %132 : vector<1x64xf32>
    %cst_42 = arith.constant 0.000000e+00 : f32
    %134 = vector.broadcast %cst_42 : f32 to vector<1x64xf32>
    %135 = arith.maximumf %133, %134 : vector<1x64xf32>
    %136 = vector.broadcast %126 : vector<1x64xf32> to vector<2x64xf32>
    %137 = arith.subf %122, %136 : vector<2x64xf32>
    %cst_43 = arith.constant 9.99999974E-6 : f32
    %138 = vector.broadcast %cst_43 : f32 to vector<1x64xf32>
    %139 = arith.addf %135, %138 : vector<1x64xf32>
    %140 = math.rsqrt %139 : vector<1x64xf32>
    %141 = vector.broadcast %140 : vector<1x64xf32> to vector<2x64xf32>
    %142 = arith.mulf %137, %141 : vector<2x64xf32>
    %143 = vector.extract_strided_slice %121 {offsets = [2, 0], sizes = [2, 64], strides = [1, 1]} : vector<4x64xf32> to vector<2x64xf32>
    %cst_44 = arith.constant dense<0.000000e+00> : vector<64xf32>
    %144 = vector.multi_reduction <add>, %143, %cst_44 [0] : vector<2x64xf32> to vector<64xf32>
    %145 = vector.shape_cast %144 : vector<64xf32> to vector<1x64xf32>
    %cst_45 = arith.constant 2.000000e+00 : f32
    %146 = vector.broadcast %cst_45 : f32 to vector<1x64xf32>
    %147 = arith.divf %145, %146 : vector<1x64xf32>
    %148 = arith.mulf %143, %143 : vector<2x64xf32>
    %cst_46 = arith.constant dense<0.000000e+00> : vector<64xf32>
    %149 = vector.multi_reduction <add>, %148, %cst_46 [0] : vector<2x64xf32> to vector<64xf32>
    %150 = vector.shape_cast %149 : vector<64xf32> to vector<1x64xf32>
    %cst_47 = arith.constant 2.000000e+00 : f32
    %151 = vector.broadcast %cst_47 : f32 to vector<1x64xf32>
    %152 = arith.divf %150, %151 : vector<1x64xf32>
    %153 = arith.mulf %147, %147 : vector<1x64xf32>
    %154 = arith.subf %152, %153 : vector<1x64xf32>
    %cst_48 = arith.constant 0.000000e+00 : f32
    %155 = vector.broadcast %cst_48 : f32 to vector<1x64xf32>
    %156 = arith.maximumf %154, %155 : vector<1x64xf32>
    %157 = vector.broadcast %147 : vector<1x64xf32> to vector<2x64xf32>
    %158 = arith.subf %143, %157 : vector<2x64xf32>
    %cst_49 = arith.constant 9.99999974E-6 : f32
    %159 = vector.broadcast %cst_49 : f32 to vector<1x64xf32>
    %160 = arith.addf %156, %159 : vector<1x64xf32>
    %161 = math.rsqrt %160 : vector<1x64xf32>
    %162 = vector.broadcast %161 : vector<1x64xf32> to vector<2x64xf32>
    %163 = arith.mulf %158, %162 : vector<2x64xf32>
    %164 = tpu.concatenate %142, %163 in 0 : vector<2x64xf32>, vector<2x64xf32> -> vector<4x64xf32>
    %cst_50 = arith.constant dense<0.000000e+00> : vector<4x16xf32>
    %165 = tpu.matmul %164, %3, %cst_50 {dimension_numbers = #tpu.dot_dimension_numbers<[1], [0], [0], [1], [0, 0, 1, 1], [], []>} : vector<4x64xf32>, vector<64x16xf32>, vector<4x16xf32> -> vector<4x16xf32>
    %166 = vector.extract_strided_slice %165 {offsets = [0, 0], sizes = [2, 16], strides = [1, 1]} : vector<4x16xf32> to vector<2x16xf32>
    %cst_51 = arith.constant dense<0.000000e+00> : vector<16xf32>
    %167 = vector.multi_reduction <add>, %166, %cst_51 [0] : vector<2x16xf32> to vector<16xf32>
    %168 = vector.shape_cast %167 : vector<16xf32> to vector<1x16xf32>
    %cst_52 = arith.constant 2.000000e+00 : f32
    %169 = vector.broadcast %cst_52 : f32 to vector<1x16xf32>
    %170 = arith.divf %168, %169 : vector<1x16xf32>
    %171 = arith.mulf %166, %166 : vector<2x16xf32>
    %cst_53 = arith.constant dense<0.000000e+00> : vector<16xf32>
    %172 = vector.multi_reduction <add>, %171, %cst_53 [0] : vector<2x16xf32> to vector<16xf32>
    %173 = vector.shape_cast %172 : vector<16xf32> to vector<1x16xf32>
    %cst_54 = arith.constant 2.000000e+00 : f32
    %174 = vector.broadcast %cst_54 : f32 to vector<1x16xf32>
    %175 = arith.divf %173, %174 : vector<1x16xf32>
    %176 = arith.mulf %170, %170 : vector<1x16xf32>
    %177 = arith.subf %175, %176 : vector<1x16xf32>
    %cst_55 = arith.constant 0.000000e+00 : f32
    %178 = vector.broadcast %cst_55 : f32 to vector<1x16xf32>
    %179 = arith.maximumf %177, %178 : vector<1x16xf32>
    %180 = vector.broadcast %170 : vector<1x16xf32> to vector<2x16xf32>
    %181 = arith.subf %166, %180 : vector<2x16xf32>
    %cst_56 = arith.constant 9.99999974E-6 : f32
    %182 = vector.broadcast %cst_56 : f32 to vector<1x16xf32>
    %183 = arith.addf %179, %182 : vector<1x16xf32>
    %184 = math.rsqrt %183 : vector<1x16xf32>
    %185 = vector.broadcast %184 : vector<1x16xf32> to vector<2x16xf32>
    %186 = arith.mulf %181, %185 : vector<2x16xf32>
    %187 = vector.extract_strided_slice %165 {offsets = [2, 0], sizes = [2, 16], strides = [1, 1]} : vector<4x16xf32> to vector<2x16xf32>
    %cst_57 = arith.constant dense<0.000000e+00> : vector<16xf32>
    %188 = vector.multi_reduction <add>, %187, %cst_57 [0] : vector<2x16xf32> to vector<16xf32>
    %189 = vector.shape_cast %188 : vector<16xf32> to vector<1x16xf32>
    %cst_58 = arith.constant 2.000000e+00 : f32
    %190 = vector.broadcast %cst_58 : f32 to vector<1x16xf32>
    %191 = arith.divf %189, %190 : vector<1x16xf32>
    %192 = arith.mulf %187, %187 : vector<2x16xf32>
    %cst_59 = arith.constant dense<0.000000e+00> : vector<16xf32>
    %193 = vector.multi_reduction <add>, %192, %cst_59 [0] : vector<2x16xf32> to vector<16xf32>
    %194 = vector.shape_cast %193 : vector<16xf32> to vector<1x16xf32>
    %cst_60 = arith.constant 2.000000e+00 : f32
    %195 = vector.broadcast %cst_60 : f32 to vector<1x16xf32>
    %196 = arith.divf %194, %195 : vector<1x16xf32>
    %197 = arith.mulf %191, %191 : vector<1x16xf32>
    %198 = arith.subf %196, %197 : vector<1x16xf32>
    %cst_61 = arith.constant 0.000000e+00 : f32
    %199 = vector.broadcast %cst_61 : f32 to vector<1x16xf32>
    %200 = arith.maximumf %198, %199 : vector<1x16xf32>
    %201 = vector.broadcast %191 : vector<1x16xf32> to vector<2x16xf32>
    %202 = arith.subf %187, %201 : vector<2x16xf32>
    %cst_62 = arith.constant 9.99999974E-6 : f32
    %203 = vector.broadcast %cst_62 : f32 to vector<1x16xf32>
    %204 = arith.addf %200, %203 : vector<1x16xf32>
    %205 = math.rsqrt %204 : vector<1x16xf32>
    %206 = vector.broadcast %205 : vector<1x16xf32> to vector<2x16xf32>
    %207 = arith.mulf %202, %206 : vector<2x16xf32>
    %208 = tpu.concatenate %186, %207 in 0 : vector<2x16xf32>, vector<2x16xf32> -> vector<4x16xf32>
    %209 = vector.broadcast %11 : vector<1x16xf32> to vector<4x16xf32>
    %210 = arith.mulf %208, %209 : vector<4x16xf32>
    %211 = vector.broadcast %12 : vector<1x16xf32> to vector<4x16xf32>
    %212 = arith.addf %210, %211 : vector<4x16xf32>
    %cst_63 = arith.constant 0.000000e+00 : f32
    %213 = vector.broadcast %cst_63 : f32 to vector<4x16xf32>
    %214 = arith.maximumf %212, %213 : vector<4x16xf32>
    %cst_64 = arith.constant dense<0.000000e+00> : vector<4x64xf32>
    %215 = tpu.matmul %214, %4, %cst_64 {dimension_numbers = #tpu.dot_dimension_numbers<[1], [0], [0], [1], [0, 0, 1, 1], [], []>} : vector<4x16xf32>, vector<16x64xf32>, vector<4x64xf32> -> vector<4x64xf32>
    %216 = vector.broadcast %13 : vector<1x64xf32> to vector<4x64xf32>
    %217 = arith.addf %215, %216 : vector<4x64xf32>
    %218 = tpu.concatenate %164, %217 in 1 : vector<4x64xf32>, vector<4x64xf32> -> vector<4x128xf32>
    %c0_65 = arith.constant 0 : index
    %c0_66 = arith.constant 0 : index
    %219 = vector.load %arg2[%c0_65, %c0_66] : memref<4x128xf32, #tpu.memory_space<vmem>>, vector<4x128xf32>
    tpu.vector_store %arg2[%c0_65, %c0_66], %218 {strides = array<i32>} : memref<4x128xf32, #tpu.memory_space<vmem>>, vector<4x128xf32>,
    return
  }
}

</mosaic_0001>

<bundles_post_ra>
// kernel: simsiam_forward.1
= control target key start
LH: loop header
LB: loop body
LE: loop exit
PB: predicated region body
PF: predicated region fallthrough
CT: control target
= control target key end

     0   :  { %vm162_vm0 = vcmask 261120   ;;  %vm2580_vm9 = vcmask 1041409   ;;  %vm2582_vm10 = vcmask 1042434   ;;  %vm2584_vm11 = vcmask 1043459   ;;  %s6067_s1 = inlined_call_operand.vmem [shape: f32[184,128], index: 1, kind: input, shape index: {}]   ;;  %s6068_s0 = inlined_call_operand.vmem [shape: f32[1024,32], index: 0, kind: input, shape index: {}]   ;;  %s6069_s2 = inlined_call_operand.vmem [shape: f32[4,128], index: 2, kind: output, shape index: {}]  }
   0x1   :  { %v14_v0 = vld [vmem:[%s6067_s1 + $0x18] sm:$0xff]  ;;  %v13_v1 = vld [vmem:[%s6067_s1 + $0x10] sm:$0xff]  ;;  %v12_v2 = vld [vmem:[%s6067_s1 + $0x8] sm:$0xff]  ;;  %vm2608_vm12 = vcmask 254976  }
   0x2   :  { %559 = vmatpush.msra.mxu0 %v14_v0  ;;  %3060 = vmatpush.msra.mxu1 %v14_v0  ;;  %v11_v3 = vld [vmem:[%s6067_s1] sm:$0xff]  ;;  %v68_v5 = vld [vmem:[%s6068_s0 + $0x110] sm:$0xff]  ;;  %v35_v6 = vld [vmem:[%s6068_s0 + $0x8] sm:$0xff] }
   0x3   :  { %3061 = vmatpush.msra.mxu2 %v14_v0  ;;  %3062 = vmatpush.msra.mxu3 %v14_v0  ;;  %v34_v4 = vld [vmem:[%s6068_s0] sm:$0xff]  ;;  %v69_v7 = vld [vmem:[%s6068_s0 + $0x118] sm:$0xff]  ;;  %v99_v8 = vld [vmem:[%s6068_s0 + $0x208] sm:$0xff] }
   0x4   :  { %560 = vmatpush.msra.mxu0 %v13_v1  ;;  %3063 = vmatpush.msra.mxu1 %v13_v1  ;;  %v36_v9 = vld [vmem:[%s6068_s0 + $0x10] sm:$0xff]  ;;  %v70_v10 = vld [vmem:[%s6068_s0 + $0x120] sm:$0xff]  ;;  %v37_v12 = vld [vmem:[%s6068_s0 + $0x18] sm:$0xff] }
   0x5   :  { %3064 = vmatpush.msra.mxu2 %v13_v1  ;;  %3065 = vmatpush.msra.mxu3 %v13_v1  ;;  %v100_v11 = vld [vmem:[%s6068_s0 + $0x210] sm:$0xff]  ;;  %v71_v13 = vld [vmem:[%s6068_s0 + $0x128] sm:$0xff]  ;;  %v101_v14 = vld [vmem:[%s6068_s0 + $0x218] sm:$0xff] }
   0x6   :  { %561 = vmatpush.msra.mxu0 %v12_v2  ;;  %3066 = vmatpush.msra.mxu1 %v12_v2  ;;  %v38_v15 = vld [vmem:[%s6068_s0 + $0x20] sm:$0xff]  ;;  %v72_v16 = vld [vmem:[%s6068_s0 + $0x130] sm:$0xff]  ;;  %v39_v18 = vld [vmem:[%s6068_s0 + $0x28] sm:$0xff] }
   0x7   :  { %3067 = vmatpush.msra.mxu2 %v12_v2  ;;  %3068 = vmatpush.msra.mxu3 %v12_v2  ;;  %v102_v17 = vld [vmem:[%s6068_s0 + $0x220] sm:$0xff]  ;;  %v73_v19 = vld [vmem:[%s6068_s0 + $0x138] sm:$0xff]  ;;  %v103_v20 = vld [vmem:[%s6068_s0 + $0x228] sm:$0xff] }
   0x8   :  { %562 = vmatpush.msra.mxu0 %v11_v3  ;;  %3069 = vmatpush.msra.mxu1 %v11_v3  ;;  %v40_v21 = vld [vmem:[%s6068_s0 + $0x30] sm:$0xff]  ;;  %v74_v22 = vld [vmem:[%s6068_s0 + $0x140] sm:$0xff]  ;;  %v41_v24 = vld [vmem:[%s6068_s0 + $0x38] sm:$0xff] }
   0x9   :  { %2928 = vmatmul.msk.f32.vlgmr.msra.gmra.mxu0 %vm162_vm0, %v34_v4  ;;  %2962 = vmatmul.msk.f32.vlgmr.msra.gmra.mxu1 %vm162_vm0, %v68_v5  ;;  %v104_v23 = vld [vmem:[%s6068_s0 + $0x230] sm:$0xff]  ;;  %v75_v25 = vld [vmem:[%s6068_s0 + $0x148] sm:$0xff]  ;;  %v105_v26 = vld [vmem:[%s6068_s0 + $0x238] sm:$0xff] }
   0xa   :  { %3070 = vmatpush.msra.mxu2 %v11_v3  ;;  %3071 = vmatpush.msra.mxu3 %v11_v3  ;;  %v42_v27 = vld [vmem:[%s6068_s0 + $0x40] sm:$0xff]  ;;  %v76_v28 = vld [vmem:[%s6068_s0 + $0x150] sm:$0xff]  ;;  %v43_v30 = vld [vmem:[%s6068_s0 + $0x48] sm:$0xff] }
   0xb   :  { %2993 = vmatmul.msk.f32.vlgmr.msra.gmra.mxu2 %vm162_vm0, %v99_v8  ;;  %v106_v29 = vld [vmem:[%s6068_s0 + $0x240] sm:$0xff]  ;;  %v77_v31 = vld [vmem:[%s6068_s0 + $0x158] sm:$0xff]  ;;  %v107_v32 = vld [vmem:[%s6068_s0 + $0x248] sm:$0xff] }
   0xc   :  { %v44_v33 = vld [vmem:[%s6068_s0 + $0x50] sm:$0xff]  ;;  %v78_v34 = vld [vmem:[%s6068_s0 + $0x160] sm:$0xff]  ;;  %v45_v36 = vld [vmem:[%s6068_s0 + $0x58] sm:$0xff] }
   0xd   :  { %v108_v35 = vld [vmem:[%s6068_s0 + $0x250] sm:$0xff]  ;;  %v79_v37 = vld [vmem:[%s6068_s0 + $0x168] sm:$0xff]  ;;  %v109_v38 = vld [vmem:[%s6068_s0 + $0x258] sm:$0xff] }
   0xe   :  { %v46_v39 = vld [vmem:[%s6068_s0 + $0x60] sm:$0xff]  ;;  %v80_v40 = vld [vmem:[%s6068_s0 + $0x170] sm:$0xff]  ;;  %v47_v43 = vld [vmem:[%s6068_s0 + $0x68] sm:$0xff] }
   0xf   :  { %v132_v41 = vld [vmem:[%s6068_s0 + $0x310] sm:$0xff]  ;;  %v110_v42 = vld [vmem:[%s6068_s0 + $0x260] sm:$0xff]  ;;  %v81_v44 = vld [vmem:[%s6068_s0 + $0x178] sm:$0xff] }
  0x10   :  { %3026 = vmatmul.msk.f32.vlgmr.msra.gmra.mxu3 %vm162_vm0, %v132_v41  ;;  %v133_v45 = vld [vmem:[%s6068_s0 + $0x318] sm:$0xff]  ;;  %v111_v46 = vld [vmem:[%s6068_s0 + $0x268] sm:$0xff]  ;;  %v48_v47 = vld [vmem:[%s6068_s0 + $0x70] sm:$0xff] }
  0x11   :  { %2929 = vmatmul.msk.f32.gmra.mxu0 %vm162_vm0, %v35_v6  ;;  %2963 = vmatmul.msk.f32.gmra.mxu1 %vm162_vm0, %v69_v7  ;;  %v82_v48 = vld [vmem:[%s6068_s0 + $0x180] sm:$0xff]  ;;  %v112_v50 = vld [vmem:[%s6068_s0 + $0x270] sm:$0xff]  ;;  %v49_v51 = vld [vmem:[%s6068_s0 + $0x78] sm:$0xff] }
  0x12   :  { %v134_v49 = vld [vmem:[%s6068_s0 + $0x320] sm:$0xff]  ;;  %v83_v52 = vld [vmem:[%s6068_s0 + $0x188] sm:$0xff]  ;;  %v113_v54 = vld [vmem:[%s6068_s0 + $0x278] sm:$0xff] }
  0x13   :  { %2994 = vmatmul.msk.f32.gmra.mxu2 %vm162_vm0, %v100_v11  ;;  %v135_v53 = vld [vmem:[%s6068_s0 + $0x328] sm:$0xff]  ;;  %v50_v56 = vld [vmem:[%s6068_s0 + $0x80] sm:$0xff]  ;;  %v84_v57 = vld [vmem:[%s6068_s0 + $0x190] sm:$0xff] }
  0x14   :  { %v136_v58 = vld [vmem:[%s6068_s0 + $0x330] sm:$0xff]  ;;  %v114_v60 = vld [vmem:[%s6068_s0 + $0x280] sm:$0xff]  ;;  %v51_v62 = vld [vmem:[%s6068_s0 + $0x88] sm:$0xff] }
  0x15   :  { %v85_v63 = vld [vmem:[%s6068_s0 + $0x198] sm:$0xff]  ;;  %v115_v1 = vld [vmem:[%s6068_s0 + $0x288] sm:$0xff]  ;;  %v52_v4 = vld [vmem:[%s6068_s0 + $0x90] sm:$0xff] }
  0x16   :  { %v137_v0 = vld [vmem:[%s6068_s0 + $0x338] sm:$0xff]  ;;  %v86_v5 = vld [vmem:[%s6068_s0 + $0x1a0] sm:$0xff]  ;;  %v116_v7 = vld [vmem:[%s6068_s0 + $0x290] sm:$0xff] }
  0x17   :  { %v138_v6 = vld [vmem:[%s6068_s0 + $0x340] sm:$0xff]  ;;  %v87_v11 = vld [vmem:[%s6068_s0 + $0x1a8] sm:$0xff]  ;;  %v92_v41 = vld [vmem:[%s6068_s0 + $0x1d0] sm:$0xff] }
  0x18   :  { %3027 = vmatmul.msk.f32.gmra.mxu3 %vm162_vm0, %v133_v45 }
  0x19   :  { %2930 = vmatmul.msk.f32.gmra.mxu0 %vm162_vm0, %v36_v9  ;;  %2964 = vmatmul.msk.f32.gmra.mxu1 %vm162_vm0, %v70_v10  ;;  %v53_v10 = vld [vmem:[%s6068_s0 + $0x98] sm:$0xff] }
  0x1b   :  { %2995 = vmatmul.msk.f32.gmra.mxu2 %vm162_vm0, %v101_v14 }
  0x20   :  { %3028 = vmatmul.msk.f32.gmra.mxu3 %vm162_vm0, %v134_v49 }
  0x21   :  { %2931 = vmatmul.msk.f32.gmra.mxu0 %vm162_vm0, %v37_v12  ;;  %2965 = vmatmul.msk.f32.gmra.mxu1 %vm162_vm0, %v71_v13  ;;  %v139_v12 = vld [vmem:[%s6068_s0 + $0x348] sm:$0xff]  ;;  %v117_v13 = vld [vmem:[%s6068_s0 + $0x298] sm:$0xff] }
  0x23   :  { %2996 = vmatmul.msk.f32.gmra.mxu2 %vm162_vm0, %v102_v17  ;;  %v140_v17 = vld [vmem:[%s6068_s0 + $0x350] sm:$0xff] }
  0x28   :  { %3029 = vmatmul.msk.f32.gmra.mxu3 %vm162_vm0, %v135_v53  ;;  %v94_v53 = vld [vmem:[%s6068_s0 + $0x1e0] sm:$0xff] }
  0x29   :  { %2932 = vmatmul.msk.f32.gmra.mxu0 %vm162_vm0, %v38_v15  ;;  %2966 = vmatmul.msk.f32.gmra.mxu1 %vm162_vm0, %v72_v16  ;;  %v54_v15 = vld [vmem:[%s6068_s0 + $0xa0] sm:$0xff]  ;;  %v88_v16 = vld [vmem:[%s6068_s0 + $0x1b0] sm:$0xff] }
  0x2b   :  { %2997 = vmatmul.msk.f32.gmra.mxu2 %vm162_vm0, %v103_v20 }
  0x30   :  { %3030 = vmatmul.msk.f32.gmra.mxu3 %vm162_vm0, %v136_v58  ;;  %v124_v58 = vld [vmem:[%s6068_s0 + $0x2d0] sm:$0xff] }
  0x31   :  { %2933 = vmatmul.msk.f32.gmra.mxu0 %vm162_vm0, %v39_v18  ;;  %2967 = vmatmul.msk.f32.gmra.mxu1 %vm162_vm0, %v73_v19  ;;  %v118_v19 = vld [vmem:[%s6068_s0 + $0x2a0] sm:$0xff] }
  0x33   :  { %2998 = vmatmul.msk.f32.gmra.mxu2 %vm162_vm0, %v104_v23  ;;  %v141_v23 = vld [vmem:[%s6068_s0 + $0x358] sm:$0xff] }
  0x38   :  { %3031 = vmatmul.msk.f32.gmra.mxu3 %vm162_vm0, %v137_v0  ;;  %v147_v0 = vld [vmem:[%s6068_s0 + $0x388] sm:$0xff] }
  0x39   :  { %2934 = vmatmul.msk.f32.gmra.mxu0 %vm162_vm0, %v40_v21  ;;  %2968 = vmatmul.msk.f32.gmra.mxu1 %vm162_vm0, %v74_v22  ;;  %v55_v21 = vld [vmem:[%s6068_s0 + $0xa8] sm:$0xff]  ;;  %v89_v22 = vld [vmem:[%s6068_s0 + $0x1b8] sm:$0xff] }
  0x3b   :  { %2999 = vmatmul.msk.f32.gmra.mxu2 %vm162_vm0, %v105_v26 }
  0x40   :  { %3032 = vmatmul.msk.f32.gmra.mxu3 %vm162_vm0, %v138_v6 }
  0x41   :  { %2935 = vmatmul.msk.f32.gmra.mxu0 %vm162_vm0, %v41_v24  ;;  %2969 = vmatmul.msk.f32.gmra.mxu1 %vm162_vm0, %v75_v25  ;;  %v119_v24 = vld [vmem:[%s6068_s0 + $0x2a8] sm:$0xff] }
  0x43   :  { %3000 = vmatmul.msk.f32.gmra.mxu2 %vm162_vm0, %v106_v29  ;;  %v142_v29 = vld [vmem:[%s6068_s0 + $0x360] sm:$0xff] }
  0x48   :  { %3033 = vmatmul.msk.f32.gmra.mxu3 %vm162_vm0, %v139_v12  ;;  %v126_v12 = vld [vmem:[%s6068_s0 + $0x2e0] sm:$0xff] }
  0x49   :  { %2936 = vmatmul.msk.f32.gmra.mxu0 %vm162_vm0, %v42_v27  ;;  %2970 = vmatmul.msk.f32.gmra.mxu1 %vm162_vm0, %v76_v28  ;;  %v56_v27 = vld [vmem:[%s6068_s0 + $0xb0] sm:$0xff]  ;;  %v90_v28 = vld [vmem:[%s6068_s0 + $0x1c0] sm:$0xff] }
  0x4b   :  { %3001 = vmatmul.msk.f32.gmra.mxu2 %vm162_vm0, %v107_v32 }
  0x50   :  { %3034 = vmatmul.msk.f32.gmra.mxu3 %vm162_vm0, %v140_v17  ;;  %v63_v17 = vld [vmem:[%s6068_s0 + $0xe8] sm:$0xff] }
  0x51   :  { %2937 = vmatmul.msk.f32.gmra.mxu0 %vm162_vm0, %v43_v30  ;;  %2971 = vmatmul.msk.f32.gmra.mxu1 %vm162_vm0, %v77_v31  ;;  %v120_v30 = vld [vmem:[%s6068_s0 + $0x2b0] sm:$0xff] }
  0x53   :  { %3002 = vmatmul.msk.f32.gmra.mxu2 %vm162_vm0, %v108_v35  ;;  %v143_v35 = vld [vmem:[%s6068_s0 + $0x368] sm:$0xff] }
  0x58   :  { %3035 = vmatmul.msk.f32.gmra.mxu3 %vm162_vm0, %v141_v23 }
  0x59   :  { %2938 = vmatmul.msk.f32.gmra.mxu0 %vm162_vm0, %v44_v33  ;;  %2972 = vmatmul.msk.f32.gmra.mxu1 %vm162_vm0, %v78_v34  ;;  %v57_v33 = vld [vmem:[%s6068_s0 + $0xb8] sm:$0xff]  ;;  %v91_v34 = vld [vmem:[%s6068_s0 + $0x1c8] sm:$0xff] }
  0x5b   :  { %3003 = vmatmul.msk.f32.gmra.mxu2 %vm162_vm0, %v109_v38 }
  0x60   :  { %3036 = vmatmul.msk.f32.gmra.mxu3 %vm162_vm0, %v142_v29  ;;  %v150_v29 = vld [vmem:[%s6068_s0 + $0x3a0] sm:$0xff] }
  0x61   :  { %2939 = vmatmul.msk.f32.gmra.mxu0 %vm162_vm0, %v45_v36  ;;  %2973 = vmatmul.msk.f32.gmra.mxu1 %vm162_vm0, %v79_v37  ;;  %v121_v36 = vld [vmem:[%s6068_s0 + $0x2b8] sm:$0xff] }
  0x63   :  { %3004 = vmatmul.msk.f32.gmra.mxu2 %vm162_vm0, %v110_v42  ;;  %v144_v42 = vld [vmem:[%s6068_s0 + $0x370] sm:$0xff] }
  0x68   :  { %3037 = vmatmul.msk.f32.gmra.mxu3 %vm162_vm0, %v143_v35  ;;  %v65_v35 = vld [vmem:[%s6068_s0 + $0xf8] sm:$0xff] }
  0x69   :  { %2940 = vmatmul.msk.f32.gmra.mxu0 %vm162_vm0, %v46_v39  ;;  %2974 = vmatmul.msk.f32.gmra.mxu1 %vm162_vm0, %v80_v40  ;;  %v58_v40 = vld [vmem:[%s6068_s0 + $0xc0] sm:$0xff] }
  0x6b   :  { %3005 = vmatmul.msk.f32.gmra.mxu2 %vm162_vm0, %v111_v46  ;;  %v59_v46 = vld [vmem:[%s6068_s0 + $0xc8] sm:$0xff] }
  0x70   :  { %3038 = vmatmul.msk.f32.gmra.mxu3 %vm162_vm0, %v144_v42  ;;  %v129_v42 = vld [vmem:[%s6068_s0 + $0x2f8] sm:$0xff] }
  0x71   :  { %2941 = vmatmul.msk.f32.gmra.mxu0 %vm162_vm0, %v47_v43  ;;  %2975 = vmatmul.msk.f32.gmra.mxu1 %vm162_vm0, %v81_v44  ;;  %v122_v43 = vld [vmem:[%s6068_s0 + $0x2c0] sm:$0xff] }
  0x73   :  { %3006 = vmatmul.msk.f32.gmra.mxu2 %vm162_vm0, %v112_v50  ;;  %v123_v50 = vld [vmem:[%s6068_s0 + $0x2c8] sm:$0xff] }
  0x79   :  { %2942 = vmatmul.msk.f32.gmra.mxu0 %vm162_vm0, %v48_v47  ;;  %2976 = vmatmul.msk.f32.gmra.mxu1 %vm162_vm0, %v82_v48  ;;  %v93_v47 = vld [vmem:[%s6068_s0 + $0x1d8] sm:$0xff] }
  0x7a   :  { %v145_v48 = vld [vmem:[%s6068_s0 + $0x378] sm:$0xff] }
  0x7b   :  { %3007 = vmatmul.msk.f32.gmra.mxu2 %vm162_vm0, %v113_v54  ;;  %3039 = vmatmul.msk.f32.gmra.mxu3 %vm162_vm0, %v145_v48  ;;  %v146_v54 = vld [vmem:[%s6068_s0 + $0x380] sm:$0xff] }
  0x81   :  { %2943 = vmatmul.msk.f32.gmra.mxu0 %vm162_vm0, %v49_v51  ;;  %2977 = vmatmul.msk.f32.gmra.mxu1 %vm162_vm0, %v83_v52  ;;  %v60_v52 = vld [vmem:[%s6068_s0 + $0xd0] sm:$0xff] }
  0x83   :  { %3008 = vmatmul.msk.f32.gmra.mxu2 %vm162_vm0, %v114_v60  ;;  %3040 = vmatmul.msk.f32.gmra.mxu3 %vm162_vm0, %v146_v54  ;;  %v67_v54 = vld [vmem:[%s6068_s0 + $0x108] sm:$0xff] }
  0x86   :  { %v3334_v55 = vpop.f32.mrf.mxu0  ;;  %v3348_v59 = vpop.f32.mrf.mxu1 }
  0x87   :  { %6260 = vst [vmem:[#allocation2_spill] sm:$0xff] %v3334_v55 }
  0x89   :  { %2944 = vmatmul.msk.f32.gmra.mxu0 %vm162_vm0, %v50_v56  ;;  %2978 = vmatmul.msk.f32.gmra.mxu1 %vm162_vm0, %v84_v57 }
  0x8b   :  { %3009 = vmatmul.msk.f32.gmra.mxu2 %vm162_vm0, %v115_v1  ;;  %3041 = vmatmul.msk.f32.gmra.mxu3 %vm162_vm0, %v147_v0 }
  0x8e   :  { %v3354_v61 = vpop.f32.mrf.mxu0  ;;  %v3372_v2 = vpop.f32.mrf.mxu1 }
  0x8f   :  { %6261 = vst [vmem:[#allocation3_spill] sm:$0xff] %v3354_v61  ;;  %v3489_v37 = vpop.f32.mrf.mxu2 }
  0x90   :  { %6268 = vst [vmem:[#allocation10_spill] sm:$0xff] %v3489_v37 }
  0x91   :  { %2945 = vmatmul.msk.f32.gmra.mxu0 %vm162_vm0, %v51_v62  ;;  %2979 = vmatmul.msk.f32.gmra.mxu1 %vm162_vm0, %v85_v63  ;;  %v61_v62 = vld [vmem:[%s6068_s0 + $0xd8] sm:$0xff]  ;;  %v95_v63 = vld [vmem:[%s6068_s0 + $0x1e8] sm:$0xff] }
  0x93   :  { %3010 = vmatmul.msk.f32.gmra.mxu2 %vm162_vm0, %v116_v7  ;;  %v62_v7 = vld [vmem:[%s6068_s0 + $0xe0] sm:$0xff] }
  0x96   :  { %v3374_v3 = vpop.f32.mrf.mxu0  ;;  %v3392_v8 = vpop.f32.mrf.mxu1 }
  0x97   :  { %6262 = vst [vmem:[#allocation4_spill] sm:$0xff] %v3374_v3  ;;  %v3512_v44 = vpop.f32.mrf.mxu2 }
  0x98   :  { %6270 = vst [vmem:[#allocation12_spill] sm:$0xff] %v3512_v44 }
  0x99   :  { %2946 = vmatmul.msk.f32.gmra.mxu0 %vm162_vm0, %v52_v4  ;;  %2980 = vmatmul.msk.f32.gmra.mxu1 %vm162_vm0, %v86_v5  ;;  %v125_v4 = vld [vmem:[%s6068_s0 + $0x2d8] sm:$0xff] }
  0x9b   :  { %3011 = vmatmul.msk.f32.gmra.mxu2 %vm162_vm0, %v117_v13 }
  0x9e   :  { %v3394_v9 = vpop.f32.mrf.mxu0  ;;  %v3424_v18 = vpop.f32.mrf.mxu1 }
  0x9f   :  { %6263 = vst [vmem:[#allocation5_spill] sm:$0xff] %v3394_v9  ;;  %v3545_v56 = vpop.f32.mrf.mxu2 }
  0xa0   :  { %6273 = vst [vmem:[#allocation15_spill] sm:$0xff] %v3545_v56 }
  0xa1   :  { %2947 = vmatmul.msk.f32.gmra.mxu0 %vm162_vm0, %v53_v10  ;;  %2981 = vmatmul.msk.f32.gmra.mxu1 %vm162_vm0, %v87_v11  ;;  %v96_v10 = vld [vmem:[%s6068_s0 + $0x1f0] sm:$0xff] }
  0xa2   :  { %v148_v11 = vld [vmem:[%s6068_s0 + $0x390] sm:$0xff] }
  0xa3   :  { %3012 = vmatmul.msk.f32.gmra.mxu2 %vm162_vm0, %v118_v19  ;;  %3042 = vmatmul.msk.f32.gmra.mxu3 %vm162_vm0, %v148_v11  ;;  %v97_v19 = vld [vmem:[%s6068_s0 + $0x1f8] sm:$0xff] }
  0xa6   :  { %v3412_v14 = vpop.f32.mrf.mxu0  ;;  %v3449_v25 = vpop.f32.mrf.mxu1 }
  0xa7   :  { %6264 = vst [vmem:[#allocation6_spill] sm:$0xff] %v3412_v14  ;;  %v3568_v1 = vpop.f32.mrf.mxu2 }
  0xa8   :  { %6276 = vst [vmem:[#allocation18_spill] sm:$0xff] %v3568_v1 }
  0xa9   :  { %2948 = vmatmul.msk.f32.gmra.mxu0 %vm162_vm0, %v54_v15  ;;  %2982 = vmatmul.msk.f32.gmra.mxu1 %vm162_vm0, %v88_v16 }
  0xab   :  { %3013 = vmatmul.msk.f32.gmra.mxu2 %vm162_vm0, %v119_v24 }
  0xae   :  { %v3432_v20 = vpop.f32.mrf.mxu0  ;;  %v3470_v31 = vpop.f32.mrf.mxu1 }
  0xaf   :  { %6265 = vst [vmem:[#allocation7_spill] sm:$0xff] %v3432_v20  ;;  %v3595_v13 = vpop.f32.mrf.mxu2 }
  0xb0   :  { %6279 = vst [vmem:[#allocation21_spill] sm:$0xff] %v3595_v13 }
  0xb1   :  { %2949 = vmatmul.msk.f32.gmra.mxu0 %vm162_vm0, %v55_v21  ;;  %2983 = vmatmul.msk.f32.gmra.mxu1 %vm162_vm0, %v89_v22  ;;  %v149_v21 = vld [vmem:[%s6068_s0 + $0x398] sm:$0xff]  ;;  %v127_v22 = vld [vmem:[%s6068_s0 + $0x2e8] sm:$0xff] }
  0xb2   :  { %3043 = vmatmul.msk.f32.gmra.mxu3 %vm162_vm0, %v149_v21  ;;  %v156_v21 = vld [vmem:[%s6068_s0 + $0x3d0] sm:$0xff] }
  0xb3   :  { %3014 = vmatmul.msk.f32.gmra.mxu2 %vm162_vm0, %v120_v30 }
  0xb6   :  { %v3452_v26 = vpop.f32.mrf.mxu0  ;;  %v3492_v38 = vpop.f32.mrf.mxu1 }
  0xb7   :  { %6266 = vst [vmem:[#allocation8_spill] sm:$0xff] %v3452_v26  ;;  %v3618_v23 = vpop.f32.mrf.mxu2 }
  0xb8   :  { %6282 = vst [vmem:[#allocation24_spill] sm:$0xff] %v3618_v23 }
  0xb9   :  { %2950 = vmatmul.msk.f32.gmra.mxu0 %vm162_vm0, %v56_v27  ;;  %2984 = vmatmul.msk.f32.gmra.mxu1 %vm162_vm0, %v90_v28  ;;  %v64_v27 = vld [vmem:[%s6068_s0 + $0xf0] sm:$0xff]  ;;  %v98_v28 = vld [vmem:[%s6068_s0 + $0x200] sm:$0xff] }
  0xba   :  { %3044 = vmatmul.msk.f32.gmra.mxu3 %vm162_vm0, %v150_v29  ;;  %v157_v29 = vld [vmem:[%s6068_s0 + $0x3d8] sm:$0xff] }
  0xbb   :  { %3015 = vmatmul.msk.f32.gmra.mxu2 %vm162_vm0, %v121_v36  ;;  %v151_v36 = vld [vmem:[%s6068_s0 + $0x3a8] sm:$0xff] }
  0xbe   :  { %v3472_v32 = vpop.f32.mrf.mxu0  ;;  %v3526_v49 = vpop.f32.mrf.mxu1 }
  0xbf   :  { %6267 = vst [vmem:[#allocation9_spill] sm:$0xff] %v3472_v32 }
  0xc1   :  { %2951 = vmatmul.msk.f32.gmra.mxu0 %vm162_vm0, %v57_v33  ;;  %2985 = vmatmul.msk.f32.gmra.mxu1 %vm162_vm0, %v91_v34  ;;  %v128_v33 = vld [vmem:[%s6068_s0 + $0x2f0] sm:$0xff] }
  0xc2   :  { %3045 = vmatmul.msk.f32.gmra.mxu3 %vm162_vm0, %v151_v36 }
  0xc3   :  { %3016 = vmatmul.msk.f32.gmra.mxu2 %vm162_vm0, %v122_v43 }
  0xc6   :  { %v3494_v39 = vpop.f32.mrf.mxu0  ;;  %v3550_v57 = vpop.f32.mrf.mxu1 }
  0xc7   :  { %6269 = vst [vmem:[#allocation11_spill] sm:$0xff] %v3494_v39 }
  0xc8   :  { %6274 = vst [vmem:[#allocation16_spill] sm:$0xff] %v3550_v57 }
  0xc9   :  { %2952 = vmatmul.msk.f32.gmra.mxu0 %vm162_vm0, %v58_v40  ;;  %2986 = vmatmul.msk.f32.gmra.mxu1 %vm162_vm0, %v92_v41  ;;  %v3648_v40 = vpop.f32.mrf.mxu2 }
  0xca   :  { %6286 = vst [vmem:[#allocation28_spill] sm:$0xff] %v3648_v40 }
  0xcb   :  { %3017 = vmatmul.msk.f32.gmra.mxu2 %vm162_vm0, %v123_v50  ;;  %v130_v50 = vld [vmem:[%s6068_s0 + $0x300] sm:$0xff] }
  0xce   :  { %v3514_v45 = vpop.f32.mrf.mxu0  ;;  %v3576_v5 = vpop.f32.mrf.mxu1 }
  0xcf   :  { %6271 = vst [vmem:[#allocation13_spill] sm:$0xff] %v3514_v45 }
  0xd0   :  { %6277 = vst [vmem:[#allocation19_spill] sm:$0xff] %v3576_v5 }
  0xd1   :  { %2953 = vmatmul.msk.f32.gmra.mxu0 %vm162_vm0, %v59_v46  ;;  %2987 = vmatmul.msk.f32.gmra.mxu1 %vm162_vm0, %v93_v47  ;;  %v66_v46 = vld [vmem:[%s6068_s0 + $0x100] sm:$0xff]  ;;  %v152_v47 = vld [vmem:[%s6068_s0 + $0x3b0] sm:$0xff]  ;;  %v3667_v48 = vpop.f32.mrf.mxu2 }
  0xd2   :  { %3046 = vmatmul.msk.f32.gmra.mxu3 %vm162_vm0, %v152_v47  ;;  %6289 = vst [vmem:[#allocation31_spill] sm:$0xff] %v3667_v48 }
  0xd3   :  { %3018 = vmatmul.msk.f32.gmra.mxu2 %vm162_vm0, %v124_v58  ;;  %v153_v58 = vld [vmem:[%s6068_s0 + $0x3b8] sm:$0xff] }
  0xd6   :  { %v3534_v51 = vpop.f32.mrf.mxu0  ;;  %v3598_v15 = vpop.f32.mrf.mxu1 }
  0xd7   :  { %6272 = vst [vmem:[#allocation14_spill] sm:$0xff] %v3534_v51 }
  0xd8   :  { %6280 = vst [vmem:[#allocation22_spill] sm:$0xff] %v3598_v15 }
  0xd9   :  { %2954 = vmatmul.msk.f32.gmra.mxu0 %vm162_vm0, %v60_v52  ;;  %2988 = vmatmul.msk.f32.gmra.mxu1 %vm162_vm0, %v94_v53 }
  0xda   :  { %3047 = vmatmul.msk.f32.gmra.mxu3 %vm162_vm0, %v153_v58  ;;  %v1089_v58 = vmul.f32 %v3334_v55, %v3334_v55 }
  0xdb   :  { %3019 = vmatmul.msk.f32.gmra.mxu2 %vm162_vm0, %v125_v4 }
  0xde   :  { %v3556_v60 = vpop.f32.mrf.mxu0  ;;  %v3632_v30 = vpop.f32.mrf.mxu1 }
  0xdf   :  { %6275 = vst [vmem:[#allocation17_spill] sm:$0xff] %v3556_v60 }
  0xe0   :  { %6284 = vst [vmem:[#allocation26_spill] sm:$0xff] %v3632_v30 }
  0xe1   :  { %2955 = vmatmul.msk.f32.gmra.mxu0 %vm162_vm0, %v61_v62  ;;  %2989 = vmatmul.msk.f32.gmra.mxu1 %vm162_vm0, %v95_v63  ;;  %v131_v62 = vld [vmem:[%s6068_s0 + $0x308] sm:$0xff]  ;;  %v3689_v63 = vpop.f32.mrf.mxu2 }
  0xe2   :  { %6292 = vst [vmem:[#allocation34_spill] sm:$0xff] %v3689_v63 }
  0xe3   :  { %3020 = vmatmul.msk.f32.gmra.mxu2 %vm162_vm0, %v126_v12  ;;  %v155_v12 = vld [vmem:[%s6068_s0 + $0x3c8] sm:$0xff] }
  0xe6   :  { %v3578_v6 = vpop.f32.mrf.mxu0  ;;  %v3652_v41 = vpop.f32.mrf.mxu1 }
  0xe7   :  { %6278 = vst [vmem:[#allocation20_spill] sm:$0xff] %v3578_v6 }
  0xe8   :  { %6287 = vst [vmem:[#allocation29_spill] sm:$0xff] %v3652_v41 }
  0xe9   :  { %2956 = vmatmul.msk.f32.gmra.mxu0 %vm162_vm0, %v62_v7  ;;  %2990 = vmatmul.msk.f32.gmra.mxu1 %vm162_vm0, %v96_v10  ;;  %v154_v7 = vld [vmem:[%s6068_s0 + $0x3c0] sm:$0xff]  ;;  %v3700_v10 = vpop.f32.mrf.mxu3 }
  0xea   :  { %3048 = vmatmul.msk.f32.gmra.mxu3 %vm162_vm0, %v154_v7  ;;  %6295 = vst [vmem:[#allocation37_spill] sm:$0xff] %v3700_v10  ;;  %v948_v7 = vsel %vm162_vm0, %v3334_v55, 0.0  ;;  %v951_v55 = vsel %vm162_vm0, %v3374_v3, 0.0 }
  0xeb   :  { %3021 = vmatmul.msk.f32.gmra.mxu2 %vm162_vm0, %v127_v22 }
  0xee   :  { %v3600_v16 = vpop.f32.mrf.mxu0  ;;  %v3674_v52 = vpop.f32.mrf.mxu1 }
  0xef   :  { %6281 = vst [vmem:[#allocation23_spill] sm:$0xff] %v3600_v16 }
  0xf0   :  { %6290 = vst [vmem:[#allocation32_spill] sm:$0xff] %v3674_v52 }
  0xf1   :  { %2957 = vmatmul.msk.f32.gmra.mxu0 %vm162_vm0, %v63_v17  ;;  %2991 = vmatmul.msk.f32.gmra.mxu1 %vm162_vm0, %v97_v19  ;;  %v3715_v22 = vpop.f32.mrf.mxu3 }
  0xf2   :  { %3049 = vmatmul.msk.f32.gmra.mxu3 %vm162_vm0, %v155_v12  ;;  %6299 = vst [vmem:[#allocation41_spill] sm:$0xff] %v3715_v22  ;;  %v949_v12 = vsel %vm162_vm0, %v3354_v61, 0.0  ;;  %v160_v22 = vld [vmem:[%s6068_s0 + $0x3f0] sm:$0xff] }
  0xf3   :  { %3022 = vmatmul.msk.f32.gmra.mxu2 %vm162_vm0, %v128_v33 }
  0xf6   :  { %v3620_v24 = vpop.f32.mrf.mxu0  ;;  %v3692_v0 = vpop.f32.mrf.mxu1 }
  0xf7   :  { %6283 = vst [vmem:[#allocation25_spill] sm:$0xff] %v3620_v24 }
  0xf8   :  { %6293 = vst [vmem:[#allocation35_spill] sm:$0xff] %v3692_v0 }
  0xf9   :  { %2958 = vmatmul.msk.f32.gmra.mxu0 %vm162_vm0, %v64_v27  ;;  %2992 = vmatmul.msk.f32.gmra.mxu1 %vm162_vm0, %v98_v28  ;;  %v3726_v33 = vpop.f32.mrf.mxu3 }
  0xfa   :  { %3050 = vmatmul.msk.f32.gmra.mxu3 %vm162_vm0, %v156_v21  ;;  %6301 = vst [vmem:[#allocation43_spill] sm:$0xff] %v3726_v33  ;;  %v1153_v21 = vsel %vm162_vm0, %v1089_v58, 0.0 }
  0xfb   :  { %3023 = vmatmul.msk.f32.gmra.mxu2 %vm162_vm0, %v129_v42  ;;  %v158_v42 = vld [vmem:[%s6068_s0 + $0x3e0] sm:$0xff] }
  0xfe   :  { %v3640_v34 = vpop.f32.mrf.mxu0  ;;  %v3708_v17 = vpop.f32.mrf.mxu1 }
  0xff   :  { %6285 = vst [vmem:[#allocation27_spill] sm:$0xff] %v3640_v34 }
 0x100   :  { %6297 = vst [vmem:[#allocation39_spill] sm:$0xff] %v3708_v17 }
 0x101   :  { %2959 = vmatmul.msk.f32.gmra.mxu0 %vm162_vm0, %v65_v35 }
 0x102   :  { %3051 = vmatmul.msk.f32.gmra.mxu3 %vm162_vm0, %v157_v29 }
 0x103   :  { %3024 = vmatmul.msk.f32.gmra.mxu2 %vm162_vm0, %v130_v50 }
 0x106   :  { %v3658_v43 = vpop.f32.mrf.mxu0  ;;  %v3718_v27 = vpop.f32.mrf.mxu1 }
 0x107   :  { %6288 = vst [vmem:[#allocation30_spill] sm:$0xff] %v3658_v43 }
 0x109   :  { %2960 = vmatmul.msk.f32.gmra.mxu0 %vm162_vm0, %v66_v46  ;;  %v3736_v46 = vpop.f32.mrf.mxu3 }
 0x10a   :  { %3052 = vmatmul.msk.f32.gmra.mxu3 %vm162_vm0, %v158_v42  ;;  %6303 = vst [vmem:[#allocation45_spill] sm:$0xff] %v3736_v46  ;;  %v1091_v42 = vmul.f32 %v3374_v3, %v3374_v3  ;;  %v950_v46 = vadd.f32 %v949_v12, %v948_v7  ;;  %v953_v12 = vsel %vm162_vm0, %v3394_v9, 0.0  ;;  %v1093_v3 = vmul.f32 %v3412_v14, %v3412_v14 }
 0x10b   :  { %3025 = vmatmul.msk.f32.gmra.mxu2 %vm162_vm0, %v131_v62  ;;  %v1090_v62 = vmul.f32 %v3354_v61, %v3354_v61 }
 0x10c   :  { %v952_v7 = vadd.f32 %v951_v55, %v950_v46 }
 0x10d   :  { %v1154_v29 = vsel %vm162_vm0, %v1090_v62, 0.0  ;;  %v1156_v62 = vsel %vm162_vm0, %v1091_v42, 0.0  ;;  %v1160_v42 = vsel %vm162_vm0, %v1093_v3, 0.0  ;;  %v959_v3 = vsel %vm162_vm0, %v3452_v26, 0.0 }
 0x10e   :  { %v3676_v53 = vpop.f32.mrf.mxu0  ;;  %v3728_v35 = vpop.f32.mrf.mxu1  ;;  %v1155_v58 = vadd.f32 %v1154_v29, %v1153_v21  ;;  %v954_v48 = vadd.f32 %v953_v12, %v952_v7  ;;  %v161_v21 = vld [vmem:[%s6068_s0 + $0x3f8] sm:$0xff]  ;;  %v955_v29 = vsel %vm162_vm0, %v3412_v14, 0.0  ;;  %v957_v7 = vsel %vm162_vm0, %v3432_v20, 0.0 }
 0x10f   :  { %6291 = vst [vmem:[#allocation33_spill] sm:$0xff] %v3676_v53  ;;  %v3795_v12 = vpop.f32.mrf.mxu2 }
 0x110   :  { %v1157_v10 = vadd.f32 %v1156_v62, %v1155_v58  ;;  %v956_v58 = vadd.f32 %v955_v29, %v954_v48  ;;  %6311 = vst [vmem:[#allocation53_spill] sm:$0xff] %v3795_v12  ;;  %v1096_v48 = vmul.f32 %v3472_v32, %v3472_v32 }
 0x111   :  { %2961 = vmatmul.msk.f32.gmra.mxu0 %vm162_vm0, %v67_v54  ;;  %v159_v54 = vld [vmem:[%s6068_s0 + $0x3e8] sm:$0xff] }
 0x112   :  { %3053 = vmatmul.msk.f32.gmra.mxu3 %vm162_vm0, %v159_v54  ;;  %v3758_v54 = vpop.f32.mrf.mxu3 }
 0x113   :  { %6305 = vst [vmem:[#allocation47_spill] sm:$0xff] %v3758_v54  ;;  %v1092_v54 = vmul.f32 %v3394_v9, %v3394_v9 }
 0x115   :  { %v1158_v63 = vsel %vm162_vm0, %v1092_v54, 0.0  ;;  %v1094_v54 = vmul.f32 %v3432_v20, %v3432_v20 }
 0x116   :  { %v3694_v4 = vpop.f32.mrf.mxu0  ;;  %v3738_v47 = vpop.f32.mrf.mxu1  ;;  %v1159_v46 = vadd.f32 %v1158_v63, %v1157_v10  ;;  %v958_v63 = vadd.f32 %v957_v7, %v956_v58  ;;  %v1166_v58 = vsel %vm162_vm0, %v1096_v48, 0.0  ;;  %v963_v7 = vsel %vm162_vm0, %v3494_v39, 0.0 }
 0x117   :  { %6294 = vst [vmem:[#allocation36_spill] sm:$0xff] %v3694_v4  ;;  %v1162_v14 = vsel %vm162_vm0, %v1094_v54, 0.0 }
 0x118   :  { %v1161_v9 = vadd.f32 %v1160_v42, %v1159_v46  ;;  %v961_v46 = vsel %vm162_vm0, %v3472_v32, 0.0  ;;  %v1097_v42 = vmul.f32 %v3494_v39, %v3494_v39  ;;  %v960_v54 = vadd.f32 %v959_v3, %v958_v63  ;;  %v3823_v3 = vpop.f32.mrf.mxu2 }
 0x119   :  { %v1099_v63 = vmul.f32 %v3534_v51, %v3534_v51  ;;  %6313 = vst [vmem:[#allocation55_spill] sm:$0xff] %v3823_v3 }
 0x11a   :  { %3054 = vmatmul.msk.f32.gmra.mxu3 %vm162_vm0, %v160_v22  ;;  %v3785_v55 = vpop.f32.mrf.mxu3  ;;  %v1163_v29 = vadd.f32 %v1162_v14, %v1161_v9  ;;  %v962_v12 = vadd.f32 %v961_v46, %v960_v54  ;;  %v1168_v14 = vsel %vm162_vm0, %v1097_v42, 0.0 }
 0x11b   :  { %6309 = vst [vmem:[#allocation51_spill] sm:$0xff] %v3785_v55  ;;  %v1172_v54 = vsel %vm162_vm0, %v1099_v63, 0.0  ;;  %v973_v63 = vsel %vm162_vm0, %v3600_v16, 0.0 }
 0x11c   :  { %v964_v32 = vadd.f32 %v963_v7, %v962_v12  ;;  %v971_v7 = vsel %vm162_vm0, %v3578_v6, 0.0 }
 0x11e   :  { %v3702_v11 = vpop.f32.mrf.mxu0  ;;  %v3768_v61 = vpop.f32.mrf.mxu1 }
 0x11f   :  { %6296 = vst [vmem:[#allocation38_spill] sm:$0xff] %v3702_v11 }
 0x120   :  { %6307 = vst [vmem:[#allocation49_spill] sm:$0xff] %v3768_v61 }
 0x122   :  { %3055 = vmatmul.msk.f32.gmra.mxu3 %vm162_vm0, %v161_v21  ;;  %v1095_v21 = vmul.f32 %v3452_v26, %v3452_v26  ;;  %v1098_v26 = vmul.f32 %v3514_v45, %v3514_v45 }
 0x124   :  { %v1164_v20 = vsel %vm162_vm0, %v1095_v21, 0.0  ;;  %v965_v21 = vsel %vm162_vm0, %v3514_v45, 0.0  ;;  %v1170_v40 = vsel %vm162_vm0, %v1098_v26, 0.0  ;;  %v969_v45 = vsel %vm162_vm0, %v3556_v60, 0.0 }
 0x125   :  { %v1165_v55 = vadd.f32 %v1164_v20, %v1163_v29  ;;  %v967_v20 = vsel %vm162_vm0, %v3534_v51, 0.0  ;;  %v1100_v29 = vmul.f32 %v3556_v60, %v3556_v60  ;;  %v966_v42 = vadd.f32 %v965_v21, %v964_v32 }
 0x126   :  { %v3710_v19 = vpop.f32.mrf.mxu0  ;;  %v3791_v62 = vpop.f32.mrf.mxu1  ;;  %v1102_v51 = vmul.f32 %v3600_v16, %v3600_v16 }
 0x127   :  { %6298 = vst [vmem:[#allocation40_spill] sm:$0xff] %v3710_v19  ;;  %v1167_v48 = vadd.f32 %v1166_v58, %v1165_v55  ;;  %v1101_v55 = vmul.f32 %v3578_v6, %v3578_v6  ;;  %v968_v12 = vadd.f32 %v967_v20, %v966_v42  ;;  %v1174_v26 = vsel %vm162_vm0, %v1100_v29, 0.0 }
 0x128   :  { %6310 = vst [vmem:[#allocation52_spill] sm:$0xff] %v3791_v62  ;;  %v1178_v42 = vsel %vm162_vm0, %v1102_v51, 0.0  ;;  %v1106_v6 = vmul.f32 %v3676_v53, %v3676_v53 }
 0x129   :  { %v1169_v46 = vadd.f32 %v1168_v14, %v1167_v48  ;;  %v970_v32 = vadd.f32 %v969_v45, %v968_v12  ;;  %v1176_v21 = vsel %vm162_vm0, %v1101_v55, 0.0  ;;  %v1103_v48 = vmul.f32 %v3620_v24, %v3620_v24  ;;  %v3856_v55 = vpop.f32.mrf.mxu2 }
 0x12a   :  { %v1104_v45 = vmul.f32 %v3640_v34, %v3640_v34  ;;  %6317 = vst [vmem:[#allocation59_spill] sm:$0xff] %v3856_v55 }
 0x12b   :  { %v1171_v58 = vadd.f32 %v1170_v40, %v1169_v46  ;;  %v972_v40 = vadd.f32 %v971_v7, %v970_v32  ;;  %v1180_v16 = vsel %vm162_vm0, %v1103_v48, 0.0  ;;  %v1105_v7 = vmul.f32 %v3658_v43, %v3658_v43 }
 0x12c   :  { %v1182_v32 = vsel %vm162_vm0, %v1104_v45, 0.0  ;;  %v1186_v45 = vsel %vm162_vm0, %v1106_v6, 0.0  ;;  %v1109_v6 = vmul.f32 %v3710_v19, %v3710_v19 }
 0x12d   :  { %v1173_v14 = vadd.f32 %v1172_v54, %v1171_v58  ;;  %v975_v54 = vsel %vm162_vm0, %v3620_v24, 0.0  ;;  %v974_v58 = vadd.f32 %v973_v63, %v972_v40  ;;  %v979_v24 = vsel %vm162_vm0, %v3658_v43, 0.0 }
 0x12e   :  { %v3720_v28 = vpop.f32.mrf.mxu0  ;;  %v3816_v9 = vpop.f32.mrf.mxu1  ;;  %v1184_v48 = vsel %vm162_vm0, %v1105_v7, 0.0  ;;  %v1107_v40 = vmul.f32 %v3694_v4, %v3694_v4 }
 0x12f   :  { %6300 = vst [vmem:[#allocation42_spill] sm:$0xff] %v3720_v28  ;;  %v1175_v20 = vadd.f32 %v1174_v26, %v1173_v14  ;;  %v977_v26 = vsel %vm162_vm0, %v3640_v34, 0.0  ;;  %v976_v51 = vadd.f32 %v975_v54, %v974_v58  ;;  %v983_v58 = vsel %vm162_vm0, %v3694_v4, 0.0 }
 0x131   :  { %v1177_v12 = vadd.f32 %v1176_v21, %v1175_v20  ;;  %v978_v63 = vadd.f32 %v977_v26, %v976_v51  ;;  %v981_v20 = vsel %vm162_vm0, %v3676_v53, 0.0  ;;  %v1188_v51 = vsel %vm162_vm0, %v1107_v40, 0.0  ;;  %v3883_v53 = vpop.f32.mrf.mxu2 }
 0x132   :  { %6320 = vst [vmem:[#allocation62_spill] sm:$0xff] %v3883_v53 }
 0x133   :  { %v1179_v14 = vadd.f32 %v1178_v42, %v1177_v12  ;;  %v980_v54 = vadd.f32 %v979_v24, %v978_v63  ;;  %v985_v24 = vsel %vm162_vm0, %v3702_v11, 0.0 }
 0x135   :  { %v1181_v21 = vadd.f32 %v1180_v16, %v1179_v14  ;;  %v1108_v16 = vmul.f32 %v3702_v11, %v3702_v11  ;;  %v982_v7 = vadd.f32 %v981_v20, %v980_v54  ;;  %v1110_v20 = vmul.f32 %v3720_v28, %v3720_v28 }
 0x136   :  { %v3730_v36 = vpop.f32.mrf.mxu0  ;;  %v3847_v46 = vpop.f32.mrf.mxu1  ;;  %v1192_v54 = vsel %vm162_vm0, %v1109_v6, 0.0  ;;  %v989_v11 = vsel %vm162_vm0, %v3720_v28, 0.0  ;;  %v1130_v28 = vmul.f32 %v3526_v49, %v3526_v49 }
 0x137   :  { %6302 = vst [vmem:[#allocation44_spill] sm:$0xff] %v3730_v36  ;;  %v1183_v42 = vadd.f32 %v1182_v32, %v1181_v21  ;;  %v984_v21 = vadd.f32 %v983_v58, %v982_v7  ;;  %v1190_v63 = vsel %vm162_vm0, %v1108_v16, 0.0  ;;  %v1111_v4 = vmul.f32 %v3730_v36, %v3730_v36 }
 0x138   :  { %6315 = vst [vmem:[#allocation57_spill] sm:$0xff] %v3847_v46  ;;  %v1194_v16 = vsel %vm162_vm0, %v1110_v20, 0.0  ;;  %v991_v7 = vsel %vm162_vm0, %v3730_v36, 0.0 }
 0x139   :  { %v1185_v26 = vadd.f32 %v1184_v48, %v1183_v42  ;;  %v987_v48 = vsel %vm162_vm0, %v3710_v19, 0.0  ;;  %v986_v40 = vadd.f32 %v985_v24, %v984_v21  ;;  %v3913_v20 = vpop.f32.mrf.mxu2 }
 0x13a   :  { %6323 = vst [vmem:[#allocation65_spill] sm:$0xff] %v3913_v20 }
 0x13b   :  { %v1187_v32 = vadd.f32 %v1186_v45, %v1185_v26  ;;  %v988_v58 = vadd.f32 %v987_v48, %v986_v40 }
 0x13d   :  { %v1189_v42 = vadd.f32 %v1188_v51, %v1187_v32  ;;  %v990_v6 = vadd.f32 %v989_v11, %v988_v58  ;;  %v1196_v32 = vsel %vm162_vm0, %v1111_v4, 0.0 }
 0x13e   :  { %v3740_v50 = vpop.f32.mrf.mxu0  ;;  %v3880_v14 = vpop.f32.mrf.mxu1 }
 0x13f   :  { %6304 = vst [vmem:[#allocation46_spill] sm:$0xff] %v3740_v50  ;;  %v1191_v45 = vadd.f32 %v1190_v63, %v1189_v42  ;;  %v1112_v51 = vmul.f32 %v3740_v50, %v3740_v50  ;;  %v993_v21 = vsel %vm162_vm0, %v3740_v50, 0.0  ;;  %v992_v42 = vadd.f32 %v991_v7, %v990_v6 }
 0x140   :  { %6319 = vst [vmem:[#allocation61_spill] sm:$0xff] %v3880_v14 }
 0x141   :  { %v1193_v24 = vadd.f32 %v1192_v54, %v1191_v45  ;;  %v1198_v36 = vsel %vm162_vm0, %v1112_v51, 0.0  ;;  %v994_v45 = vadd.f32 %v993_v21, %v992_v42 }
 0x143   :  { %v1195_v48 = vadd.f32 %v1194_v16, %v1193_v24 }
 0x145   :  { %v1197_v11 = vadd.f32 %v1196_v32, %v1195_v48 }
 0x146   :  { %v3760_v33 = vpop.f32.mrf.mxu0  ;;  %v3911_v40 = vpop.f32.mrf.mxu1 }
 0x147   :  { %6306 = vst [vmem:[#allocation48_spill] sm:$0xff] %v3760_v33  ;;  %v1113_v63 = vmul.f32 %v3760_v33, %v3760_v33  ;;  %v995_v54 = vsel %vm162_vm0, %v3760_v33, 0.0  ;;  %v1199_v24 = vadd.f32 %v1198_v36, %v1197_v11 }
 0x148   :  { %6322 = vst [vmem:[#allocation64_spill] sm:$0xff] %v3911_v40  ;;  %v996_v6 = vadd.f32 %v995_v54, %v994_v45 }
 0x149   :  { %v1200_v58 = vsel %vm162_vm0, %v1113_v63, 0.0 }
 0x14a   :  { %v1201_v21 = vadd.f32 %v1200_v58, %v1199_v24  ;;  %v3944_v24 = vpop.f32.mrf.mxu2 }
 0x14b   :  { %6326 = vst [vmem:[#allocation68_spill] sm:$0xff] %v3944_v24 }
 0x14e   :  { %v3778_v22 = vpop.f32.mrf.mxu0  ;;  %v3942_v58 = vpop.f32.mrf.mxu1 }
 0x14f   :  { %6308 = vst [vmem:[#allocation50_spill] sm:$0xff] %v3778_v22  ;;  %v1114_v4 = vmul.f32 %v3778_v22, %v3778_v22  ;;  %v997_v16 = vsel %vm162_vm0, %v3778_v22, 0.0  ;;  %v1025_v22 = vsel %vm162_vm0, %v3470_v31, 0.0 }
 0x150   :  { %v998_v63 = vadd.f32 %v997_v16, %v996_v6  ;;  %6325 = vst [vmem:[#allocation67_spill] sm:$0xff] %v3942_v58 }
 0x151   :  { %v1202_v51 = vsel %vm162_vm0, %v1114_v4, 0.0 }
 0x152   :  { %v1203_v54 = vadd.f32 %v1202_v51, %v1201_v21 }
 0x156   :  { %v3800_v10 = vpop.f32.mrf.mxu0 }
 0x157   :  { %6312 = vst [vmem:[#allocation54_spill] sm:$0xff] %v3800_v10  ;;  %v1115_v7 = vmul.f32 %v3800_v10, %v3800_v10  ;;  %v999_v33 = vsel %vm162_vm0, %v3800_v10, 0.0 }
 0x158   :  { %v1000_v11 = vadd.f32 %v999_v33, %v998_v63 }
 0x159   :  { %v1204_v48 = vsel %vm162_vm0, %v1115_v7, 0.0 }
 0x15a   :  { %v1205_v16 = vadd.f32 %v1204_v48, %v1203_v54 }
 0x15e   :  { %v3825_v39 = vpop.f32.mrf.mxu0 }
 0x15f   :  { %6314 = vst [vmem:[#allocation56_spill] sm:$0xff] %v3825_v39  ;;  %v1116_v32 = vmul.f32 %v3825_v39, %v3825_v39  ;;  %v1001_v42 = vsel %vm162_vm0, %v3825_v39, 0.0  ;;  %v1021_v39 = vsel %vm162_vm0, %v3424_v18, 0.0 }
 0x160   :  { %v1002_v7 = vadd.f32 %v1001_v42, %v1000_v11 }
 0x161   :  { %v1206_v4 = vsel %vm162_vm0, %v1116_v32, 0.0 }
 0x162   :  { %v1207_v32 = vadd.f32 %v1206_v4, %v1205_v16 }
 0x166   :  { %v3849_v29 = vpop.f32.mrf.mxu0 }
 0x167   :  { %6316 = vst [vmem:[#allocation58_spill] sm:$0xff] %v3849_v29  ;;  %v1117_v36 = vmul.f32 %v3849_v29, %v3849_v29  ;;  %v1003_v45 = vsel %vm162_vm0, %v3849_v29, 0.0 }
 0x168   :  { %v1004_v21 = vadd.f32 %v1003_v45, %v1002_v7 }
 0x169   :  { %v1208_v6 = vsel %vm162_vm0, %v1117_v36, 0.0 }
 0x16a   :  { %v1209_v54 = vadd.f32 %v1208_v6, %v1207_v32 }
 0x16e   :  { %v3873_v12 = vpop.f32.mrf.mxu0 }
 0x16f   :  { %6318 = vst [vmem:[#allocation60_spill] sm:$0xff] %v3873_v12  ;;  %v1118_v10 = vmul.f32 %v3873_v12, %v3873_v12  ;;  %v1005_v51 = vsel %vm162_vm0, %v3873_v12, 0.0 }
 0x170   :  { %v1006_v36 = vadd.f32 %v1005_v51, %v1004_v21  ;;  %v3970_v21 = vpop.f32.mrf.mxu1 }
 0x171   :  { %v1210_v29 = vsel %vm162_vm0, %v1118_v10, 0.0  ;;  %v18_v10 = vld [vmem:[%s6067_s1 + $0x38] sm:$0xff]  ;;  %6327 = vst [vmem:[#allocation69_spill] sm:$0xff] %v3970_v21 }
 0x172   :  { %v1211_v45 = vadd.f32 %v1210_v29, %v1209_v54  ;;  %2600 = vmatpush.msrb.mxu1 %v18_v10  ;;  %v3976_v54 = vpop.f32.mrf.mxu2 }
 0x173   :  { %6328 = vst [vmem:[#allocation70_spill] sm:$0xff] %v3976_v54 }
 0x176   :  { %v3899_v26 = vpop.f32.mrf.mxu0 }
 0x177   :  { %6321 = vst [vmem:[#allocation63_spill] sm:$0xff] %v3899_v26  ;;  %v1119_v33 = vmul.f32 %v3899_v26, %v3899_v26  ;;  %v1007_v48 = vsel %vm162_vm0, %v3899_v26, 0.0 }
 0x178   :  { %v1008_v16 = vadd.f32 %v1007_v48, %v1006_v36  ;;  %v1123_v48 = vmul.f32 %v3348_v59, %v3348_v59 }
 0x179   :  { %v1212_v11 = vsel %vm162_vm0, %v1119_v33, 0.0 }
 0x17a   :  { %v1213_v51 = vadd.f32 %v1212_v11, %v1211_v45  ;;  %v1015_v45 = vsel %vm162_vm0, %v3348_v59, 0.0 }
 0x17e   :  { %v3925_v50 = vpop.f32.mrf.mxu0 }
 0x17f   :  { %6324 = vst [vmem:[#allocation66_spill] sm:$0xff] %v3925_v50  ;;  %v1120_v42 = vmul.f32 %v3925_v50, %v3925_v50  ;;  %v1009_v12 = vsel %vm162_vm0, %v3925_v50, 0.0 }
 0x180   :  { %v1010_v33 = vadd.f32 %v1009_v12, %v1008_v16 }
 0x181   :  { %v1214_v7 = vsel %vm162_vm0, %v1120_v42, 0.0 }
 0x182   :  { %v1215_v50 = vadd.f32 %v1214_v7, %v1213_v51  ;;  %v1125_v51 = vmul.f32 %v3392_v8, %v3392_v8 }
 0x186   :  { %v3951_v63 = vpop.f32.mrf.mxu0 }
 0x187   :  { %v1121_v4 = vmul.f32 %v3951_v63, %v3951_v63  ;;  %v1011_v6 = vsel %vm162_vm0, %v3951_v63, 0.0 }
 0x188   :  { %v1012_v26 = vadd.f32 %v1011_v6, %v1010_v33  ;;  %v1017_v6 = vsel %vm162_vm0, %v3372_v2, 0.0  ;;  %v1220_v33 = vsel %vm162_vm0, %v1123_v48, 0.0  ;;  %v1127_v48 = vmul.f32 %v3449_v25, %v3449_v25 }
 0x189   :  { %v1216_v32 = vsel %vm162_vm0, %v1121_v4, 0.0  ;;  %v1124_v4 = vmul.f32 %v3372_v2, %v3372_v2 }
 0x18a   :  { %v1217_v12 = vadd.f32 %v1216_v32, %v1215_v50 }
 0x18b   :  { %v1222_v32 = vsel %vm162_vm0, %v1124_v4, 0.0 }
 0x18e   :  { %v3972_v29 = vpop.f32.mrf.mxu0 }
 0x18f   :  { %v1013_v42 = vsel %vm162_vm0, %v3972_v29, 0.0  ;;  %v1122_v36 = vmul.f32 %v3972_v29, %v3972_v29 }
 0x190   :  { %v1014_v11 = vadd.f32 %v1013_v42, %v1012_v26  ;;  %v1019_v42 = vsel %vm162_vm0, %v3392_v8, 0.0 }
 0x191   :  { %v1218_v16 = vsel %vm162_vm0, %v1122_v36, 0.0  ;;  %v1126_v36 = vmul.f32 %v3424_v18, %v3424_v18 }
 0x192   :  { %v1016_v10 = vadd.f32 %v1015_v45, %v1014_v11  ;;  %v1219_v7 = vadd.f32 %v1218_v16, %v1217_v12  ;;  %v3997_v11 = vpop.f32.mrf.mxu3  ;;  %v1224_v16 = vsel %vm162_vm0, %v1125_v51, 0.0 }
 0x193   :  { %6329 = vst [vmem:[#allocation71_spill] sm:$0xff] %v3997_v11 }
 0x194   :  { %v1018_v50 = vadd.f32 %v1017_v6, %v1016_v10  ;;  %v1221_v26 = vadd.f32 %v1220_v33, %v1219_v7  ;;  %v4004_v10 = vpop.f32.mrf.mxu1  ;;  %v1226_v6 = vsel %vm162_vm0, %v1126_v36, 0.0  ;;  %v1023_v33 = vsel %vm162_vm0, %v3449_v25, 0.0 }
 0x195   :  { %6330 = vst [vmem:[#allocation72_spill] sm:$0xff] %v4004_v10 }
 0x196   :  { %v1020_v12 = vadd.f32 %v1019_v42, %v1018_v50  ;;  %v1223_v45 = vadd.f32 %v1222_v32, %v1221_v26  ;;  %v1128_v50 = vmul.f32 %v3470_v31, %v3470_v31  ;;  %v4011_v26 = vpop.f32.mrf.mxu2  ;;  %v1228_v42 = vsel %vm162_vm0, %v1127_v48, 0.0 }
 0x197   :  { %6331 = vst [vmem:[#allocation73_spill] sm:$0xff] %v4011_v26 }
 0x198   :  { %v1022_v4 = vadd.f32 %v1021_v39, %v1020_v12  ;;  %v1225_v7 = vadd.f32 %v1224_v16, %v1223_v45  ;;  %v1129_v39 = vmul.f32 %v3492_v38, %v3492_v38  ;;  %v1230_v45 = vsel %vm162_vm0, %v1128_v50, 0.0 }
 0x199   :  { %v1027_v16 = vsel %vm162_vm0, %v3492_v38, 0.0  ;;  %v1031_v50 = vsel %vm162_vm0, %v3550_v57, 0.0 }
 0x19a   :  { %v1024_v51 = vadd.f32 %v1023_v33, %v1022_v4  ;;  %v1227_v32 = vadd.f32 %v1226_v6, %v1225_v7  ;;  %v1232_v48 = vsel %vm162_vm0, %v1129_v39, 0.0  ;;  %v1029_v6 = vsel %vm162_vm0, %v3526_v49, 0.0  ;;  %v4026_v33 = vpop.f32.mrf.mxu3 }
 0x19b   :  { %6332 = vst [vmem:[#allocation74_spill] sm:$0xff] %v4026_v33 }
 0x19c   :  { %v1026_v12 = vadd.f32 %v1025_v22, %v1024_v51  ;;  %v1229_v36 = vadd.f32 %v1228_v42, %v1227_v32  ;;  %v1234_v51 = vsel %vm162_vm0, %v1130_v28, 0.0  ;;  %v1131_v32 = vmul.f32 %v3550_v57, %v3550_v57  ;;  %v4033_v42 = vpop.f32.mrf.mxu1 }
 0x19d   :  { %6333 = vst [vmem:[#allocation75_spill] sm:$0xff] %v4033_v42  ;;  %v1132_v28 = vmul.f32 %v3576_v5, %v3576_v5 }
 0x19e   :  { %v1028_v4 = vadd.f32 %v1027_v16, %v1026_v12  ;;  %v1231_v7 = vadd.f32 %v1230_v45, %v1229_v36  ;;  %v4035_v39 = vpop.f32.mrf.mxu2  ;;  %v1236_v45 = vsel %vm162_vm0, %v1131_v32, 0.0  ;;  %v1033_v16 = vsel %vm162_vm0, %v3576_v5, 0.0 }
 0x19f   :  { %6334 = vst [vmem:[#allocation76_spill] sm:$0xff] %v4035_v39 }
 0x1a0   :  { %v1030_v19 = vadd.f32 %v1029_v6, %v1028_v4  ;;  %v1233_v22 = vadd.f32 %v1232_v48, %v1231_v7  ;;  %v1238_v48 = vsel %vm162_vm0, %v1132_v28, 0.0  ;;  %v1035_v6 = vsel %vm162_vm0, %v3598_v15, 0.0 }
 0x1a2   :  { %v1032_v12 = vadd.f32 %v1031_v50, %v1030_v19  ;;  %v1235_v36 = vadd.f32 %v1234_v51, %v1233_v22  ;;  %v1133_v19 = vmul.f32 %v3598_v15, %v3598_v15  ;;  %v4047_v22 = vpop.f32.mrf.mxu3 }
 0x1a3   :  { %6335 = vst [vmem:[#allocation77_spill] sm:$0xff] %v4047_v22 }
 0x1a4   :  { %v1034_v4 = vadd.f32 %v1033_v16, %v1032_v12  ;;  %v1237_v7 = vadd.f32 %v1236_v45, %v1235_v36  ;;  %v4049_v32 = vpop.f32.mrf.mxu1  ;;  %v1240_v43 = vsel %vm162_vm0, %v1133_v19, 0.0  ;;  %v1037_v12 = vsel %vm162_vm0, %v3632_v30, 0.0 }
 0x1a5   :  { %6336 = vst [vmem:[#allocation78_spill] sm:$0xff] %v4049_v32  ;;  %v1134_v36 = vmul.f32 %v3632_v30, %v3632_v30  ;;  %v1041_v30 = vsel %vm162_vm0, %v3674_v52, 0.0 }
 0x1a6   :  { %v1036_v51 = vadd.f32 %v1035_v6, %v1034_v4  ;;  %v1239_v50 = vadd.f32 %v1238_v48, %v1237_v7  ;;  %v4056_v45 = vpop.f32.mrf.mxu2  ;;  %v1039_v4 = vsel %vm162_vm0, %v3652_v41, 0.0  ;;  %v1135_v7 = vmul.f32 %v3652_v41, %v3652_v41 }
 0x1a7   :  { %6337 = vst [vmem:[#allocation79_spill] sm:$0xff] %v4056_v45  ;;  %v1242_v34 = vsel %vm162_vm0, %v1134_v36, 0.0 }
 0x1a8   :  { %v1038_v16 = vadd.f32 %v1037_v12, %v1036_v51  ;;  %v1241_v28 = vadd.f32 %v1240_v43, %v1239_v50  ;;  %v1244_v60 = vsel %vm162_vm0, %v1135_v7, 0.0  ;;  %v1136_v43 = vmul.f32 %v3674_v52, %v3674_v52 }
 0x1a9   :  { %v1564_v52 = vmul.f32 %v3489_v37, %v3489_v37 }
 0x1aa   :  { %v1040_v48 = vadd.f32 %v1039_v4, %v1038_v16  ;;  %v1243_v6 = vadd.f32 %v1242_v34, %v1241_v28  ;;  %v4063_v19 = vpop.f32.mrf.mxu3  ;;  %v1246_v41 = vsel %vm162_vm0, %v1136_v43, 0.0  ;;  %v1043_v34 = vsel %vm162_vm0, %v3692_v0, 0.0 }
 0x1ab   :  { %6338 = vst [vmem:[#allocation80_spill] sm:$0xff] %v4063_v19  ;;  %v1137_v16 = vmul.f32 %v3692_v0, %v3692_v0 }
 0x1ac   :  { %v4070_v51 = vpop.f32.mrf.mxu1  ;;  %v1042_v50 = vadd.f32 %v1041_v30, %v1040_v48  ;;  %v1245_v12 = vadd.f32 %v1244_v60, %v1243_v6  ;;  %v1045_v48 = vsel %vm162_vm0, %v3708_v17, 0.0  ;;  %v1138_v6 = vmul.f32 %v3708_v17, %v3708_v17 }
 0x1ad   :  { %6339 = vst [vmem:[#allocation81_spill] sm:$0xff] %v4070_v51  ;;  %v1563_v28 = vmul.f32 %v4070_v51, %v4070_v51  ;;  %v1429_v60 = vsel %vm162_vm0, %v4070_v51, 0.0  ;;  %v1248_v30 = vsel %vm162_vm0, %v1137_v16, 0.0  ;;  %v1628_v16 = vsel %vm162_vm0, %v1564_v52, 0.0 }
 0x1ae   :  { %v4072_v36 = vpop.f32.mrf.mxu2  ;;  %v1044_v4 = vadd.f32 %v1043_v34, %v1042_v50  ;;  %v1247_v7 = vadd.f32 %v1246_v41, %v1245_v12  ;;  %v1430_v41 = vsel %vm162_vm0, %v3489_v37, 0.0  ;;  %v1565_v34 = vmul.f32 %v3512_v44, %v3512_v44 }
 0x1af   :  { %6340 = vst [vmem:[#allocation82_spill] sm:$0xff] %v4072_v36  ;;  %v1627_v0 = vsel %vm162_vm0, %v1563_v28, 0.0  ;;  %v1431_v51 = vadd.f32 %v1430_v41, %v1429_v60  ;;  %v1250_v5 = vsel %vm162_vm0, %v1138_v6, 0.0  ;;  %v1047_v17 = vsel %vm162_vm0, %v3718_v27, 0.0 }
 0x1b0   :  { %v1046_v50 = vadd.f32 %v1045_v48, %v1044_v4  ;;  %v1249_v12 = vadd.f32 %v1248_v30, %v1247_v7  ;;  %v1629_v15 = vadd.f32 %v1628_v16, %v1627_v0  ;;  %v1139_v28 = vmul.f32 %v3718_v27, %v3718_v27 }
 0x1b1   :  { %v1432_v4 = vsel %vm162_vm0, %v3512_v44, 0.0  ;;  %v1630_v60 = vsel %vm162_vm0, %v1565_v34, 0.0  ;;  %v1566_v52 = vmul.f32 %v3545_v56, %v3545_v56  ;;  %v1049_v41 = vsel %vm162_vm0, %v3728_v35, 0.0 }
 0x1b2   :  { %v4090_v43 = vpop.f32.mrf.mxu3  ;;  %v1048_v7 = vadd.f32 %v1047_v17, %v1046_v50  ;;  %v1251_v30 = vadd.f32 %v1250_v5, %v1249_v12  ;;  %v1433_v0 = vadd.f32 %v1432_v4, %v1431_v51  ;;  %v1631_v48 = vadd.f32 %v1630_v60, %v1629_v15 }
 0x1b3   :  { %6341 = vst [vmem:[#allocation83_spill] sm:$0xff] %v4090_v43  ;;  %v1252_v6 = vsel %vm162_vm0, %v1139_v28, 0.0  ;;  %v1140_v16 = vmul.f32 %v3728_v35, %v3728_v35  ;;  %v1434_v44 = vsel %vm162_vm0, %v3545_v56, 0.0  ;;  %v1632_v50 = vsel %vm162_vm0, %v1566_v52, 0.0 }
 0x1b4   :  { %v1050_v17 = vadd.f32 %v1049_v41, %v1048_v7  ;;  %v1253_v5 = vadd.f32 %v1252_v6, %v1251_v30  ;;  %v1567_v12 = vmul.f32 %v3568_v1, %v3568_v1  ;;  %v1435_v15 = vadd.f32 %v1434_v44, %v1433_v0 }
 0x1b5   :  { %v1633_v34 = vadd.f32 %v1632_v50, %v1631_v48  ;;  %v1254_v28 = vsel %vm162_vm0, %v1140_v16, 0.0  ;;  %v1051_v4 = vsel %vm162_vm0, %v3738_v47, 0.0  ;;  %v1141_v60 = vmul.f32 %v3738_v47, %v3738_v47 }
 0x1b6   :  { %v4103_v57 = vpop.f32.mrf.mxu2  ;;  %v1436_v7 = vsel %vm162_vm0, %v3568_v1, 0.0  ;;  %v1052_v30 = vadd.f32 %v1051_v4, %v1050_v17  ;;  %v1255_v52 = vadd.f32 %v1254_v28, %v1253_v5  ;;  %v1634_v6 = vsel %vm162_vm0, %v1567_v12, 0.0 }
 0x1b7   :  { %6342 = vst [vmem:[#allocation84_spill] sm:$0xff] %v4103_v57  ;;  %v1568_v41 = vmul.f32 %v3595_v13, %v3595_v13  ;;  %v1437_v0 = vadd.f32 %v1436_v7, %v1435_v15  ;;  %v1635_v48 = vadd.f32 %v1634_v6, %v1633_v34  ;;  %v1256_v16 = vsel %vm162_vm0, %v1141_v60, 0.0 }
 0x1b8   :  { %v1053_v50 = vsel %vm162_vm0, %v3768_v61, 0.0  ;;  %v1142_v56 = vmul.f32 %v3768_v61, %v3768_v61  ;;  %v1438_v17 = vsel %vm162_vm0, %v3595_v13, 0.0  ;;  %v1257_v12 = vadd.f32 %v1256_v16, %v1255_v52 }
 0x1b9   :  { %v1054_v5 = vadd.f32 %v1053_v50, %v1052_v30  ;;  %v1636_v28 = vsel %vm162_vm0, %v1568_v41, 0.0  ;;  %v1569_v4 = vmul.f32 %v3618_v23, %v3618_v23  ;;  %v1439_v15 = vadd.f32 %v1438_v17, %v1437_v0  ;;  %v6346_v50 = vld [vmem:[#allocation28_spill] sm:$0xff] }
 0x1ba   :  { %v4120_v51 = vpop.f32.mrf.mxu3  ;;  %v1637_v34 = vadd.f32 %v1636_v28, %v1635_v48  ;;  %v1258_v60 = vsel %vm162_vm0, %v1142_v56, 0.0  ;;  %v1055_v7 = vsel %vm162_vm0, %v3791_v62, 0.0  ;;  %v1143_v6 = vmul.f32 %v3791_v62, %v3791_v62 }
 0x1bb   :  { %6343 = vst [vmem:[#allocation85_spill] sm:$0xff] %v4120_v51  ;;  %v1440_v30 = vsel %vm162_vm0, %v3618_v23, 0.0  ;;  %v1056_v52 = vadd.f32 %v1055_v7, %v1054_v5  ;;  %v1259_v41 = vadd.f32 %v1258_v60, %v1257_v12  ;;  %v1638_v16 = vsel %vm162_vm0, %v1569_v4, 0.0  ;;  %v6348_v7 = vld [vmem:[#allocation31_spill] sm:$0xff] }
 0x1bc   :  { %v1570_v0 = vmul.f32 %v6346_v50, %v6346_v50  ;;  %v1441_v48 = vadd.f32 %v1440_v30, %v1439_v15  ;;  %v1639_v56 = vadd.f32 %v1638_v16, %v1637_v34  ;;  %v1260_v17 = vsel %vm162_vm0, %v1143_v6, 0.0 }
 0x1bd   :  { %v1057_v28 = vsel %vm162_vm0, %v3816_v9, 0.0  ;;  %v1144_v13 = vmul.f32 %v3816_v9, %v3816_v9  ;;  %v1442_v5 = vsel %vm162_vm0, %v6346_v50, 0.0  ;;  %v1261_v4 = vadd.f32 %v1260_v17, %v1259_v41  ;;  %v6349_v17 = vld [vmem:[#allocation34_spill] sm:$0xff] }
 0x1be   :  { %v4132_v44 = vpop.f32.mrf.mxu2  ;;  %v1058_v12 = vadd.f32 %v1057_v28, %v1056_v52  ;;  %v1640_v60 = vsel %vm162_vm0, %v1570_v0, 0.0  ;;  %v1571_v15 = vmul.f32 %v6348_v7, %v6348_v7  ;;  %v1443_v34 = vadd.f32 %v1442_v5, %v1441_v48 }
 0x1bf   :  { %6344 = vst [vmem:[#allocation86_spill] sm:$0xff] %v4132_v44  ;;  %v1641_v6 = vadd.f32 %v1640_v60, %v1639_v56  ;;  %v1262_v30 = vsel %vm162_vm0, %v1144_v13, 0.0  ;;  %v1059_v16 = vsel %vm162_vm0, %v3847_v46, 0.0  ;;  %v1145_v23 = vmul.f32 %v3847_v46, %v3847_v46 }
 0x1c0   :  { %v1444_v50 = vsel %vm162_vm0, %v6348_v7, 0.0  ;;  %v1060_v52 = vadd.f32 %v1059_v16, %v1058_v12  ;;  %v1263_v41 = vadd.f32 %v1262_v30, %v1261_v4  ;;  %v1642_v0 = vsel %vm162_vm0, %v1571_v15, 0.0  ;;  %v6351_v16 = vld [vmem:[#allocation53_spill] sm:$0xff] }
 0x1c1   :  { %v1572_v28 = vmul.f32 %v6349_v17, %v6349_v17  ;;  %v1445_v56 = vadd.f32 %v1444_v50, %v1443_v34  ;;  %v1643_v13 = vadd.f32 %v1642_v0, %v1641_v6  ;;  %v1264_v5 = vsel %vm162_vm0, %v1145_v23, 0.0 }
 0x1c2   :  { %v4149_v1 = vpop.f32.mrf.mxu3  ;;  %v1061_v60 = vsel %vm162_vm0, %v3880_v14, 0.0  ;;  %v1146_v46 = vmul.f32 %v3880_v14, %v3880_v14  ;;  %v1446_v12 = vsel %vm162_vm0, %v6349_v17, 0.0  ;;  %v1265_v15 = vadd.f32 %v1264_v5, %v1263_v41 }
 0x1c3   :  { %6345 = vst [vmem:[#allocation87_spill] sm:$0xff] %v4149_v1  ;;  %v1062_v4 = vadd.f32 %v1061_v60, %v1060_v52  ;;  %v1644_v30 = vsel %vm162_vm0, %v1572_v28, 0.0  ;;  %v1573_v7 = vmul.f32 %v6351_v16, %v6351_v16  ;;  %v1447_v34 = vadd.f32 %v1446_v12, %v1445_v56 }
 0x1c4   :  { %v1645_v23 = vadd.f32 %v1644_v30, %v1643_v13  ;;  %v1266_v6 = vsel %vm162_vm0, %v1146_v46, 0.0  ;;  %v1063_v0 = vsel %vm162_vm0, %v3911_v40, 0.0  ;;  %v1147_v14 = vmul.f32 %v3911_v40, %v3911_v40 }
 0x1c5   :  { %v1448_v52 = vsel %vm162_vm0, %v6351_v16, 0.0  ;;  %v1064_v41 = vadd.f32 %v1063_v0, %v1062_v4  ;;  %v1267_v28 = vadd.f32 %v1266_v6, %v1265_v15  ;;  %v1646_v5 = vsel %vm162_vm0, %v1573_v7, 0.0 }
 0x1c6   :  { %v4161_v37 = vpop.f32.mrf.mxu2  ;;  %v1574_v60 = vmul.f32 %v3823_v3, %v3823_v3  ;;  %v1449_v56 = vadd.f32 %v1448_v52, %v1447_v34  ;;  %v1647_v13 = vadd.f32 %v1646_v5, %v1645_v23  ;;  %v1268_v46 = vsel %vm162_vm0, %v1147_v14, 0.0 }
 0x1c7   :  { %6347 = vst [vmem:[#allocation88_spill] sm:$0xff] %v4161_v37  ;;  %v1065_v12 = vsel %vm162_vm0, %v3942_v58, 0.0  ;;  %v1148_v30 = vmul.f32 %v3942_v58, %v3942_v58  ;;  %v1450_v4 = vsel %vm162_vm0, %v3823_v3, 0.0  ;;  %v1269_v7 = vadd.f32 %v1268_v46, %v1267_v28 }
 0x1c8   :  { %v1066_v15 = vadd.f32 %v1065_v12, %v1064_v41  ;;  %v1648_v6 = vsel %vm162_vm0, %v1574_v60, 0.0  ;;  %v1575_v34 = vmul.f32 %v3856_v55, %v3856_v55  ;;  %v1451_v23 = vadd.f32 %v1450_v4, %v1449_v56 }
 0x1c9   :  { %v1649_v14 = vadd.f32 %v1648_v6, %v1647_v13  ;;  %v1270_v0 = vsel %vm162_vm0, %v1148_v30, 0.0  ;;  %v1067_v52 = vsel %vm162_vm0, %v3970_v21, 0.0  ;;  %v1149_v5 = vmul.f32 %v3970_v21, %v3970_v21 }
 0x1ca   :  { %v4178_v48 = vpop.f32.mrf.mxu3  ;;  %v1452_v41 = vsel %vm162_vm0, %v3856_v55, 0.0  ;;  %v1068_v28 = vadd.f32 %v1067_v52, %v1066_v15  ;;  %v1271_v60 = vadd.f32 %v1270_v0, %v1269_v7  ;;  %v1650_v46 = vsel %vm162_vm0, %v1575_v34, 0.0 }
 0x1cb   :  { %6350 = vst [vmem:[#allocation89_spill] sm:$0xff] %v4178_v48  ;;  %v1576_v56 = vmul.f32 %v3883_v53, %v3883_v53  ;;  %v1453_v13 = vadd.f32 %v1452_v41, %v1451_v23  ;;  %v1651_v12 = vadd.f32 %v1650_v46, %v1649_v14  ;;  %v1272_v30 = vsel %vm162_vm0, %v1149_v5, 0.0 }
 0x1cc   :  { %v1069_v4 = vsel %vm162_vm0, %v4004_v10, 0.0  ;;  %v1150_v6 = vmul.f32 %v4004_v10, %v4004_v10  ;;  %v1454_v55 = vsel %vm162_vm0, %v3883_v53, 0.0  ;;  %v1273_v7 = vadd.f32 %v1272_v30, %v1271_v60 }
 0x1cd   :  { %v1070_v15 = vadd.f32 %v1069_v4, %v1068_v28  ;;  %v1652_v34 = vsel %vm162_vm0, %v1576_v56, 0.0  ;;  %v1577_v0 = vmul.f32 %v3913_v20, %v3913_v20  ;;  %v1455_v23 = vadd.f32 %v1454_v55, %v1453_v13 }
 0x1ce   :  { %v4190_v50 = vpop.f32.mrf.mxu2  ;;  %v1653_v52 = vadd.f32 %v1652_v34, %v1651_v12  ;;  %v1274_v5 = vsel %vm162_vm0, %v1150_v6, 0.0  ;;  %v1071_v41 = vsel %vm162_vm0, %v4033_v42, 0.0  ;;  %v1151_v46 = vmul.f32 %v4033_v42, %v4033_v42 }
 0x1cf   :  { %6352 = vst [vmem:[#allocation90_spill] sm:$0xff] %v4190_v50  ;;  %v1456_v28 = vsel %vm162_vm0, %v3913_v20, 0.0  ;;  %v1072_v60 = vadd.f32 %v1071_v41, %v1070_v15  ;;  %v1275_v56 = vadd.f32 %v1274_v5, %v1273_v7  ;;  %v1654_v30 = vsel %vm162_vm0, %v1577_v0, 0.0 }
 0x1d0   :  { %v1578_v55 = vmul.f32 %v3944_v24, %v3944_v24  ;;  %v1457_v13 = vadd.f32 %v1456_v28, %v1455_v23  ;;  %v1655_v4 = vadd.f32 %v1654_v30, %v1653_v52  ;;  %v1276_v6 = vsel %vm162_vm0, %v1151_v46, 0.0 }
 0x1d1   :  { %v1073_v34 = vsel %vm162_vm0, %v4049_v32, 0.0  ;;  %v1152_v53 = vmul.f32 %v4049_v32, %v4049_v32  ;;  %v1458_v15 = vsel %vm162_vm0, %v3944_v24, 0.0  ;;  %v3099_v0 = vmov 512.0  }
 0x1d2   :  { %v4207_v17 = vpop.f32.mrf.mxu3  ;;  %v1074_v7 = vadd.f32 %v1073_v34, %v1072_v60  ;;  %3076 = vrcp.f32 %v3099_v0  ;;  %v1277_v5 = vadd.f32 %v1276_v6, %v1275_v56  ;;  %v1656_v23 = vsel %vm162_vm0, %v1578_v55, 0.0 }
 0x1d3   :  { %6353 = vst [vmem:[#allocation91_spill] sm:$0xff] %v4207_v17  ;;  %v1579_v52 = vmul.f32 %v3976_v54, %v3976_v54  ;;  %v1459_v41 = vadd.f32 %v1458_v15, %v1457_v13  ;;  %v1657_v46 = vadd.f32 %v1656_v23, %v1655_v4  ;;  %v1278_v28 = vsel %vm162_vm0, %v1152_v53, 0.0 }
 0x1d4   :  { %v1460_v20 = vsel %vm162_vm0, %v3976_v54, 0.0  ;;  %v1075_v3 = vrot.slane %v1074_v7, 4  ;;  %v1279_v24 = vadd.f32 %v1278_v28, %v1277_v5  ;;  %v1580_v56 = vmul.f32 %v4011_v26, %v4011_v26 }
 0x1d5   :  { %v1658_v60 = vsel %vm162_vm0, %v1579_v52, 0.0  ;;  %v1461_v55 = vadd.f32 %v1460_v20, %v1459_v41  ;;  %v1462_v53 = vsel %vm162_vm0, %v4011_v26, 0.0  ;;  %v1581_v5 = vmul.f32 %v4035_v39, %v4035_v39 }
 0x1d6   :  { %v4219_v16 = vpop.f32.mrf.mxu2  ;;  %v1659_v34 = vadd.f32 %v1658_v60, %v1657_v46  ;;  %v1076_v13 = vadd.f32 %v1075_v3, %v1074_v7  ;;  %v1280_v4 = vrot.slane %v1279_v24, 4  ;;  %v1660_v15 = vsel %vm162_vm0, %v1580_v56, 0.0 }
 0x1d7   :  { %6354 = vst [vmem:[#allocation92_spill] sm:$0xff] %v4219_v16  ;;  %v1463_v23 = vadd.f32 %v1462_v53, %v1461_v55  ;;  %v1464_v20 = vsel %vm162_vm0, %v4035_v39, 0.0  ;;  %v1662_v60 = vsel %vm162_vm0, %v1581_v5, 0.0  ;;  %v1582_v26 = vmul.f32 %v4056_v45, %v4056_v45 }
 0x1d8   :  { %v3077_v6 = vpop.eup %3076  ;;  %v1661_v28 = vadd.f32 %v1660_v15, %v1659_v34  ;;  %v1077_v41 = vrot.slane %v1076_v13, 2  ;;  %v1281_v46 = vadd.f32 %v1280_v4, %v1279_v24  ;;  %v1466_v55 = vsel %vm162_vm0, %v4056_v45, 0.0 }
 0x1d9   :  { %v1082_v52 = vmul.f32 512.0, %v3077_v6  ;;  %v1465_v3 = vadd.f32 %v1464_v20, %v1463_v23  ;;  %v1664_v15 = vsel %vm162_vm0, %v1582_v26, 0.0  ;;  %v1583_v24 = vmul.f32 %v4072_v36, %v4072_v36 }
 0x1da   :  { %v4236_v14 = vpop.f32.mrf.mxu3  ;;  %v1663_v56 = vadd.f32 %v1662_v60, %v1661_v28  ;;  %v1078_v53 = vadd.f32 %v1077_v41, %v1076_v13  ;;  %v1282_v34 = vrot.slane %v1281_v46, 2  ;;  %v1468_v23 = vsel %vm162_vm0, %v4072_v36, 0.0 }
 0x1db   :  { %6355 = vst [vmem:[#allocation93_spill] sm:$0xff] %v4236_v14  ;;  %v1083_v7 = vsub.f32 1.0, %v1082_v52  ;;  %v1467_v4 = vadd.f32 %v1466_v55, %v1465_v3  ;;  %v1666_v20 = vsel %vm162_vm0, %v1583_v24, 0.0  ;;  %v1584_v13 = vmul.f32 %v4103_v57, %v4103_v57 }
 0x1dc   :  { %v1665_v32 = vadd.f32 %v1664_v15, %v1663_v56  ;;  %v1079_v52 = vrot.slane %v1078_v53, 1  ;;  %v1283_v28 = vadd.f32 %v1282_v34, %v1281_v46  ;;  %vm1086_vm1 = vweird.f32 %v3077_v6 }
 0x1dd   :  { %v1084_v5 = vmul.f32 %v3077_v6, %v1083_v7  ;;  %v1469_v41 = vadd.f32 %v1468_v23, %v1467_v4  ;;  %v1470_v3 = vsel %vm162_vm0, %v4103_v57, 0.0  ;;  %v1668_v55 = vsel %vm162_vm0, %v1584_v13, 0.0 }
 0x1de   :  { %v4248_v12 = vpop.f32.mrf.mxu2  ;;  %v1667_v60 = vadd.f32 %v1666_v20, %v1665_v32  ;;  %v1080_v7 = vadd.f32 %v1079_v52, %v1078_v53  ;;  %v1284_v56 = vrot.slane %v1283_v28, 1  ;;  %v1585_v46 = vmul.f32 %v4132_v44, %v4132_v44 }
 0x1df   :  { %6356 = vst [vmem:[#allocation94_spill] sm:$0xff] %v4248_v12  ;;  %v1085_v26 = vadd.f32 %v3077_v6, %v1084_v5  ;;  %v1471_v34 = vadd.f32 %v1470_v3, %v1469_v41  ;;  %v1472_v32 = vsel %vm162_vm0, %v4132_v44, 0.0  ;;  %v1586_v52 = vmul.f32 %v4161_v37, %v4161_v37 }
 0x1e0   :  { %v1669_v24 = vadd.f32 %v1668_v55, %v1667_v60  ;;  %v1285_v23 = vadd.f32 %v1284_v56, %v1283_v28  ;;  %v1670_v53 = vsel %vm162_vm0, %v1585_v46, 0.0  ;;  %v33_v60 = vld [vmem:[%s6067_s1 + $0xb0] sm:$0xff]  ;;  %v1587_v3 = vmul.f32 %v4190_v50, %v4190_v50  ;;  %v6365_v46 = vld [vmem:[#allocation37_spill] sm:$0xff] }
 0x1e1   :  { %v4301_v15 = vsel %vm1086_vm1, %v3077_v6, %v1085_v26  ;;  %v1473_v20 = vadd.f32 %v1472_v32, %v1471_v34  ;;  %v1474_v6 = vsel %vm162_vm0, %v4161_v37, 0.0  ;;  %v1672_v28 = vsel %vm162_vm0, %v1586_v52, 0.0  ;;  %v6367_v52 = vld [vmem:[#allocation43_spill] sm:$0xff] }
 0x1e2   :  { %v4261_v30 = vpop.f32.mrf.mxu3  ;;  %6362 = vst [vmem:[#allocation100_spill] sm:$0xff] %v4301_v15  ;;  %v4308_v5 = vmul.f32 %v4301_v15, %v1080_v7  ;;  %v1671_v13 = vadd.f32 %v1670_v53, %v1669_v24  ;;  %v1286_v41 = vmul.f32 %v1285_v23, %v4301_v15  ;;  %v1597_v34 = vmul.f32 %v6365_v46, %v6365_v46  ;;  %v6366_v24 = vld [vmem:[#allocation41_spill] sm:$0xff] }
 0x1e3   :  { %6357 = vst [vmem:[#allocation95_spill] sm:$0xff] %v4261_v30  ;;  %v1475_v7 = vadd.f32 %v1474_v6, %v1473_v20  ;;  %v1598_v32 = vmul.f32 %v6366_v24, %v6366_v24  ;;  %v4330_v23 = vperm.slane %v33_v60, 0  ;;  %v1476_v53 = vsel %vm162_vm0, %v4190_v50, 0.0  ;;  %v6370_v15 = vld [vmem:[#allocation45_spill] sm:$0xff] }
 0x1e4   :  { %v1287_v26 = vmul.f32 %v4308_v5, %v4308_v5  ;;  %v1673_v55 = vadd.f32 %v1672_v28, %v1671_v13  ;;  %v1599_v44 = vmul.f32 %v6367_v52, %v6367_v52  ;;  %v1674_v20 = vsel %vm162_vm0, %v1587_v3, 0.0 }
 0x1e5   :  { %v1477_v6 = vadd.f32 %v1476_v53, %v1475_v7  ;;  %v1588_v13 = vmul.f32 %v4219_v16, %v4219_v16  ;;  %v4341_v57 = vperm.slane %v33_v60, 1  ;;  %v4345_v36 = vsel %vm162_vm0, %v6365_v46, 0.0  ;;  %v6373_v60 = vld [vmem:[#allocation47_spill] sm:$0xff] }
 0x1e6   :  { %v4268_v0 = vpop.f32.mrf.mxu2  ;;  %v1288_v37 = vsub.f32 %v1286_v41, %v1287_v26  ;;  %v1600_v41 = vmul.f32 %v6370_v15, %v6370_v15  ;;  %v1675_v26 = vadd.f32 %v1674_v20, %v1673_v55  ;;  %v4350_v50 = vsel %vm162_vm0, %v1597_v34, 0.0 }
 0x1e7   :  { %6358 = vst [vmem:[#allocation96_spill] sm:$0xff] %v4268_v0  ;;  %v4354_v3 = vsel %vm162_vm0, %v6366_v24, 0.0  ;;  %v4357_v7 = vsel %vm162_vm0, %v1598_v32, 0.0  ;;  %v1601_v53 = vmul.f32 %v6373_v60, %v6373_v60  ;;  %v4363_v46 = vsel %vm162_vm0, %v6367_v52, 0.0 }
 0x1e8   :  { %6369 = vst [vmem:[#allocation104_spill] sm:$0xff] %v4341_v57  ;;  %v6375_v57 = vld [vmem:[#allocation51_spill] sm:$0xff]  ;;  %v1478_v34 = vsel %vm162_vm0, %v4219_v16, 0.0  ;;  %v1289_v20 = vmax.f32 %v1288_v37, 0.0  ;;  %v4370_v24 = vsel %vm162_vm0, %v1599_v44, 0.0  ;;  %v1676_v32 = vsel %vm162_vm0, %v1588_v13, 0.0 }
 0x1e9   :  { %6371 = vst [vmem:[#allocation105_spill] sm:$0xff] %v4350_v50  ;;  %v1602_v55 = vmul.f32 %v6375_v57, %v6375_v57  ;;  %v1479_v50 = vadd.f32 %v1478_v34, %v1477_v6  ;;  %v4377_v52 = vsel %vm162_vm0, %v6370_v15, 0.0  ;;  %v1603_v16 = vmul.f32 %v3997_v11, %v3997_v11 }
 0x1ea   :  { %v4280_v54 = vpop.f32.mrf.mxu3  ;;  %6372 = vst [vmem:[#allocation106_spill] sm:$0xff] %v4357_v7  ;;  %v1589_v7 = vmul.f32 %v4248_v12, %v4248_v12  ;;  %v1677_v37 = vadd.f32 %v1676_v32, %v1675_v26  ;;  %v4386_v44 = vsel %vm162_vm0, %v6373_v60, 0.0  ;;  %v4389_v6 = vsel %vm162_vm0, %v1601_v53, 0.0 }
 0x1eb   :  { %6359 = vst [vmem:[#allocation97_spill] sm:$0xff] %v4280_v54  ;;  %v4393_v13 = vsel %vm162_vm0, %v6375_v57, 0.0  ;;  %v1604_v34 = vmul.f32 %v4026_v33, %v4026_v33  ;;  %v4400_v15 = vsel %vm162_vm0, %v1602_v55, 0.0  ;;  %v1605_v26 = vmul.f32 %v4047_v22, %v4047_v22 }
 0x1ec   :  { %6374 = vst [vmem:[#allocation107_spill] sm:$0xff] %v4363_v46  ;;  %v4380_v46 = vsel %vm162_vm0, %v1600_v41, 0.0  ;;  %v1480_v32 = vsel %vm162_vm0, %v4248_v12, 0.0  ;;  %v4406_v53 = vadd.f32 1e-05, %v1289_v20  ;;  %v4410_v57 = vsel %vm162_vm0, %v3997_v11, 0.0 }
 0x1ed   :  { %6376 = vst [vmem:[#allocation108_spill] sm:$0xff] %v4370_v24  ;;  %v1481_v60 = vadd.f32 %v1480_v32, %v1479_v50  ;;  %v4416_v55 = vsel %vm162_vm0, %v1603_v16, 0.0  ;;  %v1606_v20 = vmul.f32 %v4063_v19, %v4063_v19  ;;  %v4425_v11 = vsel %vm162_vm0, %v1604_v34, 0.0 }
 0x1ee   :  { %v4287_v39 = vpop.f32.mrf.mxu2  ;;  %6377 = vst [vmem:[#allocation109_spill] sm:$0xff] %v4380_v46  ;;  %v1590_v46 = vmul.f32 %v4268_v0, %v4268_v0  ;;  %v4429_v50 = vsel %vm162_vm0, %v4047_v22, 0.0  ;;  %v1608_v16 = vmul.f32 %v4120_v51, %v4120_v51  ;;  %3078 = vrsqrt.f32 %v4406_v53 }
 0x1ef   :  { %6360 = vst [vmem:[#allocation98_spill] sm:$0xff] %v4287_v39  ;;  %v4447_v34 = vsel %vm162_vm0, %v4063_v19, 0.0  ;;  %vm1361_vm2 = vweird.f32 %v4406_v53 }
 0x1f0   :  { %6378 = vst [vmem:[#allocation110_spill] sm:$0xff] %v4389_v6  ;;  %v1678_v6 = vsel %vm162_vm0, %v1589_v7, 0.0  ;;  %v1607_v7 = vmul.f32 %v4090_v43, %v4090_v43 }
 0x1f1   :  { %6380 = vst [vmem:[#allocation112_spill] sm:$0xff] %v4400_v15  ;;  %v4420_v15 = vsel %vm162_vm0, %v4026_v33, 0.0  ;;  %v1679_v12 = vadd.f32 %v1678_v6, %v1677_v37  ;;  %v4438_v33 = vsel %vm162_vm0, %v1605_v26, 0.0  ;;  %v1609_v37 = vmul.f32 %v4149_v1, %v4149_v1 }
 0x1f2   :  { %v4294_v45 = vpop.f32.mrf.mxu3  ;;  %6381 = vst [vmem:[#allocation113_spill] sm:$0xff] %v4410_v57  ;;  %v1482_v6 = vsel %vm162_vm0, %v4268_v0, 0.0  ;;  %v4453_v26 = vsel %vm162_vm0, %v1606_v20, 0.0  ;;  %v1610_v0 = vmul.f32 %v4178_v48, %v4178_v48  ;;  %v4462_v19 = vsel %vm162_vm0, %v1607_v7, 0.0 }
 0x1f3   :  { %6361 = vst [vmem:[#allocation99_spill] sm:$0xff] %v4294_v45  ;;  %v1483_v22 = vadd.f32 %v1482_v6, %v1481_v60  ;;  %v4469_v60 = vsel %vm162_vm0, %v1608_v16, 0.0  ;;  %v1611_v20 = vmul.f32 %v4207_v17, %v4207_v17  ;;  %v4475_v6 = vsel %vm162_vm0, %v4149_v1, 0.0  ;;  %v6463_v42 = vld [vmem:[#allocation107_spill] sm:$0xff] }
 0x1f4   :  { %6382 = vst [vmem:[#allocation114_spill] sm:$0xff] %v4416_v55  ;;  %v1591_v55 = vmul.f32 %v4287_v39, %v4287_v39  ;;  %v4486_v7 = vsel %vm162_vm0, %v4178_v48, 0.0  ;;  %v1613_v48 = vmul.f32 %v4261_v30, %v4261_v30 }
 0x1f5   :  { %6383 = vst [vmem:[#allocation115_spill] sm:$0xff] %v4420_v15  ;;  %v6490_v10 = vld [vmem:[#allocation109_spill] sm:$0xff] }
 0x1f6   :  { %v4303_v4 = vpop.f32.mrf.mxu2  ;;  %6384 = vst [vmem:[#allocation116_spill] sm:$0xff] %v4425_v11  ;;  %v1680_v11 = vsel %vm162_vm0, %v1590_v46, 0.0  ;;  %v4466_v46 = vsel %vm162_vm0, %v4120_v51, 0.0  ;;  %v1682_v51 = vsel %vm162_vm0, %v1591_v55, 0.0  ;;  %v4505_v55 = vsel %vm162_vm0, %v1611_v20, 0.0 }
 0x1f7   :  { %6363 = vst [vmem:[#allocation101_spill] sm:$0xff] %v4303_v4  ;;  %v1592_v1 = vmul.f32 %v4303_v4, %v4303_v4  ;;  %v6494_v58 = vld [vmem:[#allocation110_spill] sm:$0xff] }
 0x1f8   :  { %6385 = vst [vmem:[#allocation117_spill] sm:$0xff] %v4429_v50  ;;  %v1681_v50 = vadd.f32 %v1680_v11, %v1679_v12  ;;  %v1612_v11 = vmul.f32 %v4236_v14, %v4236_v14  ;;  %v1484_v12 = vsel %vm162_vm0, %v4287_v39, 0.0  ;;  %v4500_v39 = vsel %vm162_vm0, %v4207_v17, 0.0 }
 0x1f9   :  { %6387 = vst [vmem:[#allocation119_spill] sm:$0xff] %v4438_v33  ;;  %v4457_v33 = vsel %vm162_vm0, %v4090_v43, 0.0  ;;  %v4478_v43 = vsel %vm162_vm0, %v1609_v37, 0.0  ;;  %v1485_v16 = vadd.f32 %v1484_v12, %v1483_v22  ;;  %v4493_v37 = vpop.eup %3078  ;;  %v4509_v12 = vsel %vm162_vm0, %v4236_v14, 0.0 }
 0x1fa   :  { %v4324_v56 = vpop.f32.mrf.mxu3  ;;  %6388 = vst [vmem:[#allocation120_spill] sm:$0xff] %v4447_v34  ;;  %v1683_v22 = vadd.f32 %v1682_v51, %v1681_v50  ;;  %v4516_v17 = vsel %vm162_vm0, %v1612_v11, 0.0  ;;  %v1356_v20 = vmul.f32 %v4493_v37, %v4406_v53  ;;  %vm1362_vm3 = vweird.f32 %v4493_v37  ;;  %v6453_v53 = vld [vmem:[#allocation60_spill] sm:$0xff]  ;;  %v6454_v34 = vld [vmem:[#allocation63_spill] sm:$0xff] }
 0x1fb   :  { %6364 = vst [vmem:[#allocation102_spill] sm:$0xff] %v4324_v56  ;;  %v1616_v50 = vmul.f32 %v4324_v56, %v4324_v56  ;;  %vm1363_vm4 = vmor %vm1361_vm2, %vm1362_vm3 }
 0x1fc   :  { %6389 = vst [vmem:[#allocation121_spill] sm:$0xff] %v4453_v26 }
 0x1fd   :  { %6390 = vst [vmem:[#allocation122_spill] sm:$0xff] %v4457_v33  ;;  %v6442_v33 = vld [vmem:[#allocation36_spill] sm:$0xff] }
 0x1fe   :  { %v4339_v28 = vpop.f32.mrf.mxu2  ;;  %6391 = vst [vmem:[#allocation123_spill] sm:$0xff] %v4462_v19  ;;  %v1614_v19 = vmul.f32 %v4280_v54, %v4280_v54 }
 0x1ff   :  { %6368 = vst [vmem:[#allocation103_spill] sm:$0xff] %v4339_v28  ;;  %v1593_v51 = vmul.f32 %v4339_v28, %v4339_v28 }
 0x200   :  { %6392 = vst [vmem:[#allocation124_spill] sm:$0xff] %v4466_v46 }
 0x201   :  { %6393 = vst [vmem:[#allocation125_spill] sm:$0xff] %v4469_v60  ;;  %v6493_v21 = vld [vmem:[#allocation120_spill] sm:$0xff] }
 0x202   :  { %v4397_v41 = vpop.f32.mrf.mxu3  ;;  %6394 = vst [vmem:[#allocation126_spill] sm:$0xff] %v4475_v6 }
 0x203   :  { %6379 = vst [vmem:[#allocation111_spill] sm:$0xff] %v4397_v41  ;;  %v1617_v26 = vmul.f32 %v4397_v41, %v4397_v41 }
 0x204   :  { %6395 = vst [vmem:[#allocation127_spill] sm:$0xff] %v4478_v43  ;;  %v4496_v43 = vsel %vm162_vm0, %v1610_v0, 0.0  ;;  %v1615_v0 = vmul.f32 %v4294_v45, %v4294_v45 }
 0x205   :  { %6396 = vst [vmem:[#allocation128_spill] sm:$0xff] %v4486_v7 }
 0x206   :  { %v4435_v32 = vpop.f32.mrf.mxu2  ;;  %6398 = vst [vmem:[#allocation130_spill] sm:$0xff] %v4496_v43  ;;  %v1486_v43 = vsel %vm162_vm0, %v4303_v4, 0.0  ;;  %v4533_v4 = vsel %vm162_vm0, %v4261_v30, 0.0  ;;  %v4552_v30 = vsel %vm162_vm0, %v1615_v0, 0.0 }
 0x207   :  { %6386 = vst [vmem:[#allocation118_spill] sm:$0xff] %v4435_v32  ;;  %v1487_v14 = vadd.f32 %v1486_v43, %v1485_v16  ;;  %v4542_v43 = vsel %vm162_vm0, %v4280_v54, 0.0  ;;  %v4549_v16 = vsel %vm162_vm0, %v4294_v45, 0.0  ;;  %v4562_v54 = vsel %vm162_vm0, %v1616_v50, 0.0 }
 0x208   :  { %6399 = vst [vmem:[#allocation131_spill] sm:$0xff] %v4500_v39  ;;  %v1490_v45 = vsel %vm162_vm0, %v4435_v32, 0.0  ;;  %v4579_v50 = vsel %vm162_vm0, %v1617_v26, 0.0  ;;  %v6424_v26 = vld [vmem:[#allocation2_spill] sm:$0xff] }
 0x209   :  { %6400 = vst [vmem:[#allocation132_spill] sm:$0xff] %v4505_v55  ;;  %v1684_v55 = vsel %vm162_vm0, %v1592_v1, 0.0  ;;  %v4545_v1 = vsel %vm162_vm0, %v1614_v19, 0.0  ;;  %v1357_v19 = vmul.f32 %v4493_v37, %v1356_v20 }
 0x20a   :  { %v4491_v60 = vpop.f32.mrf.mxu3  ;;  %6401 = vst [vmem:[#allocation133_spill] sm:$0xff] %v4509_v12  ;;  %v1594_v12 = vmul.f32 %v4435_v32, %v4435_v32  ;;  %v1685_v39 = vadd.f32 %v1684_v55, %v1683_v22  ;;  %v1686_v22 = vsel %vm162_vm0, %v1593_v51, 0.0  ;;  %v4559_v55 = vsel %vm162_vm0, %v4324_v56, 0.0 }
 0x20b   :  { %6397 = vst [vmem:[#allocation129_spill] sm:$0xff] %v4491_v60  ;;  %v4576_v56 = vsel %vm162_vm0, %v4397_v41, 0.0  ;;  %v1358_v32 = vmul.f32 0.5, %v1357_v19  ;;  %v6450_v19 = vld [vmem:[#allocation54_spill] sm:$0xff] }
 0x20c   :  { %6402 = vst [vmem:[#allocation134_spill] sm:$0xff] %v4516_v17  ;;  %v4536_v17 = vsel %vm162_vm0, %v1613_v48, 0.0  ;;  %v1488_v48 = vsel %vm162_vm0, %v4339_v28, 0.0  ;;  %v4568_v0 = vsel %vm162_vm0, %v1594_v12, 0.0  ;;  %v4572_v51 = vadd.f32 %v1686_v22, %v1685_v39  ;;  %v6415_v28 = vld [vmem:[#allocation16_spill] sm:$0xff]  ;;  %v6441_v12 = vld [vmem:[#allocation33_spill] sm:$0xff] }
 0x20d   :  { %6404 = vst [vmem:[#allocation136_spill] sm:$0xff] %v4533_v4 }
 0x20e   :  { %v4529_v11 = vpop.f32.mrf.mxu2  ;;  %6405 = vst [vmem:[#allocation137_spill] sm:$0xff] %v4536_v17  ;;  %v6420_v17 = vld [vmem:[#allocation32_spill] sm:$0xff] }
 0x20f   :  { %6403 = vst [vmem:[#allocation135_spill] sm:$0xff] %v4529_v11  ;;  %v1492_v39 = vsel %vm162_vm0, %v4529_v11, 0.0 }
 0x210   :  { %6406 = vst [vmem:[#allocation138_spill] sm:$0xff] %v4542_v43  ;;  %v1359_v43 = vsub.f32 1.5, %v1358_v32 }
 0x211   :  { %6407 = vst [vmem:[#allocation139_spill] sm:$0xff] %v4545_v1  ;;  %v1489_v1 = vadd.f32 %v1488_v48, %v1487_v14  ;;  %v1290_v14 = vsub.f32 %v6424_v26, %v4308_v5  ;;  %v6452_v26 = vld [vmem:[#allocation58_spill] sm:$0xff] }
 0x212   :  { %6408 = vst [vmem:[#allocation140_spill] sm:$0xff] %v4549_v16  ;;  %v4589_v48 = vpop.f32.mrf.mxu3  ;;  %v6426_v16 = vld [vmem:[#allocation4_spill] sm:$0xff]  ;;  %v1360_v32 = vmul.f32 %v4493_v37, %v1359_v43  ;;  %v6455_v43 = vld [vmem:[#allocation66_spill] sm:$0xff] }
 0x213   :  { %6409 = vst [vmem:[#allocation141_spill] sm:$0xff] %v4552_v30  ;;  %v1491_v41 = vadd.f32 %v1490_v45, %v1489_v1  ;;  %v6418_v30 = vld [vmem:[#allocation26_spill] sm:$0xff]  ;;  %v6422_v45 = vld [vmem:[#allocation39_spill] sm:$0xff]  ;;  %v6427_v1 = vld [vmem:[#allocation5_spill] sm:$0xff] }
 0x214   :  { %6410 = vst [vmem:[#allocation142_spill] sm:$0xff] %v4559_v55  ;;  %v6425_v55 = vld [vmem:[#allocation3_spill] sm:$0xff] }
 0x215   :  { %6411 = vst [vmem:[#allocation143_spill] sm:$0xff] %v4562_v54  ;;  %v6417_v54 = vld [vmem:[#allocation22_spill] sm:$0xff]  ;;  %v1291_v20 = vsub.f32 %v6425_v55, %v4308_v5  ;;  %v1493_v6 = vadd.f32 %v1492_v39, %v1491_v41  ;;  %v4689_v39 = vsel %vm1363_vm4, %v4493_v37, %v1360_v32  ;;  %v1689_v37 = vadd.f32 %v4568_v0, %v4572_v51 }
 0x216   :  { %6412 = vst [vmem:[#allocation144_spill] sm:$0xff] %v4576_v56  ;;  %v6421_v56 = vld [vmem:[#allocation35_spill] sm:$0xff]  ;;  %v4619_v22 = vpop.f32.mrf.mxu2  ;;  %v1365_v57 = vmul.f32 %v4689_v39, %v1290_v14  ;;  %v6459_v0 = vsub.f32 %v3951_v63, %v4308_v5  ;;  %v6462_v63 = vsub.f32 %v3372_v2, %v4308_v5 }
 0x217   :  { %6413 = vst [vmem:[#allocation145_spill] sm:$0xff] %v4579_v50  ;;  %v6416_v50 = vld [vmem:[#allocation19_spill] sm:$0xff]  ;;  %v1494_v24 = vsel %vm162_vm0, %v4619_v22, 0.0  ;;  %v1366_v15 = vmul.f32 %v4689_v39, %v1291_v20  ;;  %v1596_v2 = vmul.f32 %v4619_v22, %v4619_v22 }
 0x218   :  { %6414 = vst [vmem:[#allocation146_spill] sm:$0xff] %v4589_v48  ;;  %v6419_v48 = vld [vmem:[#allocation29_spill] sm:$0xff]  ;;  %v1495_v41 = vadd.f32 %v1494_v24, %v1493_v6  ;;  %v6451_v24 = vld [vmem:[#allocation56_spill] sm:$0xff]  ;;  %v1397_v14 = vmul.f32 %v4689_v39, %v6459_v0  ;;  %v1904_v51 = vmul.f32 %v4330_v23, %v1365_v57  ;;  %v1400_v0 = vmul.f32 %v4689_v39, %v6462_v63 }
 0x219   :  { %6423 = vst [vmem:[#allocation16_spill] sm:$0xff] %v4619_v22  ;;  %v1905_v62 = vmul.f32 %v4330_v23, %v1366_v15  ;;  %v6464_v15 = vsub.f32 %v3392_v8, %v4308_v5  ;;  %v6506_v6 = vld [vmem:[#allocation128_spill] sm:$0xff] }
 0x21a   :  { %v4660_v7 = vpop.f32.mrf.mxu3  ;;  %v1497_v55 = vadd.f32 %v4345_v36, %v1495_v41  ;;  %v1595_v36 = vmul.f32 %v4529_v11, %v4529_v11  ;;  %v1618_v41 = vmul.f32 %v4491_v60, %v4491_v60 }
 0x21c   :  { %v1499_v61 = vadd.f32 %v4354_v3, %v1497_v55  ;;  %v1690_v4 = vsel %vm162_vm0, %v1595_v36, 0.0  ;;  %v4738_v3 = vsel %vm162_vm0, %v4491_v60, 0.0  ;;  %v4741_v55 = vsel %vm162_vm0, %v1618_v41, 0.0 }
 0x21d   :  { %v1691_v11 = vadd.f32 %v1690_v4, %v1689_v37  ;;  %v6460_v36 = vsub.f32 %v3972_v29, %v4308_v5  ;;  %v6461_v41 = vsub.f32 %v3348_v59, %v4308_v5  ;;  %v1401_v4 = vmul.f32 %v4689_v39, %v6464_v15 }
 0x21e   :  { %v1501_v57 = vadd.f32 %v6463_v42, %v1499_v61  ;;  %v6465_v29 = vsub.f32 %v3424_v18, %v4308_v5  ;;  %v6466_v59 = vsub.f32 %v6426_v16, %v4308_v5  ;;  %v6467_v61 = vsub.f32 %v3449_v25, %v4308_v5  ;;  %v6471_v25 = vld [vmem:[#allocation104_spill] sm:$0xff] }
 0x21f   :  { %v1398_v60 = vmul.f32 %v4689_v39, %v6460_v36  ;;  %v1399_v20 = vmul.f32 %v4689_v39, %v6461_v41  ;;  %v6468_v42 = vsub.f32 %v3470_v31, %v4308_v5  ;;  %v6469_v41 = vsub.f32 %v3492_v38, %v4308_v5 }
 0x220   :  { %v1402_v37 = vmul.f32 %v4689_v39, %v6465_v29  ;;  %v1367_v36 = vmul.f32 %v4689_v39, %v6466_v59  ;;  %v1403_v8 = vmul.f32 %v4689_v39, %v6467_v61  ;;  %v1503_v63 = vadd.f32 %v4377_v52, %v1501_v57 }
 0x221   :  { %v1404_v18 = vmul.f32 %v4689_v39, %v6468_v42  ;;  %v1405_v16 = vmul.f32 %v4689_v39, %v6469_v41  ;;  %v6470_v15 = vsub.f32 %v3526_v49, %v4308_v5  ;;  %v2033_v59 = vadd.f32 %v6471_v25, %v1904_v51 }
 0x222   :  { %v4743_v46 = vpop.f32.mrf.mxu3  ;;  %v2034_v61 = vadd.f32 %v6471_v25, %v1905_v62  ;;  %v1692_v31 = vsel %vm162_vm0, %v1596_v2, 0.0  ;;  %v6472_v42 = vsub.f32 %v6415_v28, %v4308_v5  ;;  %v6473_v41 = vsub.f32 %v6416_v50, %v4308_v5 }
 0x223   :  { %v1406_v29 = vmul.f32 %v4689_v39, %v6470_v15  ;;  %v1505_v49 = vadd.f32 %v4386_v44, %v1503_v63  ;;  %v1693_v57 = vadd.f32 %v1692_v31, %v1691_v11  ;;  %v6474_v51 = vsub.f32 %v6417_v54, %v4308_v5  ;;  %v6479_v31 = vld [vmem:[#allocation105_spill] sm:$0xff] }
 0x224   :  { %v1407_v38 = vmul.f32 %v4689_v39, %v6472_v42  ;;  %v1408_v52 = vmul.f32 %v4689_v39, %v6473_v41  ;;  %v6475_v2 = vsub.f32 %v6418_v30, %v4308_v5  ;;  %v6476_v15 = vsub.f32 %v6427_v1, %v4308_v5 }
 0x225   :  { %v1409_v62 = vmul.f32 %v4689_v39, %v6474_v51  ;;  %v1906_v42 = vmul.f32 %v4330_v23, %v1367_v36  ;;  %v6477_v44 = vsub.f32 %v6419_v48, %v4308_v5  ;;  %v6478_v54 = vsub.f32 %v6420_v17, %v4308_v5 }
 0x226   :  { %v1410_v28 = vmul.f32 %v4689_v39, %v6475_v2  ;;  %v1368_v50 = vmul.f32 %v4689_v39, %v6476_v15  ;;  %v1507_v30 = vadd.f32 %v4393_v13, %v1505_v49  ;;  %v1695_v41 = vadd.f32 %v6479_v31, %v1693_v57 }
 0x227   :  { %v1411_v11 = vmul.f32 %v4689_v39, %v6477_v44  ;;  %v1412_v63 = vmul.f32 %v4689_v39, %v6478_v54  ;;  %v6480_v1 = vsub.f32 %v6421_v56, %v4308_v5  ;;  %v6481_v48 = vsub.f32 %v6422_v45, %v4308_v5  ;;  %v6483_v56 = vld [vmem:[#allocation113_spill] sm:$0xff]  ;;  %v6484_v44 = vld [vmem:[#allocation106_spill] sm:$0xff] }
 0x228   :  { %v2161_v2 = vmax.f32 %v2033_v59, 0.0  ;;  %v2162_v17 = vmax.f32 %v2034_v61, 0.0  ;;  %v6482_v15 = vsub.f32 %v3718_v27, %v4308_v5  ;;  %v1936_v49 = vmul.f32 %v4330_v23, %v1397_v14 }
 0x229   :  { %v4834_v51 = vmul.f32 %v4689_v39, %v6480_v1  ;;  %v4840_v36 = vmul.f32 %v4689_v39, %v6481_v48  ;;  %v1509_v57 = vadd.f32 %v6483_v56, %v1507_v30  ;;  %v1697_v54 = vadd.f32 %v6484_v44, %v1695_v41  ;;  %v6485_v1 = vld [vmem:[#allocation6_spill] sm:$0xff]  ;;  %v6487_v30 = vld [vmem:[#allocation115_spill] sm:$0xff]  ;;  %v6488_v41 = vld [vmem:[#allocation108_spill] sm:$0xff] }
 0x22a   :  { %v4846_v13 = vmul.f32 %v4689_v39, %v6482_v15  ;;  %v4851_v31 = vpop.f32.mrf.mxu3  ;;  %v1937_v45 = vmul.f32 %v4330_v23, %v1398_v60  ;;  %v6486_v59 = vsub.f32 %v6485_v1, %v4308_v5  ;;  %v1907_v27 = vmul.f32 %v4330_v23, %v1368_v50 }
 0x22b   :  { %v2035_v48 = vadd.f32 %v6471_v25, %v1906_v42  ;;  %v1938_v15 = vmul.f32 %v4330_v23, %v1399_v20  ;;  %v1939_v14 = vmul.f32 %v4330_v23, %v1400_v0  ;;  %v1511_v56 = vadd.f32 %v6487_v30, %v1509_v57  ;;  %v6489_v20 = vld [vmem:[#allocation117_spill] sm:$0xff]  ;;  %v6491_v30 = vld [vmem:[#allocation7_spill] sm:$0xff] }
 0x22c   :  { %v1369_v61 = vmul.f32 %v4689_v39, %v6486_v59  ;;  %v1699_v44 = vadd.f32 %v6488_v41, %v1697_v54  ;;  %v1940_v22 = vmul.f32 %v4330_v23, %v1401_v4  ;;  %v1941_v60 = vmul.f32 %v4330_v23, %v1402_v37 }
 0x22d   :  { %v2289_v1 = vsel %vm162_vm0, %v2161_v2, 0.0  ;;  %v2290_v59 = vsel %vm162_vm0, %v2162_v17, 0.0  ;;  %v4869_v50 = vmul.f32 %v4330_v23, %v1403_v8  ;;  %v4872_v42 = vmul.f32 %v4330_v23, %v1404_v18 }
 0x22e   :  { %v1513_v0 = vadd.f32 %v6489_v20, %v1511_v56  ;;  %v1701_v57 = vadd.f32 %v6490_v10, %v1699_v44  ;;  %v6492_v54 = vsub.f32 %v6491_v30, %v4308_v5  ;;  %v1908_v37 = vmul.f32 %v4330_v23, %v1369_v61 }
 0x22f   :  { %v2036_v2 = vadd.f32 %v6471_v25, %v1907_v27  ;;  %v2163_v17 = vmax.f32 %v2035_v48, 0.0  ;;  %v1944_v8 = vmul.f32 %v4330_v23, %v1405_v16  ;;  %v2291_v41 = vadd.f32 %v2290_v59, %v2289_v1  ;;  %v6495_v48 = vld [vmem:[#allocation8_spill] sm:$0xff]  ;;  %v6497_v1 = vld [vmem:[#allocation122_spill] sm:$0xff] }
 0x230   :  { %v1370_v4 = vmul.f32 %v4689_v39, %v6492_v54  ;;  %v1515_v18 = vadd.f32 %v6493_v21, %v1513_v0  ;;  %v1703_v40 = vadd.f32 %v6494_v58, %v1701_v57  ;;  %v4886_v56 = vmul.f32 %v4330_v23, %v1406_v29  ;;  %v6498_v59 = vld [vmem:[#allocation112_spill] sm:$0xff]  ;;  %v6499_v57 = vld [vmem:[#allocation114_spill] sm:$0xff] }
 0x231   :  { %v4889_v10 = vmul.f32 %v4330_v23, %v1407_v38  ;;  %v4892_v44 = vmul.f32 %v4330_v23, %v1408_v52  ;;  %v2065_v61 = vadd.f32 %v6471_v25, %v1936_v49  ;;  %v2066_v27 = vadd.f32 %v6471_v25, %v1937_v45  ;;  %v6500_v54 = vld [vmem:[#allocation124_spill] sm:$0xff] }
 0x232   :  { %v6496_v16 = vsub.f32 %v6495_v48, %v4308_v5  ;;  %v1517_v58 = vadd.f32 %v6497_v1, %v1515_v18  ;;  %v1705_v29 = vadd.f32 %v6498_v59, %v1703_v40  ;;  %v1909_v20 = vmul.f32 %v4330_v23, %v1370_v4  ;;  %v17_v18 = vld [vmem:[%s6067_s1 + $0x30] sm:$0xff]  ;;  %v4913_v40 = vpop.f32.mrf.mxu3 }
 0x233   :  { %v2037_v38 = vadd.f32 %v6471_v25, %v1908_v37  ;;  %v2164_v0 = vmax.f32 %v2036_v2, 0.0  ;;  %v2292_v52 = vsel %vm162_vm0, %v2163_v17, 0.0  ;;  %v4906_v49 = vmul.f32 %v4330_v23, %v1409_v62  ;;  %2601 = vmatpush.msrb.mxu1 %v17_v18 }
 0x234   :  { %v1371_v21 = vmul.f32 %v4689_v39, %v6496_v16  ;;  %v2293_v45 = vadd.f32 %v2292_v52, %v2291_v41  ;;  %v1707_v30 = vadd.f32 %v6499_v57, %v1705_v29  ;;  %v1519_v48 = vadd.f32 %v6500_v54, %v1517_v58  ;;  %v6501_v41 = vld [vmem:[#allocation9_spill] sm:$0xff]  ;;  %v6503_v58 = vld [vmem:[#allocation116_spill] sm:$0xff]  ;;  %v6504_v29 = vld [vmem:[#allocation126_spill] sm:$0xff] }
 0x235   :  { %v4916_v4 = vmul.f32 %v4330_v23, %v1410_v28  ;;  %v4919_v37 = vmul.f32 %v4330_v23, %v1411_v11  ;;  %v4922_v62 = vmul.f32 %v4330_v23, %v1412_v63  ;;  %v2193_v2 = vmax.f32 %v2065_v61, 0.0 }
 0x236   :  { %v2194_v17 = vmax.f32 %v2066_v27, 0.0  ;;  %v6502_v16 = vsub.f32 %v6501_v41, %v4308_v5  ;;  %v1709_v59 = vadd.f32 %v6503_v58, %v1707_v30  ;;  %v1521_v52 = vadd.f32 %v6504_v29, %v1519_v48  ;;  %v6505_v27 = vld [vmem:[#allocation119_spill] sm:$0xff] }
 0x237   :  { %v1910_v28 = vmul.f32 %v4330_v23, %v1371_v21  ;;  %v2038_v11 = vadd.f32 %v6471_v25, %v1909_v20  ;;  %v2165_v57 = vmax.f32 %v2037_v38, 0.0  ;;  %v2294_v63 = vsel %vm162_vm0, %v2164_v0, 0.0  ;;  %v6507_v38 = vld [vmem:[#allocation11_spill] sm:$0xff] }
 0x238   :  { %v1372_v1 = vmul.f32 %v4689_v39, %v6502_v16  ;;  %v2067_v61 = vadd.f32 %v6471_v25, %v1938_v15  ;;  %v2295_v54 = vadd.f32 %v2294_v63, %v2293_v45  ;;  %v1711_v18 = vadd.f32 %v6505_v27, %v1709_v59  ;;  %v6509_v45 = vld [vmem:[#allocation121_spill] sm:$0xff]  ;;  %v6510_v59 = vld [vmem:[#allocation131_spill] sm:$0xff] }
 0x239   :  { %v1523_v41 = vadd.f32 %v6506_v6, %v1521_v52  ;;  %v2068_v16 = vadd.f32 %v6471_v25, %v1939_v14  ;;  %v2069_v30 = vadd.f32 %v6471_v25, %v1940_v22  ;;  %v4939_v48 = vadd.f32 %v6471_v25, %v1941_v60  ;;  %v6511_v63 = vld [vmem:[#allocation123_spill] sm:$0xff]  ;;  %v6512_v27 = vld [vmem:[#allocation133_spill] sm:$0xff] }
 0x23a   :  { %v2358_v21 = vsel %vm162_vm0, %v2193_v2, 0.0  ;;  %v2359_v20 = vsel %vm162_vm0, %v2194_v17, 0.0  ;;  %v6508_v0 = vsub.f32 %v6507_v38, %v4308_v5  ;;  %v1713_v58 = vadd.f32 %v6509_v45, %v1711_v18  ;;  %v6516_v45 = vld [vmem:[#allocation125_spill] sm:$0xff] }
 0x23b   :  { %v1525_v6 = vadd.f32 %v6510_v59, %v1523_v41  ;;  %v1911_v14 = vmul.f32 %v4330_v23, %v1372_v1  ;;  %v2039_v22 = vadd.f32 %v6471_v25, %v1910_v28  ;;  %v2166_v29 = vmax.f32 %v2038_v11, 0.0  ;;  %v6515_v41 = vld [vmem:[#allocation136_spill] sm:$0xff] }
 0x23c   :  { %v1373_v15 = vmul.f32 %v4689_v39, %v6508_v0  ;;  %v2296_v60 = vsel %vm162_vm0, %v2165_v57, 0.0  ;;  %v2195_v52 = vmax.f32 %v2067_v61, 0.0  ;;  %v1715_v17 = vadd.f32 %v6511_v63, %v1713_v58  ;;  %v6513_v57 = vld [vmem:[#allocation13_spill] sm:$0xff]  ;;  %v6518_v63 = vld [vmem:[#allocation127_spill] sm:$0xff] }
 0x23d   :  { %v2297_v2 = vadd.f32 %v2296_v60, %v2295_v54  ;;  %v1527_v32 = vadd.f32 %v6512_v27, %v1525_v6  ;;  %v4956_v38 = vadd.f32 %v6471_v25, %v4869_v50  ;;  %v4960_v18 = vadd.f32 %v6471_v25, %v4872_v42  ;;  %v4971_v50 = vpop.f32.mrf.mxu3 }
 0x23e   :  { %v4963_v1 = vadd.f32 %v6471_v25, %v1944_v8  ;;  %v2360_v28 = vadd.f32 %v2359_v20, %v2358_v21  ;;  %v2196_v11 = vmax.f32 %v2068_v16, 0.0  ;;  %v6514_v61 = vsub.f32 %v6513_v57, %v4308_v5  ;;  %v6517_v20 = vld [vmem:[#allocation138_spill] sm:$0xff]  ;;  %v6521_v57 = vld [vmem:[#allocation140_spill] sm:$0xff] }
 0x23f   :  { %v1529_v0 = vadd.f32 %v6515_v41, %v1527_v32  ;;  %v1717_v58 = vadd.f32 %v6516_v45, %v1715_v17  ;;  %v1912_v59 = vmul.f32 %v4330_v23, %v1373_v15  ;;  %v2040_v42 = vadd.f32 %v6471_v25, %v1911_v14  ;;  %v6522_v41 = vld [vmem:[#allocation130_spill] sm:$0xff] }
 0x240   :  { %v1374_v54 = vmul.f32 %v4689_v39, %v6514_v61  ;;  %v2167_v6 = vmax.f32 %v2039_v22, 0.0  ;;  %v2298_v8 = vsel %vm162_vm0, %v2166_v29, 0.0  ;;  %v2361_v16 = vsel %vm162_vm0, %v2195_v52, 0.0  ;;  %v6519_v29 = vld [vmem:[#allocation14_spill] sm:$0xff] }
 0x241   :  { %v2299_v21 = vadd.f32 %v2298_v8, %v2297_v2  ;;  %v1531_v60 = vadd.f32 %v6517_v20, %v1529_v0  ;;  %v1719_v27 = vadd.f32 %v6518_v63, %v1717_v58  ;;  %v4981_v32 = vadd.f32 %v6471_v25, %v4886_v56 }
 0x242   :  { %v4985_v17 = vadd.f32 %v6471_v25, %v4889_v10  ;;  %v4989_v15 = vadd.f32 %v6471_v25, %v4892_v44  ;;  %v2362_v14 = vadd.f32 %v2361_v16, %v2360_v28  ;;  %v2197_v22 = vmax.f32 %v2069_v30, 0.0  ;;  %v6523_v30 = vld [vmem:[#allocation142_spill] sm:$0xff]  ;;  %v6524_v16 = vld [vmem:[#allocation132_spill] sm:$0xff] }
 0x243   :  { %v6520_v52 = vsub.f32 %v6519_v29, %v4308_v5  ;;  %v1533_v61 = vadd.f32 %v6521_v57, %v1531_v60  ;;  %v1721_v56 = vadd.f32 %v6522_v41, %v1719_v27  ;;  %v1913_v0 = vmul.f32 %v4330_v23, %v1374_v54 }
 0x244   :  { %v2041_v10 = vadd.f32 %v6471_v25, %v1912_v59  ;;  %v2168_v45 = vmax.f32 %v2040_v42, 0.0  ;;  %v2300_v58 = vsel %vm162_vm0, %v2167_v6, 0.0  ;;  %v2363_v44 = vsel %vm162_vm0, %v2196_v11, 0.0  ;;  %v6525_v59 = vld [vmem:[#allocation17_spill] sm:$0xff]  ;;  %v6527_v11 = vld [vmem:[#allocation144_spill] sm:$0xff] }
 0x245   :  { %v1375_v2 = vmul.f32 %v4689_v39, %v6520_v52  ;;  %v2301_v28 = vadd.f32 %v2300_v58, %v2299_v21  ;;  %v1535_v8 = vadd.f32 %v6523_v30, %v1533_v61  ;;  %v1723_v20 = vadd.f32 %v6524_v16, %v1721_v56  ;;  %v6528_v52 = vld [vmem:[#allocation134_spill] sm:$0xff]  ;;  %v6529_v56 = vld [vmem:[#allocation137_spill] sm:$0xff]  ;;  %v5019_v30 = vpop.f32.mrf.mxu3 }
 0x246   :  { %v2198_v63 = vmax.f32 %v4939_v48, 0.0  ;;  %v2199_v60 = vmax.f32 %v4956_v38, 0.0  ;;  %v2200_v27 = vmax.f32 %v4960_v18, 0.0  ;;  %v2364_v29 = vadd.f32 %v2363_v44, %v2362_v14 }
 0x247   :  { %v2201_v54 = vmax.f32 %v4963_v1, 0.0  ;;  %v6526_v42 = vsub.f32 %v6525_v59, %v4308_v5  ;;  %v1537_v21 = vadd.f32 %v6527_v11, %v1535_v8  ;;  %v1725_v57 = vadd.f32 %v6528_v52, %v1723_v20 }
 0x248   :  { %v1914_v61 = vmul.f32 %v4330_v23, %v1375_v2  ;;  %v2042_v48 = vadd.f32 %v6471_v25, %v1913_v0  ;;  %v2169_v41 = vmax.f32 %v2041_v10, 0.0  ;;  %v2302_v38 = vsel %vm162_vm0, %v2168_v45, 0.0  ;;  %v6530_v2 = vld [vmem:[#allocation146_spill] sm:$0xff]  ;;  %v6531_v10 = vld [vmem:[#allocation20_spill] sm:$0xff] }
 0x249   :  { %v1376_v6 = vmul.f32 %v4689_v39, %v6526_v42  ;;  %v2365_v18 = vsel %vm162_vm0, %v2197_v22, 0.0  ;;  %v1539_v14 = vadd.f32 %v4738_v3, %v1537_v21  ;;  %v1727_v58 = vadd.f32 %v6529_v56, %v1725_v57  ;;  %v6533_v42 = vld [vmem:[#allocation139_spill] sm:$0xff]  ;;  %v6534_v57 = vld [vmem:[#allocation141_spill] sm:$0xff] }
 0x24a   :  { %v2303_v44 = vadd.f32 %v2302_v38, %v2301_v28  ;;  %v2366_v16 = vadd.f32 %v2365_v18, %v2364_v29  ;;  %v2367_v20 = vsel %vm162_vm0, %v2198_v63, 0.0  ;;  %v1540_v0 = vsel %vm162_vm0, %v6530_v2, 0.0 }
 0x24b   :  { %v6532_v45 = vsub.f32 %v6531_v10, %v4308_v5  ;;  %v1915_v3 = vmul.f32 %v4330_v23, %v1376_v6  ;;  %v1541_v59 = vadd.f32 %v1540_v0, %v1539_v14  ;;  %v1729_v28 = vadd.f32 %v6533_v42, %v1727_v58  ;;  %v6535_v14 = vld [vmem:[#allocation23_spill] sm:$0xff] }
 0x24c   :  { %v2043_v11 = vadd.f32 %v6471_v25, %v1914_v61  ;;  %v2170_v21 = vmax.f32 %v2042_v48, 0.0  ;;  %v2304_v29 = vsel %vm162_vm0, %v2169_v41, 0.0  ;;  %v1542_v63 = vsel %vm162_vm0, %v4660_v7, 0.0 }
 0x24d   :  { %v1377_v22 = vmul.f32 %v4689_v39, %v6532_v45  ;;  %v2369_v52 = vsel %vm162_vm0, %v2199_v60, 0.0  ;;  %v1731_v38 = vadd.f32 %v6534_v57, %v1729_v28  ;;  %v2305_v18 = vadd.f32 %v2304_v29, %v2303_v44  ;;  %v6537_v60 = vld [vmem:[#allocation143_spill] sm:$0xff] }
 0x24e   :  { %v1543_v56 = vadd.f32 %v1542_v63, %v1541_v59  ;;  %v2368_v10 = vadd.f32 %v2367_v20, %v2366_v16  ;;  %v2371_v6 = vsel %vm162_vm0, %v2200_v27, 0.0  ;;  %v6536_v58 = vsub.f32 %v6535_v14, %v4308_v5  ;;  %v6538_v59 = vld [vmem:[#allocation25_spill] sm:$0xff] }
 0x24f   :  { %v1544_v48 = vsel %vm162_vm0, %v4743_v46, 0.0  ;;  %v1916_v41 = vmul.f32 %v4330_v23, %v1377_v22  ;;  %v2044_v0 = vadd.f32 %v6471_v25, %v1915_v3  ;;  %v1733_v45 = vadd.f32 %v6537_v60, %v1731_v38  ;;  %v6540_v22 = vld [vmem:[#allocation145_spill] sm:$0xff]  ;;  %v6541_v38 = vld [vmem:[#allocation27_spill] sm:$0xff] }
 0x250   :  { %v1378_v61 = vmul.f32 %v4689_v39, %v6536_v58  ;;  %v1545_v42 = vadd.f32 %v1544_v48, %v1543_v56  ;;  %v2171_v44 = vmax.f32 %v2043_v11, 0.0  ;;  %v2306_v16 = vsel %vm162_vm0, %v2170_v21, 0.0 }
 0x251   :  { %v1619_v27 = vmul.f32 %v6530_v2, %v6530_v2  ;;  %v1546_v20 = vsel %vm162_vm0, %v4851_v31, 0.0  ;;  %v6539_v28 = vsub.f32 %v6538_v59, %v4308_v5  ;;  %v1735_v63 = vadd.f32 %v6540_v22, %v1733_v45 }
 0x252   :  { %v2307_v3 = vadd.f32 %v2306_v16, %v2305_v18  ;;  %v1547_v57 = vadd.f32 %v1546_v20, %v1545_v42  ;;  %v6542_v11 = vsub.f32 %v6541_v38, %v4308_v5  ;;  %v1917_v56 = vmul.f32 %v4330_v23, %v1378_v61  ;;  %v5068_v42 = vpop.f32.mrf.mxu3 }
 0x253   :  { %v1379_v29 = vmul.f32 %v4689_v39, %v6539_v28  ;;  %v1620_v14 = vmul.f32 %v4660_v7, %v4660_v7  ;;  %v1548_v58 = vsel %vm162_vm0, %v4913_v40, 0.0  ;;  %v2045_v48 = vadd.f32 %v6471_v25, %v1916_v41 }
 0x254   :  { %v1380_v21 = vmul.f32 %v4689_v39, %v6542_v11  ;;  %v2172_v60 = vmax.f32 %v2044_v0, 0.0  ;;  %v1737_v45 = vadd.f32 %v4741_v55, %v1735_v63  ;;  %v1549_v18 = vadd.f32 %v1548_v58, %v1547_v57 }
 0x255   :  { %v2308_v16 = vsel %vm162_vm0, %v2171_v44, 0.0  ;;  %v1738_v20 = vsel %vm162_vm0, %v1619_v27, 0.0  ;;  %v1621_v61 = vmul.f32 %v4743_v46, %v4743_v46  ;;  %v1550_v59 = vsel %vm162_vm0, %v4971_v50, 0.0 }
 0x256   :  { %v2370_v28 = vadd.f32 %v2369_v52, %v2368_v10  ;;  %v1739_v22 = vadd.f32 %v1738_v20, %v1737_v45  ;;  %v2309_v38 = vadd.f32 %v2308_v16, %v2307_v3  ;;  %v1551_v41 = vadd.f32 %v1550_v59, %v1549_v18  ;;  %v6543_v45 = vld [vmem:[#allocation30_spill] sm:$0xff] }
 0x257   :  { %v1740_v0 = vsel %vm162_vm0, %v1620_v14, 0.0  ;;  %v1622_v55 = vmul.f32 %v4851_v31, %v4851_v31  ;;  %v1552_v44 = vsel %vm162_vm0, %v5019_v30, 0.0  ;;  %v1554_v27 = vsel %vm162_vm0, %v5068_v42, 0.0 }
 0x258   :  { %v1918_v63 = vmul.f32 %v4330_v23, %v1379_v29  ;;  %v2046_v57 = vadd.f32 %v6471_v25, %v1917_v56  ;;  %v1741_v11 = vadd.f32 %v1740_v0, %v1739_v22  ;;  %v1553_v52 = vadd.f32 %v1552_v44, %v1551_v41 }
 0x259   :  { %v2173_v10 = vmax.f32 %v2045_v48, 0.0  ;;  %v2310_v3 = vsel %vm162_vm0, %v2172_v60, 0.0  ;;  %v1742_v14 = vsel %vm162_vm0, %v1621_v61, 0.0  ;;  %v1623_v58 = vmul.f32 %v4913_v40, %v4913_v40 }
 0x25a   :  { %v6544_v18 = vsub.f32 %v6543_v45, %v4308_v5  ;;  %v2311_v20 = vadd.f32 %v2310_v3, %v2309_v38  ;;  %v1743_v59 = vadd.f32 %v1742_v14, %v1741_v11  ;;  %v1555_v29 = vadd.f32 %v1554_v27, %v1553_v52 }
 0x25b   :  { %v2372_v8 = vadd.f32 %v2371_v6, %v2370_v28  ;;  %v1919_v56 = vmul.f32 %v4330_v23, %v1380_v21  ;;  %v1744_v48 = vsel %vm162_vm0, %v1622_v55, 0.0  ;;  %v1624_v60 = vmul.f32 %v4971_v50, %v4971_v50 }
 0x25c   :  { %v1381_v16 = vmul.f32 %v4689_v39, %v6544_v18  ;;  %v2047_v61 = vadd.f32 %v6471_v25, %v1918_v63  ;;  %v2174_v22 = vmax.f32 %v2046_v57, 0.0  ;;  %v1745_v41 = vadd.f32 %v1744_v48, %v1743_v59 }
 0x25d   :  { %v1556_v0 = vrot.slane %v1555_v29, 4  ;;  %v2312_v44 = vsel %vm162_vm0, %v2173_v10, 0.0  ;;  %v1746_v45 = vsel %vm162_vm0, %v1623_v58, 0.0  ;;  %v1625_v38 = vmul.f32 %v5019_v30, %v5019_v30 }
 0x25e   :  { %v1626_v6 = vmul.f32 %v5068_v42, %v5068_v42  ;;  %v2373_v21 = vsel %vm162_vm0, %v2201_v54, 0.0  ;;  %v2313_v28 = vadd.f32 %v2312_v44, %v2311_v20  ;;  %v1747_v55 = vadd.f32 %v1746_v45, %v1745_v41 }
 0x25f   :  { %v1557_v27 = vadd.f32 %v1556_v0, %v1555_v29  ;;  %v2203_v63 = vmax.f32 %v4985_v17, 0.0  ;;  %v2374_v57 = vadd.f32 %v2373_v21, %v2372_v8  ;;  %v6545_v11 = vsub.f32 %v6441_v12, %v4308_v5 }
 0x260   :  { %v1748_v10 = vsel %vm162_vm0, %v1624_v60, 0.0  ;;  %v1920_v3 = vmul.f32 %v4330_v23, %v1381_v16  ;;  %v2048_v14 = vadd.f32 %v6471_v25, %v1919_v56  ;;  %v2175_v54 = vmax.f32 %v2047_v61, 0.0 }
 0x261   :  { %v1382_v52 = vmul.f32 %v4689_v39, %v6545_v11  ;;  %v1749_v1 = vadd.f32 %v1748_v10, %v1747_v55  ;;  %v1558_v58 = vrot.slane %v1557_v27, 2  ;;  %v2314_v18 = vsel %vm162_vm0, %v2174_v22, 0.0  ;;  %v6548_v11 = vld [vmem:[#allocation38_spill] sm:$0xff] }
 0x262   :  { %v1750_v20 = vsel %vm162_vm0, %v1625_v38, 0.0  ;;  %v1752_v17 = vsel %vm162_vm0, %v1626_v6, 0.0  ;;  %v6546_v8 = vmax.f32 %v4981_v32, 0.0  ;;  %v2315_v59 = vadd.f32 %v2314_v18, %v2313_v28 }
 0x263   :  { %v1751_v29 = vadd.f32 %v1750_v20, %v1749_v1  ;;  %v1559_v48 = vadd.f32 %v1558_v58, %v1557_v27  ;;  %v1952_v16 = vmul.f32 %v4330_v23, %v4834_v51  ;;  %v1953_v56 = vmul.f32 %v4330_v23, %v4840_v36 }
 0x264   :  { %v2375_v12 = vsel %vm162_vm0, %v6546_v8, 0.0  ;;  %v1954_v60 = vmul.f32 %v4330_v23, %v4846_v13  ;;  %v2077_v22 = vadd.f32 %v6471_v25, %v4906_v49  ;;  %v6547_v32 = vsub.f32 %v6442_v33, %v4308_v5 }
 0x265   :  { %v2376_v61 = vadd.f32 %v2375_v12, %v2374_v57  ;;  %v1560_v0 = vrot.slane %v1559_v48, 1  ;;  %v1753_v44 = vadd.f32 %v1752_v17, %v1751_v29  ;;  %v1921_v45 = vmul.f32 %v4330_v23, %v1382_v52 }
 0x266   :  { %v1383_v41 = vmul.f32 %v4689_v39, %v6547_v32  ;;  %v2049_v51 = vadd.f32 %v6471_v25, %v1920_v3  ;;  %v2176_v38 = vmax.f32 %v2048_v14, 0.0  ;;  %v2316_v36 = vsel %vm162_vm0, %v2175_v54, 0.0 }
 0x267   :  { %v2204_v13 = vmax.f32 %v4989_v15, 0.0  ;;  %v2377_v6 = vsel %vm162_vm0, %v2203_v63, 0.0  ;;  %v2317_v21 = vadd.f32 %v2316_v36, %v2315_v59  ;;  %v1754_v49 = vrot.slane %v1753_v44, 4  ;;  %v6550_v59 = vld [vmem:[#allocation40_spill] sm:$0xff] }
 0x268   :  { %v2078_v33 = vadd.f32 %v6471_v25, %v4916_v4  ;;  %v2079_v28 = vadd.f32 %v6471_v25, %v4919_v37  ;;  %v2080_v55 = vadd.f32 %v6471_v25, %v4922_v62  ;;  %v2378_v27 = vadd.f32 %v2377_v6, %v2376_v61 }
 0x269   :  { %v2081_v57 = vadd.f32 %v6471_v25, %v1952_v16  ;;  %v6549_v52 = vsub.f32 %v6548_v11, %v4308_v5  ;;  %v1561_v63 = vadd.f32 %v1560_v0, %v1559_v48  ;;  %v1755_v10 = vadd.f32 %v1754_v49, %v1753_v44  ;;  %v6552_v16 = vld [vmem:[#allocation100_spill] sm:$0xff]  ;;  %v6553_v49 = vld [vmem:[#allocation42_spill] sm:$0xff] }
 0x26a   :  { %v1922_v3 = vmul.f32 %v4330_v23, %v1383_v41  ;;  %v2050_v4 = vadd.f32 %v6471_v25, %v1921_v45  ;;  %v2177_v14 = vmax.f32 %v2049_v51, 0.0  ;;  %v2318_v37 = vsel %vm162_vm0, %v2176_v38, 0.0 }
 0x26b   :  { %v1384_v15 = vmul.f32 %v4689_v39, %v6549_v52  ;;  %v2205_v1 = vmax.f32 %v2077_v22, 0.0  ;;  %v2379_v62 = vsel %vm162_vm0, %v2204_v13, 0.0  ;;  %v2319_v58 = vadd.f32 %v2318_v37, %v2317_v21 }
 0x26c   :  { %v1756_v54 = vrot.slane %v1755_v10, 2  ;;  %v2082_v18 = vadd.f32 %v6471_v25, %v1953_v56  ;;  %v2083_v20 = vadd.f32 %v6471_v25, %v1954_v60  ;;  %v2206_v17 = vmax.f32 %v2078_v33, 0.0 }
 0x26d   :  { %v2380_v8 = vadd.f32 %v2379_v62, %v2378_v27  ;;  %v2207_v12 = vmax.f32 %v2079_v28, 0.0  ;;  %v6551_v29 = vsub.f32 %v6550_v59, %v4308_v5  ;;  %v5160_v61 = vmul.f32 %v1561_v63, %v6552_v16 }
 0x26e   :  { %v1757_v22 = vadd.f32 %v1756_v54, %v1755_v10  ;;  %v1923_v32 = vmul.f32 %v4330_v23, %v1384_v15  ;;  %v2051_v41 = vadd.f32 %v6471_v25, %v1922_v3  ;;  %v2178_v0 = vmax.f32 %v2050_v4, 0.0  ;;  %v6555_v54 = vld [vmem:[#allocation44_spill] sm:$0xff] }
 0x26f   :  { %v1385_v48 = vmul.f32 %v4689_v39, %v6551_v29  ;;  %v2320_v56 = vsel %vm162_vm0, %v2177_v14, 0.0  ;;  %v2208_v60 = vmax.f32 %v2080_v55, 0.0  ;;  %v2381_v44 = vsel %vm162_vm0, %v2205_v1, 0.0 }
 0x270   :  { %v2321_v45 = vadd.f32 %v2320_v56, %v2319_v58  ;;  %v1758_v51 = vrot.slane %v1757_v22, 1  ;;  %v2209_v38 = vmax.f32 %v2081_v57, 0.0  ;;  %v2210_v36 = vmax.f32 %v2082_v18, 0.0  ;;  %v6561_v56 = vld [vmem:[#allocation50_spill] sm:$0xff] }
 0x271   :  { %v2211_v13 = vmax.f32 %v2083_v20, 0.0  ;;  %v2382_v6 = vadd.f32 %v2381_v44, %v2380_v8  ;;  %v2383_v21 = vsel %vm162_vm0, %v2206_v17, 0.0  ;;  %v6554_v33 = vsub.f32 %v6553_v49, %v4308_v5  ;;  %v6557_v17 = vld [vmem:[#allocation46_spill] sm:$0xff] }
 0x272   :  { %v1759_v27 = vadd.f32 %v1758_v51, %v1757_v22  ;;  %v1761_v11 = vmul.f32 %v5160_v61, %v5160_v61  ;;  %v1924_v55 = vmul.f32 %v4330_v23, %v1385_v48  ;;  %v2052_v52 = vadd.f32 %v6471_v25, %v1923_v32  ;;  %v6559_v32 = vld [vmem:[#allocation48_spill] sm:$0xff] }
 0x273   :  { %v1386_v28 = vmul.f32 %v4689_v39, %v6554_v33  ;;  %v2179_v15 = vmax.f32 %v2051_v41, 0.0  ;;  %v2322_v57 = vsel %vm162_vm0, %v2178_v0, 0.0  ;;  %v2385_v63 = vsel %vm162_vm0, %v2207_v12, 0.0 }
 0x274   :  { %v2387_v10 = vsel %vm162_vm0, %v2208_v60, 0.0  ;;  %v2323_v3 = vadd.f32 %v2322_v57, %v2321_v45  ;;  %v1760_v4 = vmul.f32 %v1759_v27, %v6552_v16  ;;  %v2384_v14 = vadd.f32 %v2383_v21, %v2382_v6 }
 0x275   :  { %v2389_v37 = vsel %vm162_vm0, %v2209_v38, 0.0  ;;  %v5181_v1 = vsel %vm162_vm0, %v2210_v36, 0.0  ;;  %v5186_v58 = vsel %vm162_vm0, %v2211_v13, 0.0  ;;  %v6556_v18 = vsub.f32 %v6555_v54, %v4308_v5 }
 0x276   :  { %v6558_v8 = vsub.f32 %v6557_v17, %v4308_v5  ;;  %v1762_v59 = vsub.f32 %v1760_v4, %v1761_v11  ;;  %v1925_v29 = vmul.f32 %v4330_v23, %v1386_v28  ;;  %v2053_v48 = vadd.f32 %v6471_v25, %v1924_v55  ;;  %v6571_v4 = vld [vmem:[#allocation49_spill] sm:$0xff]  ;;  %v6573_v17 = vld [vmem:[#allocation52_spill] sm:$0xff] }
 0x277   :  { %v1387_v20 = vmul.f32 %v4689_v39, %v6556_v18  ;;  %v2180_v16 = vmax.f32 %v2052_v52, 0.0  ;;  %v2324_v22 = vsel %vm162_vm0, %v2179_v15, 0.0  ;;  %v6560_v41 = vsub.f32 %v6559_v32, %v4308_v5 }
 0x278   :  { %v1388_v12 = vmul.f32 %v4689_v39, %v6558_v8  ;;  %v6562_v60 = vsub.f32 %v6561_v56, %v4308_v5  ;;  %v2325_v45 = vadd.f32 %v2324_v22, %v2323_v3  ;;  %v1763_v51 = vmax.f32 %v1762_v59, 0.0  ;;  %v6578_v22 = vld [vmem:[#allocation61_spill] sm:$0xff] }
 0x279   :  { %v1389_v0 = vmul.f32 %v4689_v39, %v6560_v41  ;;  %v2386_v38 = vadd.f32 %v2385_v63, %v2384_v14  ;;  %v6563_v36 = vsub.f32 %v6450_v19, %v4308_v5  ;;  %v6564_v6 = vsub.f32 %v6451_v24, %v4308_v5  ;;  %v6580_v41 = vld [vmem:[#allocation64_spill] sm:$0xff] }
 0x27a   :  { %v1390_v44 = vmul.f32 %v4689_v39, %v6562_v60  ;;  %v6565_v49 = vsub.f32 %v6452_v26, %v4308_v5  ;;  %v6566_v28 = vsub.f32 %v6453_v53, %v4308_v5  ;;  %v6567_v19 = vsub.f32 %v6454_v34, %v4308_v5 }
 0x27b   :  { %v1391_v13 = vmul.f32 %v4689_v39, %v6563_v36  ;;  %v1392_v21 = vmul.f32 %v4689_v39, %v6564_v6  ;;  %v6568_v24 = vsub.f32 %v6455_v43, %v4308_v5  ;;  %v5231_v52 = vadd.f32 1e-05, %v1763_v51 }
 0x27c   :  { %v1393_v33 = vmul.f32 %v4689_v39, %v6565_v49  ;;  %v1394_v27 = vmul.f32 %v4689_v39, %v6566_v28  ;;  %v1395_v11 = vmul.f32 %v4689_v39, %v6567_v19  ;;  %v1926_v26 = vmul.f32 %v4330_v23, %v1387_v20  ;;  %v6584_v28 = vld [vmem:[#allocation69_spill] sm:$0xff] }
 0x27d   :  { %v1396_v55 = vmul.f32 %v4689_v39, %v6568_v24  ;;  %v2054_v15 = vadd.f32 %v6471_v25, %v1925_v29  ;;  %v2181_v57 = vmax.f32 %v2053_v48, 0.0  ;;  %v2326_v53 = vsel %vm162_vm0, %v2180_v16, 0.0 }
 0x27e   :  { %v6569_v63 = vsub.f32 %v3728_v35, %v4308_v5  ;;  %v6570_v3 = vsub.f32 %v3738_v47, %v4308_v5  ;;  %v6572_v14 = vsub.f32 %v6571_v4, %v4308_v5  ;;  %v2327_v18 = vadd.f32 %v2326_v53, %v2325_v45  ;;  %v6576_v47 = vld [vmem:[#allocation57_spill] sm:$0xff]  ;;  %v6582_v45 = vld [vmem:[#allocation67_spill] sm:$0xff]  ;;  %v6586_v53 = vld [vmem:[#allocation72_spill] sm:$0xff] }
 0x27f   :  { %v2388_v20 = vadd.f32 %v2387_v10, %v2386_v38  ;;  %v6574_v8 = vsub.f32 %v6573_v17, %v4308_v5  ;;  %v6575_v35 = vsub.f32 %v3816_v9, %v4308_v5  ;;  %v6577_v48 = vsub.f32 %v6576_v47, %v4308_v5  ;;  %v6588_v4 = vld [vmem:[#allocation75_spill] sm:$0xff] }
 0x280   :  { %v1416_v34 = vmul.f32 %v4689_v39, %v6569_v63  ;;  %v1417_v43 = vmul.f32 %v4689_v39, %v6570_v3  ;;  %v1418_v54 = vmul.f32 %v4689_v39, %v6572_v14  ;;  %v6579_v32 = vsub.f32 %v6578_v22, %v4308_v5 }
 0x281   :  { %v1419_v59 = vmul.f32 %v4689_v39, %v6574_v8  ;;  %v1420_v29 = vmul.f32 %v4689_v39, %v6575_v35  ;;  %v1421_v16 = vmul.f32 %v4689_v39, %v6577_v48  ;;  %v6581_v56 = vsub.f32 %v6580_v41, %v4308_v5 }
 0x282   :  { %v1422_v10 = vmul.f32 %v4689_v39, %v6579_v32  ;;  %v6583_v9 = vsub.f32 %v6582_v45, %v4308_v5  ;;  %3080 = vrsqrt.f32 %v5231_v52  ;;  %v1927_v38 = vmul.f32 %v4330_v23, %v1388_v12 }
 0x283   :  { %v1423_v60 = vmul.f32 %v4689_v39, %v6581_v56  ;;  %v2055_v36 = vadd.f32 %v6471_v25, %v1926_v26  ;;  %v2182_v6 = vmax.f32 %v2054_v15, 0.0  ;;  %v2328_v49 = vsel %vm162_vm0, %v2181_v57, 0.0  ;;  %v6590_v15 = vld [vmem:[#allocation78_spill] sm:$0xff] }
 0x284   :  { %v1424_v51 = vmul.f32 %v4689_v39, %v6583_v9  ;;  %v6585_v19 = vsub.f32 %v6584_v28, %v4308_v5  ;;  %v6587_v63 = vsub.f32 %v6586_v53, %v4308_v5  ;;  %v6589_v14 = vsub.f32 %v6588_v4, %v4308_v5 }
 0x285   :  { %v2329_v17 = vadd.f32 %v2328_v49, %v2327_v18  ;;  %v2390_v26 = vadd.f32 %v2389_v37, %v2388_v20  ;;  %v6591_v57 = vsub.f32 %v6590_v15, %v4308_v5  ;;  %v1928_v35 = vmul.f32 %v4330_v23, %v1389_v0 }
 0x286   :  { %v1425_v24 = vmul.f32 %v4689_v39, %v6585_v19  ;;  %v1426_v3 = vmul.f32 %v4689_v39, %v6587_v63  ;;  %v1427_v12 = vmul.f32 %v4689_v39, %v6589_v14  ;;  %v1929_v47 = vmul.f32 %v4330_v23, %v1390_v44 }
 0x287   :  { %v1428_v8 = vmul.f32 %v4689_v39, %v6591_v57  ;;  %v1930_v48 = vmul.f32 %v4330_v23, %v1391_v13  ;;  %v1931_v22 = vmul.f32 %v4330_v23, %v1392_v21  ;;  %v1932_v32 = vmul.f32 %v4330_v23, %v1393_v33 }
 0x288   :  { %v1933_v41 = vmul.f32 %v4330_v23, %v1394_v27  ;;  %v1934_v18 = vmul.f32 %v4330_v23, %v1395_v11  ;;  %v2056_v37 = vadd.f32 %v6471_v25, %v1927_v38  ;;  %v2183_v20 = vmax.f32 %v2055_v36, 0.0  ;;  %v5301_v39 = vpop.eup %3080 }
 0x289   :  { %v2330_v5 = vsel %vm162_vm0, %v2182_v6, 0.0  ;;  %v1935_v0 = vmul.f32 %v4330_v23, %v1396_v55  ;;  %v1955_v44 = vmul.f32 %v4330_v23, %v1416_v34  ;;  %v1956_v13 = vmul.f32 %v4330_v23, %v1417_v43 }
 0x28a   :  { %v2331_v21 = vadd.f32 %v2330_v5, %v2329_v17  ;;  %v2392_v33 = vadd.f32 %v5181_v1, %v2390_v26  ;;  %v1957_v27 = vmul.f32 %v4330_v23, %v1418_v54  ;;  %v1958_v11 = vmul.f32 %v4330_v23, %v1419_v59 }
 0x28b   :  { %v1959_v56 = vmul.f32 %v4330_v23, %v1420_v29  ;;  %v1960_v45 = vmul.f32 %v4330_v23, %v1421_v16  ;;  %v1961_v9 = vmul.f32 %v4330_v23, %v1422_v10  ;;  %v1962_v38 = vmul.f32 %v4330_v23, %v1423_v60 }
 0x28c   :  { %v1963_v55 = vmul.f32 %v4330_v23, %v1424_v51  ;;  %v2057_v34 = vadd.f32 %v6471_v25, %v1928_v35  ;;  %v2184_v43 = vmax.f32 %v2056_v37, 0.0  ;;  %v2332_v36 = vsel %vm162_vm0, %v2183_v20, 0.0 }
 0x28d   :  { %v1830_v1 = vmul.f32 %v5301_v39, %v5231_v52  ;;  %v1964_v54 = vmul.f32 %v4330_v23, %v1425_v24  ;;  %v1965_v59 = vmul.f32 %v4330_v23, %v1426_v3  ;;  %v1966_v29 = vmul.f32 %v4330_v23, %v1427_v12 }
 0x28e   :  { %v2333_v16 = vadd.f32 %v2332_v36, %v2331_v21  ;;  %v5322_v10 = vadd.f32 %v5186_v58, %v2392_v33  ;;  %v1967_v60 = vmul.f32 %v4330_v23, %v1428_v8  ;;  %v2058_v51 = vadd.f32 %v6471_v25, %v1929_v47 }
 0x28f   :  { %v2059_v6 = vadd.f32 %v6471_v25, %v1930_v48  ;;  %v2060_v49 = vadd.f32 %v6471_v25, %v1931_v22  ;;  %v2061_v28 = vadd.f32 %v6471_v25, %v1932_v32  ;;  %v2062_v19 = vadd.f32 %v6471_v25, %v1933_v41 }
 0x290   :  { %v2063_v24 = vadd.f32 %v6471_v25, %v1934_v18  ;;  %v2064_v53 = vadd.f32 %v6471_v25, %v1935_v0  ;;  %v2185_v63 = vmax.f32 %v2057_v34, 0.0  ;;  %v2334_v58 = vsel %vm162_vm0, %v2184_v43, 0.0 }
 0x291   :  { %v1831_v3 = vmul.f32 %v5301_v39, %v1830_v1  ;;  %v2084_v4 = vadd.f32 %v6471_v25, %v1955_v44  ;;  %v2085_v14 = vadd.f32 %v6471_v25, %v1956_v13  ;;  %v2086_v12 = vadd.f32 %v6471_v25, %v1957_v27 }
 0x292   :  { %v2335_v17 = vadd.f32 %v2334_v58, %v2333_v16  ;;  %v2087_v26 = vadd.f32 %v6471_v25, %v1958_v11  ;;  %v2088_v15 = vadd.f32 %v6471_v25, %v1959_v56  ;;  %v2089_v57 = vadd.f32 %v6471_v25, %v1960_v45 }
 0x293   :  { %v2090_v8 = vadd.f32 %v6471_v25, %v1961_v9  ;;  %v2091_v35 = vadd.f32 %v6471_v25, %v1962_v38  ;;  %v2092_v47 = vadd.f32 %v6471_v25, %v1963_v55  ;;  %v2093_v48 = vadd.f32 %v6471_v25, %v1964_v54 }
 0x294   :  { %v2094_v22 = vadd.f32 %v6471_v25, %v1965_v59  ;;  %v2095_v32 = vadd.f32 %v6471_v25, %v1966_v29  ;;  %v2186_v41 = vmax.f32 %v2058_v51, 0.0  ;;  %v2336_v18 = vsel %vm162_vm0, %v2185_v63, 0.0 }
 0x295   :  { %v1832_v37 = vmul.f32 0.5, %v1831_v3  ;;  %v2096_v20 = vadd.f32 %v6471_v25, %v1967_v60  ;;  %v2187_v5 = vmax.f32 %v2059_v6, 0.0  ;;  %v2188_v0 = vmax.f32 %v2060_v49, 0.0 }
 0x296   :  { %v2337_v44 = vadd.f32 %v2336_v18, %v2335_v17  ;;  %v2189_v13 = vmax.f32 %v2061_v28, 0.0  ;;  %v2190_v21 = vmax.f32 %v2062_v19, 0.0  ;;  %v2191_v33 = vmax.f32 %v2063_v24, 0.0 }
 0x297   :  { %v2192_v27 = vmax.f32 %v2064_v53, 0.0  ;;  %v2212_v11 = vmax.f32 %v2084_v4, 0.0  ;;  %v2213_v56 = vmax.f32 %v2085_v14, 0.0  ;;  %v2214_v45 = vmax.f32 %v2086_v12, 0.0 }
 0x298   :  { %v2215_v9 = vmax.f32 %v2087_v26, 0.0  ;;  %v2216_v38 = vmax.f32 %v2088_v15, 0.0  ;;  %v2217_v55 = vmax.f32 %v2089_v57, 0.0  ;;  %v2338_v34 = vsel %vm162_vm0, %v2186_v41, 0.0  ;;  %v6610_v41 = vld [vmem:[#allocation135_spill] sm:$0xff] }
 0x299   :  { %v1833_v43 = vsub.f32 1.5, %v1832_v37  ;;  %v2218_v36 = vmax.f32 %v2090_v8, 0.0  ;;  %v2219_v1 = vmax.f32 %v2091_v35, 0.0  ;;  %v2220_v54 = vmax.f32 %v2092_v47, 0.0  ;;  %v6611_v37 = vld [vmem:[#allocation16_spill] sm:$0xff] }
 0x29a   :  { %v2339_v59 = vadd.f32 %v2338_v34, %v2337_v44  ;;  %v2221_v29 = vmax.f32 %v2093_v48, 0.0  ;;  %v2222_v16 = vmax.f32 %v2094_v22, 0.0  ;;  %v2223_v60 = vmax.f32 %v2095_v32, 0.0  ;;  %v6613_v44 = vld [vmem:[#allocation41_spill] sm:$0xff] }
 0x29b   :  { %v2224_v51 = vmax.f32 %v2096_v20, 0.0  ;;  %v2340_v6 = vsel %vm162_vm0, %v2187_v5, 0.0  ;;  %v2342_v49 = vsel %vm162_vm0, %v2188_v0, 0.0  ;;  %v5352_v28 = vsel %vm162_vm0, %v2189_v13, 0.0  ;;  %v6612_v5 = vld [vmem:[#allocation37_spill] sm:$0xff] }
 0x29c   :  { %6592 = vst [vmem:[#allocation19_spill] sm:$0xff] %v5352_v28  ;;  %v5355_v19 = vsel %vm162_vm0, %v2190_v21, 0.0  ;;  %v5358_v24 = vsel %vm162_vm0, %v2191_v33, 0.0  ;;  %v5361_v53 = vsel %vm162_vm0, %v2192_v27, 0.0  ;;  %v1834_v63 = vmul.f32 %v5301_v39, %v1833_v43  ;;  %v6614_v21 = vld [vmem:[#allocation43_spill] sm:$0xff] }
 0x29d   :  { %6593 = vst [vmem:[#allocation22_spill] sm:$0xff] %v5355_v19  ;;  %vm1836_vm5 = vweird.f32 %v5301_v39  ;;  %v5366_v58 = vsel %vm162_vm0, %v2212_v11, 0.0  ;;  %v5369_v3 = vsel %vm162_vm0, %v2213_v56, 0.0  ;;  %v5372_v4 = vsel %vm162_vm0, %v2214_v45, 0.0  ;;  %v6616_v11 = vld [vmem:[#allocation47_spill] sm:$0xff]  ;;  %v6641_v19 = vld [vmem:[#allocation28_spill] sm:$0xff] }
 0x29e   :  { %6594 = vst [vmem:[#allocation26_spill] sm:$0xff] %v5358_v24  ;;  %v2341_v14 = vadd.f32 %v2340_v6, %v2339_v59  ;;  %v5375_v12 = vsel %vm162_vm0, %v2215_v9, 0.0  ;;  %v5378_v17 = vsel %vm162_vm0, %v2216_v38, 0.0  ;;  %v5381_v26 = vsel %vm162_vm0, %v2217_v55, 0.0  ;;  %v6617_v45 = vld [vmem:[#allocation51_spill] sm:$0xff]  ;;  %v6623_v6 = vld [vmem:[#allocation85_spill] sm:$0xff] }
 0x29f   :  { %6595 = vst [vmem:[#allocation29_spill] sm:$0xff] %v5361_v53  ;;  %vm1835_vm6 = vweird.f32 %v5231_v52  ;;  %v5385_v15 = vsel %vm162_vm0, %v2218_v36, 0.0  ;;  %v5388_v57 = vsel %vm162_vm0, %v2219_v1, 0.0  ;;  %v5391_v8 = vsel %vm162_vm0, %v2220_v54, 0.0  ;;  %v6618_v38 = vld [vmem:[#allocation71_spill] sm:$0xff]  ;;  %v6619_v36 = vld [vmem:[#allocation74_spill] sm:$0xff] }
 0x2a0   :  { %6596 = vst [vmem:[#allocation32_spill] sm:$0xff] %v5366_v58  ;;  %v5394_v35 = vsel %vm162_vm0, %v2221_v29, 0.0  ;;  %vm1837_vm7 = vmor %vm1835_vm6, %vm1836_vm5  ;;  %v5397_v47 = vsel %vm162_vm0, %v2222_v16, 0.0  ;;  %v5400_v48 = vsel %vm162_vm0, %v2223_v60, 0.0  ;;  %v5403_v52 = vsel %vm162_vm0, %v2224_v51, 0.0  ;;  %v6620_v54 = vld [vmem:[#allocation77_spill] sm:$0xff] }
 0x2a1   :  { %6597 = vst [vmem:[#allocation35_spill] sm:$0xff] %v5369_v3  ;;  %v5406_v22 = vsel %vm1837_vm7, %v5301_v39, %v1834_v63  ;;  %v5408_v32 = vadd.f32 %v2342_v49, %v2341_v14  ;;  %v1796_v18 = vsub.f32 %v6610_v41, %v5160_v61  ;;  %v1797_v20 = vsub.f32 %v6611_v37, %v5160_v61  ;;  %v6615_v39 = vld [vmem:[#allocation45_spill] sm:$0xff]  ;;  %v6621_v29 = vld [vmem:[#allocation80_spill] sm:$0xff]  ;;  %v6622_v60 = vld [vmem:[#allocation83_spill] sm:$0xff] }
 0x2a2   :  { %6598 = vst [vmem:[#allocation39_spill] sm:$0xff] %v5372_v4  ;;  %v1798_v0 = vsub.f32 %v6612_v5, %v5160_v61  ;;  %v1799_v13 = vsub.f32 %v6613_v44, %v5160_v61  ;;  %v1800_v33 = vsub.f32 %v6614_v21, %v5160_v61  ;;  %v1801_v27 = vsub.f32 %v6615_v39, %v5160_v61  ;;  %v6624_v63 = vld [vmem:[#allocation87_spill] sm:$0xff]  ;;  %v6625_v41 = vld [vmem:[#allocation89_spill] sm:$0xff]  ;;  %v6631_v5 = vld [vmem:[#allocation102_spill] sm:$0xff] }
 0x2a3   :  { %6599 = vst [vmem:[#allocation2_spill] sm:$0xff] %v5375_v12  ;;  %v1802_v56 = vsub.f32 %v6616_v11, %v5160_v61  ;;  %v1803_v9 = vsub.f32 %v6617_v45, %v5160_v61  ;;  %v1804_v55 = vsub.f32 %v6618_v38, %v5160_v61  ;;  %v1871_v34 = vmul.f32 %v5406_v22, %v1796_v18  ;;  %v6627_v44 = vld [vmem:[#allocation93_spill] sm:$0xff]  ;;  %v6628_v39 = vld [vmem:[#allocation95_spill] sm:$0xff]  ;;  %v6656_v58 = vld [vmem:[#allocation76_spill] sm:$0xff] }
 0x2a4   :  { %6600 = vst [vmem:[#allocation3_spill] sm:$0xff] %v5378_v17  ;;  %v1872_v43 = vmul.f32 %v5406_v22, %v1797_v20  ;;  %v1805_v1 = vsub.f32 %v6619_v36, %v5160_v61  ;;  %v1873_v37 = vmul.f32 %v5406_v22, %v1798_v0  ;;  %v6626_v20 = vld [vmem:[#allocation91_spill] sm:$0xff]  ;;  %v6629_v45 = vld [vmem:[#allocation97_spill] sm:$0xff]  ;;  %v1874_v14 = vmul.f32 %v5406_v22, %v1799_v13  ;;  %v6647_v17 = vld [vmem:[#allocation62_spill] sm:$0xff] }
 0x2a5   :  { %6601 = vst [vmem:[#allocation4_spill] sm:$0xff] %v5381_v26  ;;  %v6630_v36 = vld [vmem:[#allocation99_spill] sm:$0xff]  ;;  %v2000_v18 = vmul.f32 %v4330_v23, %v1871_v34  ;;  %v6633_v11 = vld [vmem:[#allocation129_spill] sm:$0xff]  ;;  %v1875_v34 = vmul.f32 %v5406_v22, %v1800_v33  ;;  %v1876_v62 = vmul.f32 %v5406_v22, %v1801_v27  ;;  %v1877_v27 = vmul.f32 %v5406_v22, %v1802_v56 }
 0x2a6   :  { %6602 = vst [vmem:[#allocation5_spill] sm:$0xff] %v5385_v15  ;;  %v2001_v0 = vmul.f32 %v4330_v23, %v1872_v43  ;;  %v6632_v21 = vld [vmem:[#allocation111_spill] sm:$0xff]  ;;  %v2002_v43 = vmul.f32 %v4330_v23, %v1873_v37  ;;  %v2003_v13 = vmul.f32 %v4330_v23, %v1874_v14  ;;  %v6634_v59 = vld [vmem:[#allocation81_spill] sm:$0xff]  ;;  %v1878_v49 = vmul.f32 %v5406_v22, %v1803_v9  ;;  %v6643_v9 = vld [vmem:[#allocation34_spill] sm:$0xff] }
 0x2a7   :  { %6603 = vst [vmem:[#allocation33_spill] sm:$0xff] %v5388_v57  ;;  %v2129_v33 = vadd.f32 %v6471_v25, %v2000_v18  ;;  %v6637_v53 = vld [vmem:[#allocation15_spill] sm:$0xff]  ;;  %v2004_v14 = vmul.f32 %v4330_v23, %v1875_v34  ;;  %v6639_v24 = vld [vmem:[#allocation21_spill] sm:$0xff]  ;;  %v2005_v56 = vmul.f32 %v4330_v23, %v1876_v62  ;;  %v1879_v38 = vmul.f32 %v5406_v22, %v1804_v55 }
 0x2a8   :  { %6604 = vst [vmem:[#allocation36_spill] sm:$0xff] %v5391_v8  ;;  %v2130_v37 = vadd.f32 %v6471_v25, %v2001_v0  ;;  %v2131_v18 = vadd.f32 %v6471_v25, %v2002_v43  ;;  %v6638_v0 = vld [vmem:[#allocation18_spill] sm:$0xff]  ;;  %v2132_v34 = vadd.f32 %v6471_v25, %v2003_v13  ;;  %v6642_v28 = vld [vmem:[#allocation31_spill] sm:$0xff]  ;;  %v6644_v51 = vld [vmem:[#allocation53_spill] sm:$0xff]  ;;  %v2006_v62 = vmul.f32 %v4330_v23, %v1877_v27 }
 0x2a9   :  { %6605 = vst [vmem:[#allocation54_spill] sm:$0xff] %v5394_v35  ;;  %v6640_v35 = vld [vmem:[#allocation24_spill] sm:$0xff]  ;;  %v2257_v8 = vmax.f32 %v2129_v33, 0.0  ;;  %v6645_v16 = vld [vmem:[#allocation55_spill] sm:$0xff]  ;;  %v2133_v13 = vadd.f32 %v6471_v25, %v2004_v14  ;;  %v2134_v12 = vadd.f32 %v6471_v25, %v2005_v56  ;;  %v6648_v14 = vsub.f32 %v6620_v54, %v5160_v61  ;;  %v6653_v4 = vld [vmem:[#allocation73_spill] sm:$0xff] }
 0x2aa   :  { %6606 = vst [vmem:[#allocation56_spill] sm:$0xff] %v5397_v47  ;;  %v2258_v43 = vmax.f32 %v2130_v37, 0.0  ;;  %v2259_v33 = vmax.f32 %v2131_v18, 0.0  ;;  %v1880_v37 = vmul.f32 %v5406_v22, %v1805_v1  ;;  %v2007_v47 = vmul.f32 %v4330_v23, %v1878_v49  ;;  %v6646_v26 = vld [vmem:[#allocation59_spill] sm:$0xff]  ;;  %v6649_v49 = vld [vmem:[#allocation65_spill] sm:$0xff] }
 0x2ab   :  { %6607 = vst [vmem:[#allocation58_spill] sm:$0xff] %v5400_v48  ;;  %v6636_v48 = vld [vmem:[#allocation12_spill] sm:$0xff]  ;;  %v2260_v15 = vmax.f32 %v2132_v34, 0.0  ;;  %v2496_v55 = vsel %vm162_vm0, %v2257_v8, 0.0  ;;  %v1881_v1 = vmul.f32 %v5406_v22, %v6648_v14  ;;  %v2008_v57 = vmul.f32 %v4330_v23, %v1879_v38 }
 0x2ac   :  { %6608 = vst [vmem:[#allocation60_spill] sm:$0xff] %v5403_v52  ;;  %v6635_v52 = vld [vmem:[#allocation10_spill] sm:$0xff]  ;;  %v2497_v27 = vsel %vm162_vm0, %v2258_v43, 0.0  ;;  %v2135_v56 = vadd.f32 %v6471_v25, %v2006_v62  ;;  %v2261_v34 = vmax.f32 %v2133_v13, 0.0  ;;  %v2499_v8 = vsel %vm162_vm0, %v2259_v33, 0.0 }
 0x2ad   :  { %6609 = vst [vmem:[#allocation63_spill] sm:$0xff] %v5408_v32  ;;  %v2498_v18 = vadd.f32 %v2497_v27, %v2496_v55  ;;  %v6650_v32 = vld [vmem:[#allocation68_spill] sm:$0xff]  ;;  %v6651_v43 = vsub.f32 %v6621_v29, %v5160_v61  ;;  %v6652_v55 = vld [vmem:[#allocation70_spill] sm:$0xff]  ;;  %v2009_v3 = vmul.f32 %v4330_v23, %v1880_v37  ;;  %v2136_v38 = vadd.f32 %v6471_v25, %v2007_v47 }
 0x2ae   :  { %v2262_v62 = vmax.f32 %v2134_v12, 0.0  ;;  %v2501_v13 = vsel %vm162_vm0, %v2260_v15, 0.0  ;;  %v6654_v33 = vsub.f32 %v6622_v60, %v5160_v61  ;;  %v1782_v27 = vsub.f32 %v6656_v58, %v5160_v61 }
 0x2af   :  { %v1882_v54 = vmul.f32 %v5406_v22, %v6651_v43  ;;  %v2500_v14 = vadd.f32 %v2499_v8, %v2498_v18  ;;  %v6655_v18 = vsub.f32 %v6623_v6, %v5160_v61  ;;  %v2010_v37 = vmul.f32 %v4330_v23, %v1881_v1 }
 0x2b0   :  { %v1883_v29 = vmul.f32 %v5406_v22, %v6654_v33  ;;  %v2137_v12 = vadd.f32 %v6471_v25, %v2008_v57  ;;  %v2263_v47 = vmax.f32 %v2135_v56, 0.0  ;;  %v2503_v15 = vsel %vm162_vm0, %v2261_v34, 0.0 }
 0x2b1   :  { %v1884_v8 = vmul.f32 %v5406_v22, %v6655_v18  ;;  %v2502_v43 = vadd.f32 %v2501_v13, %v2500_v14  ;;  %v6657_v60 = vsub.f32 %v6624_v63, %v5160_v61  ;;  %v6658_v6 = vsub.f32 %v6625_v41, %v5160_v61 }
 0x2b2   :  { %v6659_v13 = vsub.f32 %v6626_v20, %v5160_v61  ;;  %v2011_v57 = vmul.f32 %v4330_v23, %v1882_v54  ;;  %v2138_v56 = vadd.f32 %v6471_v25, %v2009_v3  ;;  %v2264_v34 = vmax.f32 %v2136_v38, 0.0 }
 0x2b3   :  { %v1885_v33 = vmul.f32 %v5406_v22, %v6657_v60  ;;  %v1886_v14 = vmul.f32 %v5406_v22, %v6658_v6  ;;  %v2504_v18 = vadd.f32 %v2503_v15, %v2502_v43  ;;  %v2505_v63 = vsel %vm162_vm0, %v2262_v62, 0.0 }
 0x2b4   :  { %v1887_v1 = vmul.f32 %v5406_v22, %v6659_v13  ;;  %v6660_v60 = vsub.f32 %v6627_v44, %v5160_v61  ;;  %v6661_v6 = vsub.f32 %v6628_v39, %v5160_v61  ;;  %v6662_v43 = vsub.f32 %v6629_v45, %v5160_v61 }
 0x2b5   :  { %v2506_v15 = vadd.f32 %v2505_v63, %v2504_v18  ;;  %v2012_v3 = vmul.f32 %v4330_v23, %v1883_v29  ;;  %v2139_v38 = vadd.f32 %v6471_v25, %v2010_v37  ;;  %v2265_v62 = vmax.f32 %v2137_v12, 0.0 }
 0x2b6   :  { %v1888_v41 = vmul.f32 %v5406_v22, %v6660_v60  ;;  %v1889_v20 = vmul.f32 %v5406_v22, %v6661_v6  ;;  %v1890_v54 = vmul.f32 %v5406_v22, %v6662_v43  ;;  %v2507_v44 = vsel %vm162_vm0, %v2263_v47, 0.0 }
 0x2b7   :  { %v6663_v13 = vsub.f32 %v6630_v36, %v5160_v61  ;;  %v6664_v60 = vsub.f32 %v6631_v5, %v5160_v61  ;;  %v6665_v18 = vsub.f32 %v6632_v21, %v5160_v61  ;;  %v2508_v63 = vadd.f32 %v2507_v44, %v2506_v15 }
 0x2b8   :  { %v2013_v37 = vmul.f32 %v4330_v23, %v1884_v8  ;;  %v2140_v12 = vadd.f32 %v6471_v25, %v2011_v57  ;;  %v2266_v47 = vmax.f32 %v2138_v56, 0.0  ;;  %v2509_v36 = vsel %vm162_vm0, %v2264_v34, 0.0 }
 0x2b9   :  { %v1891_v39 = vmul.f32 %v5406_v22, %v6663_v13  ;;  %v1892_v45 = vmul.f32 %v5406_v22, %v6664_v60  ;;  %v1893_v29 = vmul.f32 %v5406_v22, %v6665_v18  ;;  %v6666_v6 = vsub.f32 %v6633_v11, %v5160_v61 }
 0x2ba   :  { %v6667_v43 = vsub.f32 %v6530_v2, %v5160_v61  ;;  %v6668_v15 = vsub.f32 %v4660_v7, %v5160_v61  ;;  %v2510_v44 = vadd.f32 %v2509_v36, %v2508_v63  ;;  %v2014_v57 = vmul.f32 %v4330_v23, %v1885_v33 }
 0x2bb   :  { %v1894_v5 = vmul.f32 %v5406_v22, %v6666_v6  ;;  %v2141_v56 = vadd.f32 %v6471_v25, %v2012_v3  ;;  %v2267_v34 = vmax.f32 %v2139_v38, 0.0  ;;  %v2511_v11 = vsel %vm162_vm0, %v2265_v62, 0.0 }
 0x2bc   :  { %v1895_v21 = vmul.f32 %v5406_v22, %v6667_v43  ;;  %v1896_v8 = vmul.f32 %v5406_v22, %v6668_v15  ;;  %v6669_v13 = vsub.f32 %v4743_v46, %v5160_v61  ;;  %v6670_v60 = vsub.f32 %v4851_v31, %v5160_v61 }
 0x2bd   :  { %v6671_v18 = vsub.f32 %v4913_v40, %v5160_v61  ;;  %v2512_v63 = vadd.f32 %v2511_v11, %v2510_v44  ;;  %v2015_v3 = vmul.f32 %v4330_v23, %v1886_v14  ;;  %v2142_v38 = vadd.f32 %v6471_v25, %v2013_v37 }
 0x2be   :  { %v1897_v2 = vmul.f32 %v5406_v22, %v6669_v13  ;;  %v1898_v7 = vmul.f32 %v5406_v22, %v6670_v60  ;;  %v2268_v62 = vmax.f32 %v2140_v12, 0.0  ;;  %v2513_v46 = vsel %vm162_vm0, %v2266_v47, 0.0 }
 0x2bf   :  { %v1899_v33 = vmul.f32 %v5406_v22, %v6671_v18  ;;  %v6672_v36 = vsub.f32 %v4971_v50, %v5160_v61  ;;  %v6673_v6 = vsub.f32 %v5019_v30, %v5160_v61  ;;  %v6674_v43 = vsub.f32 %v5068_v42, %v5160_v61 }
 0x2c0   :  { %v2514_v15 = vadd.f32 %v2513_v46, %v2512_v63  ;;  %v2016_v37 = vmul.f32 %v4330_v23, %v1887_v1  ;;  %v2143_v12 = vadd.f32 %v6471_v25, %v2014_v57  ;;  %v2269_v47 = vmax.f32 %v2141_v56, 0.0 }
 0x2c1   :  { %v1900_v31 = vmul.f32 %v5406_v22, %v6672_v36  ;;  %v1901_v40 = vmul.f32 %v5406_v22, %v6673_v6  ;;  %v1902_v14 = vmul.f32 %v5406_v22, %v6674_v43  ;;  %v2515_v50 = vsel %vm162_vm0, %v2267_v34, 0.0 }
 0x2c2   :  { %v2017_v44 = vmul.f32 %v4330_v23, %v1888_v41  ;;  %v2018_v11 = vmul.f32 %v4330_v23, %v1889_v20  ;;  %v2019_v30 = vmul.f32 %v4330_v23, %v1890_v54  ;;  %v2516_v13 = vadd.f32 %v2515_v50, %v2514_v15 }
 0x2c3   :  { %v2020_v60 = vmul.f32 %v4330_v23, %v1891_v39  ;;  %v2144_v42 = vadd.f32 %v6471_v25, %v2015_v3  ;;  %v2270_v18 = vmax.f32 %v2142_v38, 0.0  ;;  %v2517_v63 = vsel %vm162_vm0, %v2268_v62, 0.0 }
 0x2c4   :  { %v2021_v1 = vmul.f32 %v4330_v23, %v1892_v45  ;;  %v2022_v57 = vmul.f32 %v4330_v23, %v1893_v29  ;;  %v2023_v56 = vmul.f32 %v4330_v23, %v1894_v5  ;;  %v2518_v34 = vadd.f32 %v2517_v63, %v2516_v13 }
 0x2c5   :  { %v2024_v41 = vmul.f32 %v4330_v23, %v1895_v21  ;;  %v2145_v20 = vadd.f32 %v6471_v25, %v2016_v37  ;;  %v2271_v54 = vmax.f32 %v2143_v12, 0.0  ;;  %v2519_v46 = vsel %vm162_vm0, %v2269_v47, 0.0 }
 0x2c6   :  { %v2025_v39 = vmul.f32 %v4330_v23, %v1896_v8  ;;  %v2026_v3 = vmul.f32 %v4330_v23, %v1897_v2  ;;  %v2027_v38 = vmul.f32 %v4330_v23, %v1898_v7  ;;  %v2520_v62 = vadd.f32 %v2519_v46, %v2518_v34 }
 0x2c7   :  { %v2028_v45 = vmul.f32 %v4330_v23, %v1899_v33  ;;  %v2146_v29 = vadd.f32 %v6471_v25, %v2017_v44  ;;  %v2272_v5 = vmax.f32 %v2144_v42, 0.0  ;;  %v2521_v36 = vsel %vm162_vm0, %v2270_v18, 0.0 }
 0x2c8   :  { %v2029_v21 = vmul.f32 %v4330_v23, %v1900_v31  ;;  %v2030_v6 = vmul.f32 %v4330_v23, %v1901_v40  ;;  %v2031_v43 = vmul.f32 %v4330_v23, %v1902_v14  ;;  %v2522_v15 = vadd.f32 %v2521_v36, %v2520_v62 }
 0x2c9   :  { %v2147_v8 = vadd.f32 %v6471_v25, %v2018_v11  ;;  %v2148_v2 = vadd.f32 %v6471_v25, %v2019_v30  ;;  %v2273_v7 = vmax.f32 %v2145_v20, 0.0  ;;  %v2523_v37 = vsel %vm162_vm0, %v2271_v54, 0.0 }
 0x2ca   :  { %v2149_v33 = vadd.f32 %v6471_v25, %v2020_v60  ;;  %v2150_v12 = vadd.f32 %v6471_v25, %v2021_v1  ;;  %v2151_v47 = vadd.f32 %v6471_v25, %v2022_v57  ;;  %v2524_v50 = vadd.f32 %v2523_v37, %v2522_v15 }
 0x2cb   :  { %v2152_v31 = vadd.f32 %v6471_v25, %v2023_v56  ;;  %v5680_v40 = vadd.f32 %v6471_v25, %v2024_v41  ;;  %v2274_v14 = vmax.f32 %v2146_v29, 0.0  ;;  %v2525_v44 = vsel %vm162_vm0, %v2272_v5, 0.0  ;;  %v16_v29 = vld [vmem:[%s6067_s1 + $0x28] sm:$0xff] }
 0x2cc   :  { %v2154_v11 = vadd.f32 %v6471_v25, %v2025_v39  ;;  %v2155_v30 = vadd.f32 %v6471_v25, %v2026_v3  ;;  %v2526_v13 = vadd.f32 %v2525_v44, %v2524_v50  ;;  %v6675_v60 = vsub.f32 %v6634_v59, %v5160_v61  ;;  %2602 = vmatpush.msrb.mxu1 %v16_v29 }
 0x2cd   :  { %v5690_v18 = vadd.f32 %v6471_v25, %v2027_v38  ;;  %v2275_v63 = vmax.f32 %v2147_v8, 0.0  ;;  %v2527_v1 = vsel %vm162_vm0, %v2273_v7, 0.0  ;;  %v6676_v57 = vsub.f32 %v6635_v52, %v5160_v61 }
 0x2ce   :  { %v1839_v42 = vmul.f32 %v5406_v22, %v6675_v60  ;;  %v5698_v34 = vadd.f32 %v6471_v25, %v2028_v45  ;;  %v5701_v41 = vadd.f32 %v6471_v25, %v2029_v21  ;;  %v5704_v59 = vadd.f32 %v6471_v25, %v2030_v6 }
 0x2cf   :  { %v1840_v56 = vmul.f32 %v5406_v22, %v6676_v57  ;;  %v2528_v20 = vadd.f32 %v2527_v1, %v2526_v13  ;;  %v5707_v54 = vadd.f32 %v6471_v25, %v2031_v43  ;;  %v2276_v46 = vmax.f32 %v2148_v2, 0.0 }
 0x2d0   :  { %v2529_v39 = vsel %vm162_vm0, %v2274_v14, 0.0  ;;  %v6677_v52 = vsub.f32 %v6636_v48, %v5160_v61  ;;  %v2277_v38 = vmax.f32 %v2149_v33, 0.0  ;;  %v2278_v62 = vmax.f32 %v2150_v12, 0.0 }
 0x2d1   :  { %v2530_v45 = vadd.f32 %v2529_v39, %v2528_v20  ;;  %v1968_v5 = vmul.f32 %v4330_v23, %v1839_v42  ;;  %v2279_v36 = vmax.f32 %v2151_v47, 0.0  ;;  %v2531_v21 = vsel %vm162_vm0, %v2275_v63, 0.0 }
 0x2d2   :  { %v1841_v3 = vmul.f32 %v5406_v22, %v6677_v52  ;;  %v6678_v6 = vsub.f32 %v6637_v53, %v5160_v61  ;;  %v1969_v48 = vmul.f32 %v4330_v23, %v1840_v56  ;;  %v2280_v15 = vmax.f32 %v2152_v31, 0.0 }
 0x2d3   :  { %v2281_v8 = vmax.f32 %v5680_v40, 0.0  ;;  %v2282_v2 = vmax.f32 %v2154_v11, 0.0  ;;  %v2532_v7 = vadd.f32 %v2531_v21, %v2530_v45  ;;  %v2283_v37 = vmax.f32 %v2155_v30, 0.0 }
 0x2d4   :  { %v1842_v43 = vmul.f32 %v5406_v22, %v6678_v6  ;;  %v2533_v33 = vsel %vm162_vm0, %v2276_v46, 0.0  ;;  %v6679_v12 = vsub.f32 %v6638_v0, %v5160_v61  ;;  %v1970_v53 = vmul.f32 %v4330_v23, %v1841_v3 }
 0x2d5   :  { %v2284_v50 = vmax.f32 %v5690_v18, 0.0  ;;  %v2285_v14 = vmax.f32 %v5698_v34, 0.0  ;;  %v2534_v44 = vadd.f32 %v2533_v33, %v2532_v7  ;;  %v2097_v31 = vadd.f32 %v6471_v25, %v1968_v5 }
 0x2d6   :  { %v1843_v47 = vmul.f32 %v5406_v22, %v6679_v12  ;;  %v2535_v40 = vsel %vm162_vm0, %v2277_v38, 0.0  ;;  %v6680_v11 = vsub.f32 %v6639_v24, %v5160_v61  ;;  %v1971_v0 = vmul.f32 %v4330_v23, %v1842_v43 }
 0x2d7   :  { %v2098_v13 = vadd.f32 %v6471_v25, %v1969_v48  ;;  %v2286_v60 = vmax.f32 %v5701_v41, 0.0  ;;  %v2287_v42 = vmax.f32 %v5704_v59, 0.0  ;;  %v2288_v18 = vmax.f32 %v5707_v54, 0.0 }
 0x2d8   :  { %v1844_v30 = vmul.f32 %v5406_v22, %v6680_v11  ;;  %v2536_v63 = vadd.f32 %v2535_v40, %v2534_v44  ;;  %v2537_v1 = vsel %vm162_vm0, %v2278_v62, 0.0  ;;  %v6681_v57 = vsub.f32 %v6640_v35, %v5160_v61 }
 0x2d9   :  { %v1972_v56 = vmul.f32 %v4330_v23, %v1843_v47  ;;  %v2099_v34 = vadd.f32 %v6471_v25, %v1970_v53  ;;  %v2539_v46 = vsel %vm162_vm0, %v2279_v36, 0.0  ;;  %v2541_v41 = vsel %vm162_vm0, %v2280_v15, 0.0 }
 0x2da   :  { %v1845_v24 = vmul.f32 %v5406_v22, %v6681_v57  ;;  %v2538_v20 = vadd.f32 %v2537_v1, %v2536_v63  ;;  %v2225_v59 = vmax.f32 %v2097_v31, 0.0  ;;  %v6682_v54 = vsub.f32 %v6641_v19, %v5160_v61 }
 0x2db   :  { %v1973_v52 = vmul.f32 %v4330_v23, %v1844_v30  ;;  %v2100_v35 = vadd.f32 %v6471_v25, %v1971_v0  ;;  %v2226_v3 = vmax.f32 %v2098_v13, 0.0  ;;  %v2543_v62 = vsel %vm162_vm0, %v2281_v8, 0.0 }
 0x2dc   :  { %v1846_v39 = vmul.f32 %v5406_v22, %v6682_v54  ;;  %v2540_v38 = vadd.f32 %v2539_v46, %v2538_v20  ;;  %v2545_v45 = vsel %vm162_vm0, %v2282_v2, 0.0  ;;  %v2547_v29 = vsel %vm162_vm0, %v2283_v37, 0.0 }
 0x2dd   :  { %v6683_v5 = vsub.f32 %v6642_v28, %v5160_v61  ;;  %v1974_v19 = vmul.f32 %v4330_v23, %v1845_v24  ;;  %v2101_v21 = vadd.f32 %v6471_v25, %v1972_v56  ;;  %v2227_v6 = vmax.f32 %v2099_v34, 0.0 }
 0x2de   :  { %v2542_v43 = vadd.f32 %v2541_v41, %v2540_v38  ;;  %v2549_v48 = vsel %vm162_vm0, %v2284_v50, 0.0  ;;  %v6684_v15 = vsub.f32 %v6643_v9, %v5160_v61  ;;  %v2427_v2 = vsel %vm162_vm0, %v2225_v59, 0.0 }
 0x2df   :  { %v1847_v36 = vmul.f32 %v5406_v22, %v6683_v5  ;;  %v1975_v7 = vmul.f32 %v4330_v23, %v1846_v39  ;;  %v2102_v28 = vadd.f32 %v6471_v25, %v1973_v52  ;;  %v2228_v37 = vmax.f32 %v2100_v35, 0.0 }
 0x2e0   :  { %v1848_v8 = vmul.f32 %v5406_v22, %v6684_v15  ;;  %v2428_v33 = vsel %vm162_vm0, %v2226_v3, 0.0  ;;  %v2544_v12 = vadd.f32 %v2543_v62, %v2542_v43  ;;  %v2551_v47 = vsel %vm162_vm0, %v2285_v14, 0.0  ;;  %v6690_v43 = vld [vmem:[#allocation32_spill] sm:$0xff] }
 0x2e1   :  { %v6685_v53 = vsub.f32 %v6644_v51, %v5160_v61  ;;  %v2429_v9 = vadd.f32 %v2428_v33, %v2427_v2  ;;  %v1976_v44 = vmul.f32 %v4330_v23, %v1847_v36  ;;  %v2103_v31 = vadd.f32 %v6471_v25, %v1974_v19 }
 0x2e2   :  { %v2229_v40 = vmax.f32 %v2101_v21, 0.0  ;;  %v2430_v11 = vsel %vm162_vm0, %v2227_v6, 0.0  ;;  %v2546_v30 = vadd.f32 %v2545_v45, %v2544_v12  ;;  %v2553_v0 = vsel %vm162_vm0, %v2286_v60, 0.0  ;;  %v6692_v12 = vld [vmem:[#allocation35_spill] sm:$0xff] }
 0x2e3   :  { %v1849_v50 = vmul.f32 %v5406_v22, %v6685_v53  ;;  %v6686_v13 = vsub.f32 %v6645_v16, %v5160_v61  ;;  %v2431_v63 = vadd.f32 %v2430_v11, %v2429_v9  ;;  %v1977_v51 = vmul.f32 %v4330_v23, %v1848_v8  ;;  %v6694_v11 = vld [vmem:[#allocation39_spill] sm:$0xff] }
 0x2e4   :  { %v2104_v1 = vadd.f32 %v6471_v25, %v1975_v7  ;;  %v2230_v57 = vmax.f32 %v2102_v28, 0.0  ;;  %v2432_v24 = vsel %vm162_vm0, %v2228_v37, 0.0  ;;  %v2548_v56 = vadd.f32 %v2547_v29, %v2546_v30 }
 0x2e5   :  { %v1850_v14 = vmul.f32 %v5406_v22, %v6686_v13  ;;  %v2555_v34 = vsel %vm162_vm0, %v2287_v42, 0.0  ;;  %v6687_v20 = vsub.f32 %v6646_v26, %v5160_v61  ;;  %v2433_v46 = vadd.f32 %v2432_v24, %v2431_v63  ;;  %v6696_v24 = vld [vmem:[#allocation2_spill] sm:$0xff] }
 0x2e6   :  { %v1978_v16 = vmul.f32 %v4330_v23, %v1849_v50  ;;  %v2105_v41 = vadd.f32 %v6471_v25, %v1976_v44  ;;  %v2231_v59 = vmax.f32 %v2103_v31, 0.0  ;;  %v2434_v54 = vsel %vm162_vm0, %v2229_v40, 0.0 }
 0x2e7   :  { %v1851_v60 = vmul.f32 %v5406_v22, %v6687_v20  ;;  %v2550_v39 = vadd.f32 %v2549_v48, %v2548_v56  ;;  %v2557_v52 = vsel %vm162_vm0, %v2288_v18, 0.0  ;;  %v6688_v35 = vsub.f32 %v6647_v17, %v5160_v61 }
 0x2e8   :  { %v2435_v3 = vadd.f32 %v2434_v54, %v2433_v46  ;;  %v1979_v26 = vmul.f32 %v4330_v23, %v1850_v14  ;;  %v2106_v38 = vadd.f32 %v6471_v25, %v1977_v51  ;;  %v2232_v62 = vmax.f32 %v2104_v1, 0.0  ;;  %v6698_v54 = vld [vmem:[#allocation3_spill] sm:$0xff] }
 0x2e9   :  { %v1852_v42 = vmul.f32 %v5406_v22, %v6688_v35  ;;  %v2436_v45 = vsel %vm162_vm0, %v2230_v57, 0.0  ;;  %v2552_v29 = vadd.f32 %v2551_v47, %v2550_v39  ;;  %v6689_v5 = vsub.f32 %v6649_v49, %v5160_v61 }
 0x2ea   :  { %v1980_v18 = vmul.f32 %v4330_v23, %v1851_v60  ;;  %v2437_v19 = vadd.f32 %v2436_v45, %v2435_v3  ;;  %v2107_v17 = vadd.f32 %v6471_v25, %v1978_v16  ;;  %v2233_v21 = vmax.f32 %v2105_v41, 0.0 }
 0x2eb   :  { %v1853_v36 = vmul.f32 %v5406_v22, %v6689_v5  ;;  %v2438_v6 = vsel %vm162_vm0, %v2231_v59, 0.0  ;;  %v2396_v48 = vadd.f32 %v6690_v43, %v5322_v10  ;;  %v2554_v15 = vadd.f32 %v2553_v0, %v2552_v29  ;;  %v6701_v29 = vld [vmem:[#allocation84_spill] sm:$0xff]  ;;  %v6702_v43 = vld [vmem:[#allocation5_spill] sm:$0xff] }
 0x2ec   :  { %v6691_v8 = vsub.f32 %v6650_v32, %v5160_v61  ;;  %v1981_v49 = vmul.f32 %v4330_v23, %v1852_v42  ;;  %v2439_v7 = vadd.f32 %v2438_v6, %v2437_v19  ;;  %v2108_v28 = vadd.f32 %v6471_v25, %v1979_v26 }
 0x2ed   :  { %v2234_v37 = vmax.f32 %v2106_v38, 0.0  ;;  %v2440_v33 = vsel %vm162_vm0, %v2232_v62, 0.0  ;;  %v2398_v47 = vadd.f32 %v6692_v12, %v2396_v48  ;;  %v2556_v53 = vadd.f32 %v2555_v34, %v2554_v15  ;;  %v6697_v34 = vld [vmem:[#allocation79_spill] sm:$0xff]  ;;  %v6700_v62 = vld [vmem:[#allocation4_spill] sm:$0xff]  ;;  %v6703_v15 = vld [vmem:[#allocation86_spill] sm:$0xff] }
 0x2ee   :  { %v1854_v2 = vmul.f32 %v5406_v22, %v6691_v8  ;;  %v6693_v10 = vsub.f32 %v6652_v55, %v5160_v61  ;;  %v1982_v32 = vmul.f32 %v4330_v23, %v1853_v36  ;;  %v2441_v9 = vadd.f32 %v2440_v33, %v2439_v7  ;;  %v6704_v12 = vld [vmem:[#allocation33_spill] sm:$0xff] }
 0x2ef   :  { %v2109_v44 = vadd.f32 %v6471_v25, %v1980_v18  ;;  %v2235_v31 = vmax.f32 %v2107_v17, 0.0  ;;  %v2442_v40 = vsel %vm162_vm0, %v2233_v21, 0.0  ;;  %v2400_v30 = vadd.f32 %v6694_v11, %v2398_v47 }
 0x2f0   :  { %v1855_v50 = vmul.f32 %v5406_v22, %v6693_v10  ;;  %v5834_v0 = vadd.f32 %v2557_v52, %v2556_v53  ;;  %v6695_v13 = vsub.f32 %v6653_v4, %v5160_v61  ;;  %v1983_v55 = vmul.f32 %v4330_v23, %v1854_v2  ;;  %v6699_v52 = vld [vmem:[#allocation82_spill] sm:$0xff]  ;;  %v6705_v53 = vld [vmem:[#allocation63_spill] sm:$0xff] }
 0x2f1   :  { %v2443_v63 = vadd.f32 %v2442_v40, %v2441_v9  ;;  %v2110_v51 = vadd.f32 %v6471_v25, %v1981_v49  ;;  %v2236_v1 = vmax.f32 %v2108_v28, 0.0  ;;  %v2444_v57 = vsel %vm162_vm0, %v2234_v37, 0.0  ;;  %v6706_v10 = vld [vmem:[#allocation19_spill] sm:$0xff] }
 0x2f2   :  { %v1856_v14 = vmul.f32 %v5406_v22, %v6695_v13  ;;  %v2402_v56 = vadd.f32 %v6696_v24, %v2400_v30  ;;  %v1783_v20 = vsub.f32 %v6697_v34, %v5160_v61  ;;  %v1857_v4 = vmul.f32 %v5406_v22, %v1782_v27  ;;  %v6709_v34 = vld [vmem:[#allocation36_spill] sm:$0xff] }
 0x2f3   :  { %v1984_v60 = vmul.f32 %v4330_v23, %v1855_v50  ;;  %v2445_v46 = vadd.f32 %v2444_v57, %v2443_v63  ;;  %v2111_v16 = vadd.f32 %v6471_v25, %v1982_v32  ;;  %v2237_v41 = vmax.f32 %v2109_v44, 0.0  ;;  %v6707_v32 = vld [vmem:[#allocation88_spill] sm:$0xff] }
 0x2f4   :  { %v2446_v59 = vsel %vm162_vm0, %v2235_v31, 0.0  ;;  %v2404_v39 = vadd.f32 %v6698_v54, %v2402_v56  ;;  %v1784_v35 = vsub.f32 %v6699_v52, %v5160_v61  ;;  %v1858_v42 = vmul.f32 %v5406_v22, %v1783_v20 }
 0x2f5   :  { %v1985_v3 = vmul.f32 %v4330_v23, %v1856_v14  ;;  %v2447_v58 = vadd.f32 %v2446_v59, %v2445_v46  ;;  %v2112_v27 = vadd.f32 %v6471_v25, %v1983_v55  ;;  %v2238_v26 = vmax.f32 %v2110_v51, 0.0  ;;  %v6708_v14 = vld [vmem:[#allocation90_spill] sm:$0xff]  ;;  %v6711_v46 = vld [vmem:[#allocation92_spill] sm:$0xff] }
 0x2f6   :  { %v2448_v38 = vsel %vm162_vm0, %v2236_v1, 0.0  ;;  %v2406_v45 = vadd.f32 %v6700_v62, %v2404_v39  ;;  %v1785_v5 = vsub.f32 %v6701_v29, %v5160_v61  ;;  %v1859_v36 = vmul.f32 %v5406_v22, %v1784_v35  ;;  %v6713_v29 = vld [vmem:[#allocation54_spill] sm:$0xff] }
 0x2f7   :  { %v1986_v18 = vmul.f32 %v4330_v23, %v1857_v4  ;;  %v2449_v19 = vadd.f32 %v2448_v38, %v2447_v58  ;;  %v2113_v17 = vadd.f32 %v6471_v25, %v1984_v60  ;;  %v2239_v21 = vmax.f32 %v2111_v16, 0.0  ;;  %v6710_v4 = vld [vmem:[#allocation22_spill] sm:$0xff] }
 0x2f8   :  { %v2450_v6 = vsel %vm162_vm0, %v2237_v41, 0.0  ;;  %v2408_v48 = vadd.f32 %v6702_v43, %v2406_v45  ;;  %v1786_v8 = vsub.f32 %v6703_v15, %v5160_v61  ;;  %v1860_v2 = vmul.f32 %v5406_v22, %v1785_v5 }
 0x2f9   :  { %v1987_v49 = vmul.f32 %v4330_v23, %v1858_v42  ;;  %v2451_v7 = vadd.f32 %v2450_v6, %v2449_v19  ;;  %v2114_v28 = vadd.f32 %v6471_v25, %v1985_v3  ;;  %v2240_v37 = vmax.f32 %v2112_v27, 0.0  ;;  %v6712_v42 = vld [vmem:[#allocation94_spill] sm:$0xff]  ;;  %v6715_v19 = vld [vmem:[#allocation96_spill] sm:$0xff] }
 0x2fa   :  { %v2452_v33 = vsel %vm162_vm0, %v2238_v26, 0.0  ;;  %v2410_v47 = vadd.f32 %v6704_v12, %v2408_v48  ;;  %v2345_v50 = vadd.f32 %v6706_v10, %v6705_v53  ;;  %v1787_v9 = vsub.f32 %v6707_v32, %v5160_v61  ;;  %v15_v12 = vld [vmem:[%s6067_s1 + $0x20] sm:$0xff]  ;;  %v6717_v32 = vld [vmem:[#allocation56_spill] sm:$0xff] }
 0x2fb   :  { %v1861_v44 = vmul.f32 %v5406_v22, %v1786_v8  ;;  %v2453_v31 = vadd.f32 %v2452_v33, %v2451_v7  ;;  %v1988_v40 = vmul.f32 %v4330_v23, %v1859_v36  ;;  %v2115_v11 = vadd.f32 %v6471_v25, %v1986_v18  ;;  %v6714_v36 = vld [vmem:[#allocation26_spill] sm:$0xff]  ;;  %v22_v33 = vld [vmem:[%s6067_s1 + $0x58] sm:$0xff]  ;;  %2603 = vmatpush.msrb.mxu1 %v15_v12 }
 0x2fc   :  { %v2241_v30 = vmax.f32 %v2113_v17, 0.0  ;;  %v2454_v13 = vsel %vm162_vm0, %v2239_v21, 0.0  ;;  %v1788_v55 = vsub.f32 %v6708_v14, %v5160_v61  ;;  %v1862_v63 = vmul.f32 %v5406_v22, %v1787_v9  ;;  %2710 = vmatpush.msrb.mxu2 %v22_v33 }
 0x2fd   :  { %v1989_v51 = vmul.f32 %v4330_v23, %v1860_v2  ;;  %v2455_v1 = vadd.f32 %v2454_v13, %v2453_v31  ;;  %v2116_v57 = vadd.f32 %v6471_v25, %v1987_v49  ;;  %v2242_v24 = vmax.f32 %v2114_v28, 0.0  ;;  %v6716_v2 = vld [vmem:[#allocation98_spill] sm:$0xff] }
 0x2fe   :  { %v2456_v56 = vsel %vm162_vm0, %v2240_v37, 0.0  ;;  %v2412_v20 = vadd.f32 %v6709_v34, %v2410_v47  ;;  %v2347_v60 = vadd.f32 %v6710_v4, %v2345_v50  ;;  %v1789_v16 = vsub.f32 %v6711_v46, %v5160_v61  ;;  %v21_v47 = vld [vmem:[%s6067_s1 + $0x50] sm:$0xff]  ;;  %v6721_v46 = vld [vmem:[#allocation58_spill] sm:$0xff] }
 0x2ff   :  { %v1863_v41 = vmul.f32 %v5406_v22, %v1788_v55  ;;  %v2457_v59 = vadd.f32 %v2456_v56, %v2455_v1  ;;  %v1990_v54 = vmul.f32 %v4330_v23, %v1861_v44  ;;  %v2117_v39 = vadd.f32 %v6471_v25, %v1988_v40  ;;  %v6718_v44 = vld [vmem:[#allocation29_spill] sm:$0xff]  ;;  %2711 = vmatpush.msrb.mxu2 %v21_v47  ;;  %v6720_v1 = vld [vmem:[#allocation103_spill] sm:$0xff] }
 0x300   :  { %v2243_v52 = vmax.f32 %v2115_v11, 0.0  ;;  %v2458_v35 = vsel %vm162_vm0, %v2241_v30, 0.0  ;;  %v1790_v3 = vsub.f32 %v6712_v42, %v5160_v61  ;;  %v1864_v58 = vmul.f32 %v5406_v22, %v1789_v16  ;;  %v6719_v40 = vld [vmem:[#allocation101_spill] sm:$0xff] }
 0x301   :  { %v1991_v27 = vmul.f32 %v4330_v23, %v1862_v63  ;;  %v2459_v26 = vadd.f32 %v2458_v35, %v2457_v59  ;;  %v2118_v38 = vadd.f32 %v6471_v25, %v1989_v51  ;;  %v2244_v62 = vmax.f32 %v2116_v57, 0.0 }
 0x302   :  { %v2460_v45 = vsel %vm162_vm0, %v2242_v24, 0.0  ;;  %v2414_v5 = vadd.f32 %v6713_v29, %v2412_v20  ;;  %v2349_v18 = vadd.f32 %v6714_v36, %v2347_v60  ;;  %v1791_v17 = vsub.f32 %v6715_v19, %v5160_v61 }
 0x303   :  { %v1865_v21 = vmul.f32 %v5406_v22, %v1790_v3  ;;  %v2461_v6 = vadd.f32 %v2460_v45, %v2459_v26  ;;  %v1992_v43 = vmul.f32 %v4330_v23, %v1863_v41  ;;  %v2119_v48 = vadd.f32 %v6471_v25, %v1990_v54  ;;  %v6722_v41 = vld [vmem:[#allocation118_spill] sm:$0xff]  ;;  %v6723_v45 = vld [vmem:[#allocation60_spill] sm:$0xff] }
 0x304   :  { %v2245_v15 = vmax.f32 %v2117_v39, 0.0  ;;  %v2462_v8 = vsel %vm162_vm0, %v2243_v52, 0.0  ;;  %v1792_v49 = vsub.f32 %v6716_v2, %v5160_v61  ;;  %v1866_v7 = vmul.f32 %v5406_v22, %v1791_v17 }
 0x305   :  { %v1993_v28 = vmul.f32 %v4330_v23, %v1864_v58  ;;  %v2463_v37 = vadd.f32 %v2462_v8, %v2461_v6  ;;  %v2120_v53 = vadd.f32 %v6471_v25, %v1991_v27  ;;  %v2246_v10 = vmax.f32 %v2118_v38, 0.0  ;;  %v30_v8 = vld [vmem:[%s6067_s1 + $0x98] sm:$0xff] }
 0x306   :  { %v2464_v50 = vsel %vm162_vm0, %v2244_v62, 0.0  ;;  %v2416_v9 = vadd.f32 %v6717_v32, %v2414_v5  ;;  %v2351_v31 = vadd.f32 %v6718_v44, %v2349_v18  ;;  %v1793_v11 = vsub.f32 %v6719_v40, %v5160_v61  ;;  %2803 = vmatpush.msrb.mxu3 %v30_v8 }
 0x307   :  { %v1867_v30 = vmul.f32 %v5406_v22, %v1792_v49  ;;  %v2465_v13 = vadd.f32 %v2464_v50, %v2463_v37  ;;  %v1994_v14 = vmul.f32 %v4330_v23, %v1865_v21  ;;  %v2121_v55 = vadd.f32 %v6471_v25, %v1992_v43 }
 0x308   :  { %v2247_v63 = vmax.f32 %v2119_v48, 0.0  ;;  %v2466_v51 = vsel %vm162_vm0, %v2245_v15, 0.0  ;;  %v1794_v57 = vsub.f32 %v6720_v1, %v5160_v61  ;;  %v1868_v24 = vmul.f32 %v5406_v22, %v1793_v11  ;;  %v20_v48 = vld [vmem:[%s6067_s1 + $0x48] sm:$0xff]  ;;  %v19_v15 = vld [vmem:[%s6067_s1 + $0x40] sm:$0xff] }
 0x309   :  { %v1995_v56 = vmul.f32 %v4330_v23, %v1866_v7  ;;  %v2467_v34 = vadd.f32 %v2466_v51, %v2465_v13  ;;  %v2122_v20 = vadd.f32 %v6471_v25, %v1993_v28  ;;  %v2248_v4 = vmax.f32 %v2120_v53, 0.0  ;;  %2712 = vmatpush.msrb.mxu2 %v20_v48 }
 0x30a   :  { %v2468_v60 = vsel %vm162_vm0, %v2246_v10, 0.0  ;;  %v2418_v16 = vadd.f32 %v6721_v46, %v2416_v9  ;;  %v1795_v59 = vsub.f32 %v6722_v41, %v5160_v61  ;;  %v1869_v54 = vmul.f32 %v5406_v22, %v1794_v57 }
 0x30b   :  { %v2469_v39 = vadd.f32 %v2468_v60, %v2467_v34  ;;  %v1996_v52 = vmul.f32 %v4330_v23, %v1867_v30  ;;  %v2123_v35 = vadd.f32 %v6471_v25, %v1994_v14  ;;  %v2249_v42 = vmax.f32 %v2121_v55, 0.0  ;;  %2713 = vmatpush.msrb.mxu2 %v19_v15 }
 0x30c   :  { %v2470_v3 = vsel %vm162_vm0, %v2247_v63, 0.0  ;;  %v1870_v58 = vmul.f32 %v5406_v22, %v1795_v59  ;;  %v1997_v27 = vmul.f32 %v4330_v23, %v1868_v24  ;;  %v2124_v26 = vadd.f32 %v6471_v25, %v1995_v56 }
 0x30d   :  { %v2471_v38 = vadd.f32 %v2470_v3, %v2469_v39  ;;  %v2250_v62 = vmax.f32 %v2122_v20, 0.0  ;;  %v2472_v61 = vsel %vm162_vm0, %v2248_v4, 0.0  ;;  %v2420_v29 = vadd.f32 %v6723_v45, %v2418_v16 }
 0x30e   :  { %v3100_v5 = vmov 256.0   ;;  %v1998_v18 = vmul.f32 %v4330_v23, %v1869_v54  ;;  %v2125_v19 = vadd.f32 %v6471_v25, %v1996_v52  ;;  %v2251_v17 = vmax.f32 %v2123_v35, 0.0 }
 0x30f   :  { %3082 = vrcp.f32 %v3100_v5  ;;  %v2473_v36 = vadd.f32 %v2472_v61, %v2471_v38  ;;  %v2474_v22 = vsel %vm162_vm0, %v2249_v42, 0.0  ;;  %v2352_v21 = vrot.slane %v2351_v31, 4 }
 0x310   :  { %v1999_v6 = vmul.f32 %v4330_v23, %v1870_v58  ;;  %v2126_v2 = vadd.f32 %v6471_v25, %v1997_v27  ;;  %v2252_v49 = vmax.f32 %v2124_v26, 0.0  ;;  %v2476_v7 = vsel %vm162_vm0, %v2250_v62, 0.0 }
 0x311   :  { %v2475_v43 = vadd.f32 %v2474_v22, %v2473_v36  ;;  %v2421_v28 = vrot.slane %v2420_v29, 4  ;;  %v2559_v33 = vrot.slane %v5834_v0, 4  ;;  %v2127_v12 = vadd.f32 %v6471_v25, %v1998_v18 }
 0x312   :  { %v2253_v47 = vmax.f32 %v2125_v19, 0.0  ;;  %v2478_v53 = vsel %vm162_vm0, %v2251_v17, 0.0  ;;  %v2353_v10 = vadd.f32 %v2352_v21, %v2351_v31  ;;  %v2128_v32 = vadd.f32 %v6471_v25, %v1999_v6 }
 0x313   :  { %v2477_v23 = vadd.f32 %v2476_v7, %v2475_v43  ;;  %v2254_v9 = vmax.f32 %v2126_v2, 0.0  ;;  %v2480_v44 = vsel %vm162_vm0, %v2252_v49, 0.0  ;;  %v2422_v40 = vadd.f32 %v2421_v28, %v2420_v29 }
 0x314   :  { %v2560_v13 = vadd.f32 %v2559_v33, %v5834_v0  ;;  %v2255_v14 = vmax.f32 %v2127_v12, 0.0  ;;  %v2482_v55 = vsel %vm162_vm0, %v2253_v47, 0.0  ;;  %v2354_v51 = vrot.slane %v2353_v10, 2 }
 0x315   :  { %v3083_v37 = vpop.eup %3082  ;;  %v2479_v50 = vadd.f32 %v2478_v53, %v2477_v23  ;;  %v2256_v1 = vmax.f32 %v2128_v32, 0.0  ;;  %v2484_v57 = vsel %vm162_vm0, %v2254_v9, 0.0  ;;  %v2423_v31 = vrot.slane %v2422_v40, 2 }
 0x316   :  { %v2566_v30 = vmul.f32 256.0, %v3083_v37  ;;  %v2486_v25 = vsel %vm162_vm0, %v2255_v14, 0.0  ;;  %v2561_v34 = vrot.slane %v2560_v13, 2  ;;  %v2355_v4 = vadd.f32 %v2354_v51, %v2353_v10 }
 0x317   :  { %v2481_v11 = vadd.f32 %v2480_v44, %v2479_v50  ;;  %v2488_v60 = vsel %vm162_vm0, %v2256_v1, 0.0  ;;  %v2424_v46 = vadd.f32 %v2423_v31, %v2422_v40  ;;  %vm2570_vm8 = vweird.f32 %v3083_v37 }
 0x318   :  { %v2567_v56 = vsub.f32 1.0, %v2566_v30  ;;  %v2562_v41 = vadd.f32 %v2561_v34, %v2560_v13  ;;  %v2356_v54 = vrot.slane %v2355_v4, 1  ;;  %v3101_v21 = vmov 2.0  }
 0x319   :  { %v2483_v63 = vadd.f32 %v2482_v55, %v2481_v11  ;;  %v2425_v39 = vrot.slane %v2424_v46, 1  ;;  %3084 = vrcp.f32 %v3101_v21  ;;  %vm2687_vm5 = vcmask 1041408  }
 0x31a   :  { %v2568_v16 = vmul.f32 %v3083_v37, %v2567_v56  ;;  %v2563_v42 = vrot.slane %v2562_v41, 1  ;;  %v2357_v58 = vadd.f32 %v2356_v54, %v2355_v4  ;;  %vm2718_vm6 = vcmask 517120  }
 0x31b   :  { %v2485_v24 = vadd.f32 %v2484_v57, %v2483_v63  ;;  %v2426_v27 = vadd.f32 %v2425_v39, %v2424_v46  ;;  %v29_v46 = vld [vmem:[%s6067_s1 + $0x90] sm:$0xff] }
 0x31c   :  { %v2569_v35 = vadd.f32 %v3083_v37, %v2568_v16  ;;  %v2564_v62 = vadd.f32 %v2563_v42, %v2562_v41  ;;  %2804 = vmatpush.msrb.mxu3 %v29_v46 }
 0x31d   :  { %v2487_v20 = vadd.f32 %v2486_v25, %v2485_v24 }
 0x31e   :  { %v2571_v38 = vsel %vm2570_vm8, %v3083_v37, %v2569_v35 }
 0x31f   :  { %v2489_v0 = vadd.f32 %v2488_v60, %v2487_v20  ;;  %v2572_v45 = vmul.f32 %v2571_v38, %v2357_v58  ;;  %v2573_v29 = vmul.f32 %v2571_v38, %v2426_v27  ;;  %v2575_v36 = vmul.f32 %v2571_v38, %v2564_v62  ;;  %v3085_v6 = vpop.eup %3084  ;;  %v28_v58 = vld [vmem:[%s6067_s1 + $0x88] sm:$0xff]  ;;  %v27_v27 = vld [vmem:[%s6067_s1 + $0x80] sm:$0xff] }
 0x320   :  { %v2617_v43 = vmul.f32 2.0, %v3085_v6  ;;  %vm2621_vm13 = vweird.f32 %v3085_v6  ;;  %2805 = vmatpush.msrb.mxu3 %v28_v58 }
 0x321   :  { %v2490_v59 = vrot.slane %v2489_v0, 4  ;;  %v2581_v19 = vsel %vm2580_vm9, %v2573_v29, %v2572_v45  ;;  %v24_v45 = vld [vmem:[%s6067_s1 + $0x68] sm:$0xff] }
 0x322   :  { %v2618_v48 = vsub.f32 1.0, %v2617_v43  ;;  %2806 = vmatpush.msrb.mxu3 %v27_v27 }
 0x323   :  { %v2491_v52 = vadd.f32 %v2490_v59, %v2489_v0 }
 0x324   :  { %v2619_v28 = vmul.f32 %v3085_v6, %v2618_v48 }
 0x325   :  { %v2492_v3 = vrot.slane %v2491_v52, 2 }
 0x326   :  { %v2620_v40 = vadd.f32 %v3085_v6, %v2619_v28 }
 0x327   :  { %v2493_v26 = vadd.f32 %v2492_v3, %v2491_v52 }
 0x328   :  { %v5984_v57 = vsel %vm2621_vm13, %v3085_v6, %v2620_v40  ;;  %vm2815_vm13 = vcmask 123904  }
 0x329   :  { %v2494_v61 = vrot.slane %v2493_v26, 1 }
 0x32b   :  { %v2495_v5 = vadd.f32 %v2494_v61, %v2493_v26  ;;  %v25_v61 = vld [vmem:[%s6067_s1 + $0x70] sm:$0xff] }
 0x32d   :  { %v2574_v18 = vmul.f32 %v2571_v38, %v2495_v5  ;;  %v26_v38 = vld [vmem:[%s6067_s1 + $0x78] sm:$0xff] }
 0x32e   :  { %2807 = vmatpush.msrb.mxu3 %v26_v38 }
 0x32f   :  { %v2583_v17 = vsel %vm2582_vm10, %v2574_v18, %v2581_v19 }
 0x330   :  { %v2585_v22 = vsel %vm2584_vm11, %v2575_v36, %v2583_v17  ;;  %2808 = vmatpush.msrb.mxu3 %v25_v61 }
 0x331   :  { %3056 = vmatmul.msk.f32.vlgmr.msrb.gmra.mxu1 %vm162_vm0, %v2585_v22 }
 0x332   :  { %2809 = vmatpush.msrb.mxu3 %v24_v45 }
 0x3ae   :  { %v5978_v15 = vpop.f32.mrf.mxu1 }
 0x3af   :  { %v2609_v8 = vsel %vm2608_vm12, %v5978_v15, 0.0  ;;  %v2624_v2 = vmul.f32 %v5978_v15, %v5978_v15  ;;  %v2650_v49 = vrot.slane %v5978_v15, 2 }
 0x3b0   :  { %v2610_v7 = vrot.slane %v2609_v8, 4 }
 0x3b1   :  { %v2625_v23 = vsel %vm2608_vm12, %v2624_v2, 0.0  ;;  %v2652_v37 = vsel %vm2608_vm12, %v2650_v49, 0.0  ;;  %v2661_v33 = vrot.slane %v2624_v2, 2 }
 0x3b2   :  { %v2611_v12 = vadd.f32 %v2610_v7, %v2609_v8  ;;  %v2626_v47 = vrot.slane %v2625_v23, 4  ;;  %v2653_v53 = vrot.slane %v2652_v37, 4 }
 0x3b3   :  { %v2663_v10 = vsel %vm2608_vm12, %v2661_v33, 0.0  ;;  %vm2791_vm12 = vcmask 523264  }
 0x3b4   :  { %v2612_v50 = vrot.slane %v2611_v12, 2  ;;  %v2627_v32 = vadd.f32 %v2626_v47, %v2625_v23  ;;  %v2654_v9 = vadd.f32 %v2653_v53, %v2652_v37  ;;  %v2664_v44 = vrot.slane %v2663_v10, 4  ;;  %v6013_v23 = vld [vmem:[%s6067_s1 + $0xb0] sm:$0xff] }
 0x3b5   :  { %v2689_v37 = vperm.slane %v6013_v23, 2  ;;  %v2691_v47 = vperm.slane %v6013_v23, 3 }
 0x3b6   :  { %v2613_v11 = vadd.f32 %v2612_v50, %v2611_v12  ;;  %v2628_v30 = vrot.slane %v2627_v32, 2  ;;  %v2655_v13 = vrot.slane %v2654_v9, 2  ;;  %v2665_v14 = vadd.f32 %v2664_v44, %v2663_v10 }
 0x3b8   :  { %v2614_v55 = vrot.slane %v2613_v11, 1  ;;  %v2629_v63 = vadd.f32 %v2628_v30, %v2627_v32  ;;  %v2656_v51 = vadd.f32 %v2655_v13, %v2654_v9  ;;  %v2666_v1 = vrot.slane %v2665_v14, 2 }
 0x3b9   :  { %v2694_v9 = vperm.slane %v6013_v23, 4 }
 0x3ba   :  { %v2615_v31 = vadd.f32 %v2614_v55, %v2613_v11  ;;  %v2630_v24 = vrot.slane %v2629_v63, 1  ;;  %v2657_v56 = vrot.slane %v2656_v51, 1  ;;  %v2667_v25 = vadd.f32 %v2666_v1, %v2665_v14 }
 0x3bc   :  { %v2623_v34 = vmul.f32 %v5984_v57, %v2615_v31  ;;  %v2631_v20 = vadd.f32 %v2630_v24, %v2629_v63  ;;  %v2658_v4 = vadd.f32 %v2657_v56, %v2656_v51  ;;  %v2668_v60 = vrot.slane %v2667_v25, 1 }
 0x3be   :  { %v2632_v0 = vmul.f32 %v2631_v20, %v5984_v57  ;;  %v2633_v16 = vmul.f32 %v2623_v34, %v2623_v34  ;;  %v2659_v41 = vmul.f32 %v2658_v4, %v5984_v57  ;;  %v2669_v59 = vadd.f32 %v2668_v60, %v2667_v25 }
 0x3bf   :  { %v2636_v49 = vsub.f32 %v5978_v15, %v2623_v34 }
 0x3c0   :  { %v2634_v54 = vsub.f32 %v2632_v0, %v2633_v16  ;;  %v2671_v39 = vmul.f32 %v2659_v41, %v2659_v41  ;;  %v2670_v52 = vmul.f32 %v2669_v59, %v5984_v57  ;;  %v2674_v7 = vsub.f32 %v5978_v15, %v2659_v41  ;;  %v23_v15 = vld [vmem:[%s6067_s1 + $0x60] sm:$0xff] }
 0x3c1   :  { %2810 = vmatpush.msrb.mxu3 %v23_v15 }
 0x3c2   :  { %v2635_v35 = vmax.f32 %v2634_v54, 0.0  ;;  %v2672_v42 = vsub.f32 %v2670_v52, %v2671_v39 }
 0x3c4   :  { %v2637_v3 = vadd.f32 1e-05, %v2635_v35  ;;  %v2673_v26 = vmax.f32 %v2672_v42, 0.0 }
 0x3c6   :  { %3086 = vrsqrt.f32 %v2637_v3  ;;  %v2675_v62 = vadd.f32 1e-05, %v2673_v26  ;;  %vm2644_vm15 = vweird.f32 %v2637_v3 }
 0x3c8   :  { %3088 = vrsqrt.f32 %v2675_v62  ;;  %vm2682_vm3 = vweird.f32 %v2675_v62 }
 0x3cc   :  { %v3087_v29 = vpop.eup %3086 }
 0x3cd   :  { %v2639_v5 = vmul.f32 %v3087_v29, %v2637_v3  ;;  %vm2645_vm14 = vweird.f32 %v3087_v29 }
 0x3ce   :  { %v3089_v36 = vpop.eup %3088  ;;  %vm2646_vm2 = vmor %vm2644_vm15, %vm2645_vm14 }
 0x3cf   :  { %v2640_v18 = vmul.f32 %v3087_v29, %v2639_v5  ;;  %v2677_v19 = vmul.f32 %v3089_v36, %v2675_v62  ;;  %vm2683_vm1 = vweird.f32 %v3089_v36 }
 0x3d0   :  { %vm2684_vm4 = vmor %vm2682_vm3, %vm2683_vm1 }
 0x3d1   :  { %v2641_v17 = vmul.f32 0.5, %v2640_v18  ;;  %v2678_v22 = vmul.f32 %v3089_v36, %v2677_v19 }
 0x3d3   :  { %v2642_v21 = vsub.f32 1.5, %v2641_v17  ;;  %v2679_v6 = vmul.f32 0.5, %v2678_v22 }
 0x3d5   :  { %v2643_v43 = vmul.f32 %v3087_v29, %v2642_v21  ;;  %v2680_v48 = vsub.f32 1.5, %v2679_v6 }
 0x3d7   :  { %v2647_v8 = vsel %vm2646_vm2, %v3087_v29, %v2643_v43  ;;  %v2681_v2 = vmul.f32 %v3089_v36, %v2680_v48 }
 0x3d8   :  { %v2648_v33 = vmul.f32 %v2647_v8, %v2636_v49 }
 0x3d9   :  { %v2685_v28 = vsel %vm2684_vm4, %v3089_v36, %v2681_v2 }
 0x3da   :  { %v2686_v12 = vmul.f32 %v2685_v28, %v2674_v7 }
 0x3dc   :  { %v2688_v53 = vsel %vm2687_vm5, %v2648_v33, %v2686_v12 }
 0x3dd   :  { %v2690_v10 = vmul.f32 %v2689_v37, %v2688_v53 }
 0x3df   :  { %v2692_v50 = vadd.f32 %v2691_v47, %v2690_v10 }
 0x3e1   :  { %v2693_v32 = vmax.f32 %v2692_v50, 0.0 }
 0x3e3   :  { %3057 = vmatmul.msk.f32.vlgmr.msrb.gmra.mxu2 %vm162_vm0, %v2693_v32 }
 0x466   :  { %v2715_v44 = vpop.f32.mrf.mxu2 }
 0x467   :  { %v6023_v40 = vadd.f32 %v2715_v44, %v2694_v9 }
 0x469   :  { %v2719_v11 = vsel %vm2718_vm6, %v6023_v40, 0.0  ;;  %v2727_v30 = vmul.f32 %v6023_v40, %v6023_v40  ;;  %v2753_v13 = vrot.slane %v6023_v40, 2 }
 0x46a   :  { %v2720_v14 = vrot.slane %v2719_v11, 4 }
 0x46b   :  { %v2728_v55 = vsel %vm2718_vm6, %v2727_v30, 0.0  ;;  %v2755_v63 = vsel %vm2718_vm6, %v2753_v13, 0.0  ;;  %v2764_v51 = vrot.slane %v2727_v30, 2 }
 0x46c   :  { %v2721_v1 = vadd.f32 %v2720_v14, %v2719_v11  ;;  %v2729_v31 = vrot.slane %v2728_v55, 4  ;;  %v2756_v24 = vrot.slane %v2755_v63, 4 }
 0x46d   :  { %v2766_v56 = vsel %vm2718_vm6, %v2764_v51, 0.0  ;;  %vm2894_vm6 = vcmask 130048  }
 0x46e   :  { %v2722_v25 = vrot.slane %v2721_v1, 2  ;;  %v2730_v34 = vadd.f32 %v2729_v31, %v2728_v55  ;;  %v2757_v20 = vadd.f32 %v2756_v24, %v2755_v63  ;;  %v2767_v4 = vrot.slane %v2766_v56, 4 }
 0x470   :  { %v2723_v60 = vadd.f32 %v2722_v25, %v2721_v1  ;;  %v2731_v46 = vrot.slane %v2730_v34, 2  ;;  %v2758_v0 = vrot.slane %v2757_v20, 2  ;;  %v2768_v16 = vadd.f32 %v2767_v4, %v2766_v56 }
 0x472   :  { %v2724_v41 = vrot.slane %v2723_v60, 1  ;;  %v2732_v59 = vadd.f32 %v2731_v46, %v2730_v34  ;;  %v2759_v54 = vadd.f32 %v2758_v0, %v2757_v20  ;;  %v2769_v39 = vrot.slane %v2768_v16, 2 }
 0x474   :  { %v2733_v52 = vrot.slane %v2732_v59, 1  ;;  %v2770_v35 = vadd.f32 %v2769_v39, %v2768_v16  ;;  %v2725_v42 = vadd.f32 %v2724_v41, %v2723_v60  ;;  %v2760_v3 = vrot.slane %v2759_v54, 1 }
 0x476   :  { %v2734_v58 = vadd.f32 %v2733_v52, %v2732_v59  ;;  %v2771_v27 = vrot.slane %v2770_v35, 1  ;;  %v2726_v26 = vmul.f32 %v2725_v42, %v5984_v57  ;;  %v2761_v38 = vadd.f32 %v2760_v3, %v2759_v54 }
 0x478   :  { %v2772_v62 = vadd.f32 %v2771_v27, %v2770_v35  ;;  %v2735_v61 = vmul.f32 %v2734_v58, %v5984_v57  ;;  %v2736_v45 = vmul.f32 %v2726_v26, %v2726_v26  ;;  %v2762_v29 = vmul.f32 %v2761_v38, %v5984_v57 }
 0x479   :  { %v2739_v50 = vsub.f32 %v6023_v40, %v2726_v26 }
 0x47a   :  { %v2737_v5 = vsub.f32 %v2735_v61, %v2736_v45  ;;  %v2773_v36 = vmul.f32 %v2772_v62, %v5984_v57  ;;  %v2774_v18 = vmul.f32 %v2762_v29, %v2762_v29  ;;  %v2777_v32 = vsub.f32 %v6023_v40, %v2762_v29 }
 0x47c   :  { %v2738_v19 = vmax.f32 %v2737_v5, 0.0  ;;  %v2775_v17 = vsub.f32 %v2773_v36, %v2774_v18 }
 0x47e   :  { %v2740_v22 = vadd.f32 1e-05, %v2738_v19  ;;  %v2776_v21 = vmax.f32 %v2775_v17, 0.0 }
 0x480   :  { %3090 = vrsqrt.f32 %v2740_v22  ;;  %v2778_v6 = vadd.f32 1e-05, %v2776_v21  ;;  %vm2747_vm7 = vweird.f32 %v2740_v22  ;;  %v31_v21 = vld [vmem:[%s6067_s1 + $0xa0] sm:$0xff] }
 0x482   :  { %3092 = vrsqrt.f32 %v2778_v6  ;;  %vm2785_vm10 = vweird.f32 %v2778_v6 }
 0x486   :  { %v3091_v43 = vpop.eup %3090 }
 0x487   :  { %v2742_v48 = vmul.f32 %v3091_v43, %v2740_v22  ;;  %vm2748_vm0 = vweird.f32 %v3091_v43  ;;  %v32_v22 = vld [vmem:[%s6067_s1 + $0xa8] sm:$0xff]  ;;  %s3102_s1 = smov 64  }
 0x488   :  { %v3093_v8 = vpop.eup %3092  ;;  %vm2749_vm9 = vmor %vm2747_vm7, %vm2748_vm0  ;;  %2912 = vmatpush.msra.mxu1 %v32_v22 }
 0x489   :  { %v2743_v2 = vmul.f32 %v3091_v43, %v2742_v48  ;;  %v2780_v49 = vmul.f32 %v3093_v8, %v2778_v6  ;;  %vm2786_vm8 = vweird.f32 %v3093_v8 }
 0x48a   :  { %vm2787_vm11 = vmor %vm2785_vm10, %vm2786_vm8  ;;  %2913 = vmatpush.msra.mxu1 %v31_v21 }
 0x48b   :  { %v2744_v7 = vmul.f32 0.5, %v2743_v2  ;;  %v2781_v28 = vmul.f32 %v3093_v8, %v2780_v49 }
 0x48d   :  { %v2745_v37 = vsub.f32 1.5, %v2744_v7  ;;  %v2782_v33 = vmul.f32 0.5, %v2781_v28 }
 0x48f   :  { %v2746_v12 = vmul.f32 %v3091_v43, %v2745_v37  ;;  %v2783_v47 = vsub.f32 1.5, %v2782_v33 }
 0x491   :  { %v2750_v53 = vsel %vm2749_vm9, %v3091_v43, %v2746_v12  ;;  %v2784_v10 = vmul.f32 %v3093_v8, %v2783_v47 }
 0x492   :  { %v2751_v9 = vmul.f32 %v2750_v53, %v2739_v50 }
 0x493   :  { %v2788_v15 = vsel %vm2787_vm11, %v3093_v8, %v2784_v10 }
 0x494   :  { %v2789_v44 = vmul.f32 %v2788_v15, %v2777_v32 }
 0x496   :  { %v6036_v11 = vsel %vm2687_vm5, %v2751_v9, %v2789_v44 }
 0x497   :  { %3058 = vmatmul.msk.f32.vlgmr.msrb.gmra.mxu3 %vm2791_vm12, %v6036_v11 }
 0x51a   :  { %v6040_v30 = vpop.f32.mrf.mxu3 }
 0x51b   :  { %v2816_v13 = vsel %vm2815_vm13, %v6040_v30, 0.0  ;;  %v2824_v14 = vmul.f32 %v6040_v30, %v6040_v30  ;;  %v2850_v40 = vrot.slane %v6040_v30, 2 }
 0x51c   :  { %v2817_v55 = vrot.slane %v2816_v13, 4 }
 0x51d   :  { %v2825_v63 = vsel %vm2815_vm13, %v2824_v14, 0.0  ;;  %v2852_v51 = vsel %vm2815_vm13, %v2850_v40, 0.0  ;;  %v2861_v1 = vrot.slane %v2824_v14, 2 }
 0x51e   :  { %v2818_v31 = vadd.f32 %v2817_v55, %v2816_v13  ;;  %v2826_v24 = vrot.slane %v2825_v63, 4  ;;  %v2853_v56 = vrot.slane %v2852_v51, 4  ;;  %v2888_v13 = vperm.slane %v6013_v23, 5 }
 0x51f   :  { %v2863_v25 = vsel %vm2815_vm13, %v2861_v1, 0.0  ;;  %v2890_v55 = vperm.slane %v6013_v23, 6 }
 0x520   :  { %v2819_v34 = vrot.slane %v2818_v31, 2  ;;  %v2827_v20 = vadd.f32 %v2826_v24, %v2825_v63  ;;  %v2854_v4 = vadd.f32 %v2853_v56, %v2852_v51  ;;  %v2864_v60 = vrot.slane %v2863_v25, 4 }
 0x521   :  { %v2893_v24 = vperm.slane %v6013_v23, 7 }
 0x522   :  { %v2820_v46 = vadd.f32 %v2819_v34, %v2818_v31  ;;  %v2828_v0 = vrot.slane %v2827_v20, 2  ;;  %v2855_v16 = vrot.slane %v2854_v4, 2  ;;  %v2865_v41 = vadd.f32 %v2864_v60, %v2863_v25 }
 0x524   :  { %v2821_v59 = vrot.slane %v2820_v46, 1  ;;  %v2829_v54 = vadd.f32 %v2828_v0, %v2827_v20  ;;  %v2856_v39 = vadd.f32 %v2855_v16, %v2854_v4  ;;  %v2866_v52 = vrot.slane %v2865_v41, 2 }
 0x526   :  { %v2822_v35 = vadd.f32 %v2821_v59, %v2820_v46  ;;  %v2830_v42 = vrot.slane %v2829_v54, 1  ;;  %v2857_v3 = vrot.slane %v2856_v39, 1  ;;  %v2867_v58 = vadd.f32 %v2866_v52, %v2865_v41 }
 0x528   :  { %v2823_v27 = vmul.f32 %v2822_v35, %v5984_v57  ;;  %v2831_v26 = vadd.f32 %v2830_v42, %v2829_v54  ;;  %v2858_v38 = vadd.f32 %v2857_v3, %v2856_v39  ;;  %v2868_v62 = vrot.slane %v2867_v58, 1 }
 0x52a   :  { %v2832_v61 = vmul.f32 %v2831_v26, %v5984_v57  ;;  %v2833_v45 = vmul.f32 %v2823_v27, %v2823_v27  ;;  %v2859_v29 = vmul.f32 %v2858_v38, %v5984_v57  ;;  %v2869_v5 = vadd.f32 %v2868_v62, %v2867_v58 }
 0x52b   :  { %v2836_v15 = vsub.f32 %v6040_v30, %v2823_v27 }
 0x52c   :  { %v2834_v36 = vsub.f32 %v2832_v61, %v2833_v45  ;;  %v2871_v18 = vmul.f32 %v2859_v29, %v2859_v29  ;;  %v2870_v19 = vmul.f32 %v2869_v5, %v5984_v57  ;;  %v2874_v9 = vsub.f32 %v6040_v30, %v2859_v29 }
 0x52e   :  { %v2835_v17 = vmax.f32 %v2834_v36, 0.0  ;;  %v2872_v6 = vsub.f32 %v2870_v19, %v2871_v18 }
 0x530   :  { %v2837_v43 = vadd.f32 1e-05, %v2835_v17  ;;  %v2873_v48 = vmax.f32 %v2872_v6, 0.0 }
 0x532   :  { %3094 = vrsqrt.f32 %v2837_v43  ;;  %v2875_v8 = vadd.f32 1e-05, %v2873_v48  ;;  %vm2844_vm15 = vweird.f32 %v2837_v43 }
 0x534   :  { %3096 = vrsqrt.f32 %v2875_v8  ;;  %vm2882_vm3 = vweird.f32 %v2875_v8 }
 0x538   :  { %v3095_v2 = vpop.eup %3094 }
 0x539   :  { %v2839_v49 = vmul.f32 %v3095_v2, %v2837_v43  ;;  %vm2845_vm14 = vweird.f32 %v3095_v2 }
 0x53a   :  { %v3097_v57 = vpop.eup %3096  ;;  %vm2846_vm2 = vmor %vm2844_vm15, %vm2845_vm14 }
 0x53b   :  { %v2840_v7 = vmul.f32 %v3095_v2, %v2839_v49  ;;  %v2877_v28 = vmul.f32 %v3097_v57, %v2875_v8  ;;  %vm2883_vm1 = vweird.f32 %v3097_v57 }
 0x53c   :  { %vm2884_vm4 = vmor %vm2882_vm3, %vm2883_vm1 }
 0x53d   :  { %v2841_v37 = vmul.f32 0.5, %v2840_v7  ;;  %v2878_v33 = vmul.f32 %v3097_v57, %v2877_v28 }
 0x53f   :  { %v2842_v12 = vsub.f32 1.5, %v2841_v37  ;;  %v2879_v47 = vmul.f32 0.5, %v2878_v33 }
 0x541   :  { %v2843_v53 = vmul.f32 %v3095_v2, %v2842_v12  ;;  %v2880_v10 = vsub.f32 1.5, %v2879_v47 }
 0x543   :  { %v2847_v50 = vsel %vm2846_vm2, %v3095_v2, %v2843_v53  ;;  %v2881_v32 = vmul.f32 %v3097_v57, %v2880_v10 }
 0x544   :  { %v2848_v14 = vmul.f32 %v2847_v50, %v2836_v15 }
 0x545   :  { %v2885_v44 = vsel %vm2884_vm4, %v3097_v57, %v2881_v32 }
 0x546   :  { %v2886_v40 = vmul.f32 %v2885_v44, %v2874_v9 }
 0x548   :  { %v2887_v63 = vsel %vm2687_vm5, %v2848_v14, %v2886_v40 }
 0x549   :  { %v2889_v51 = vmul.f32 %v2888_v13, %v2887_v63 }
 0x54b   :  { %v2891_v1 = vadd.f32 %v2890_v55, %v2889_v51 }
 0x54d   :  { %v2892_v31 = vmax.f32 %v2891_v1, 0.0 }
 0x54f   :  { %3059 = vmatmul.msk.f32.vlgmr.msra.gmra.mxu1 %vm2894_vm6, %v2892_v31 }
 0x5cc   :  { %v2915_v56 = vpop.f32.mrf.mxu1 }
 0x5cd   :  { %v2916_v25 = vadd.f32 %v2915_v56, %v2893_v24 }
 0x5cf   :  { %2919 = vrot.lane.b32.xlu0 %v2916_v25, %s3102_s1 }
 0x641   :  { %v2920_v30 = vpop.permute.xlu0 %2919 }
 0x642   :  { %v2922_v34 = vsel %vm2791_vm12, %v6036_v11, %v2920_v30 }
 0x643   :  { %2923 = vst [vmem:[%s6069_s2] sm:$0xf] %v2922_v34 }

</bundles_post_ra>
